<compile_context>
chip_gen: v7x
topology: tpu7x:2x2x1
jax: 0.10.0
libtpu: 0.0.40
codegen_flags: <defaults>
</compile_context>

<pallas_src>
import functools

import numpy as np
import jax
import jax.numpy as jnp
from jax.experimental import pallas as pl
from jax.experimental.pallas import tpu as pltpu


# ----------------------------------------------------------------------------
# Pallas kernel: whole discriminator forward, one sample per grid step.
# ----------------------------------------------------------------------------
def _instance_norm_prelu(y, gamma, beta, alpha):
    """y: (P, C) f32; gamma/beta/alpha: (1, C) f32."""
    inv_n = 1.0 / y.shape[0]
    mean = jnp.sum(y, axis=0, keepdims=True) * inv_n
    d = y - mean
    var = jnp.sum(d * d, axis=0, keepdims=True) * inv_n      # biased, two-pass
    y = d * jax.lax.rsqrt(var + 1e-5)
    y = y * gamma + beta
    return jnp.where(y >= 0.0, y, alpha * y)                  # PReLU


def _conv_block(a_prev, gv, w, gamma, beta, alpha, p_out):
    """4x4 stride-2 pad-1 conv + InstanceNorm2d(affine) + PReLU, VMEM-resident.

    a_prev: (P_in, C_in)   bf16 activation (row-major spatial, channels-last)
    gv    : (16*Pp, P_in)  bf16 one-hot tap gather matrix (Pp = P_out padded to >=8)
    w     : (16*C_in, C_out) bf16 tap-major conv weight
    returns (p_out, C_out) f32
    """
    pp = gv.shape[0] // 16
    c_in = w.shape[0] // 16
    c_out = w.shape[1]
    # In-kernel im2col as ONE gather matmul (one-hot * bf16 -> exact values).
    ga = jnp.dot(gv, a_prev, preferred_element_type=jnp.float32)
    ga = ga.astype(jnp.bfloat16)                               # (16*Pp, C_in)
    # Accumulate the 16 tap contributions (static unroll, tiny MXU pushes;
    # all slice offsets are multiples of 8).
    y = jnp.zeros((pp, c_out), jnp.float32)
    for t in range(16):
        y = y + jnp.dot(ga[t * pp:(t + 1) * pp, :],
                        w[t * c_in:(t + 1) * c_in, :],
                        preferred_element_type=jnp.float32)
    return _instance_norm_prelu(y[:p_out], gamma, beta, alpha)


def metric_disc_kernel(p1_ref, w1_ref, gv2_ref, w2_ref, gv3_ref, w3_ref,
                       gv4_ref, w4_ref, wl1_ref, vec_ref, o_ref):
    """Full MetricDiscriminator forward for one sample.

    p1_ref : (1, P1, K1) bf16 conv1 im2col patches (only XLA-side glue)
    w*_ref : bf16 spectrally-normalized conv / linear weights
    gv*_ref: bf16 one-hot gather matrices for in-kernel im2col
    vec_ref: (16, 128) f32 packed per-channel params:
             rows 3l..3l+2 = IN gamma / IN beta / PReLU slope of conv layer l,
             row 12 = Linear1 bias, row 13 = head PReLU slope,
             row 14 = Linear2 weight row, row 15 = [Linear2 bias, sigmoid slope, beta]
    o_ref  : (1, 1, 1) f32
    """
    V = vec_ref[...]                                           # (16, 128) f32

    # conv1 + InstanceNorm + PReLU
    c1 = w1_ref.shape[1]
    y = jnp.dot(p1_ref[0], w1_ref[...], preferred_element_type=jnp.float32)
    a = _instance_norm_prelu(y, V[0:1, :c1], V[1:2, :c1], V[2:3, :c1])
    a = a.astype(jnp.bfloat16)                                 # (256, 16)

    # conv2..conv4 (output spatial sizes derived from gather-matrix shapes)
    p_out2 = gv3_ref.shape[1]                                  # 64
    p_out3 = gv4_ref.shape[1]                                  # 16
    p_out4 = p_out3 // 4                                       # 4

    c2 = w2_ref.shape[1]
    a = _conv_block(a, gv2_ref[...], w2_ref[...],
                    V[3:4, :c2], V[4:5, :c2], V[5:6, :c2],
                    p_out2).astype(jnp.bfloat16)               # (64, 32)
    c3 = w3_ref.shape[1]
    a = _conv_block(a, gv3_ref[...], w3_ref[...],
                    V[6:7, :c3], V[7:8, :c3], V[8:9, :c3],
                    p_out3).astype(jnp.bfloat16)               # (16, 64)
    c4 = w4_ref.shape[1]
    y4 = _conv_block(a, gv4_ref[...], w4_ref[...],
                     V[9:10, :c4], V[10:11, :c4], V[11:12, :c4],
                     p_out4)                                   # (4, 128) f32

    # AdaptiveMaxPool2d(1) + Flatten
    h = jnp.max(y4, axis=0, keepdims=True)                     # (1, 128)

    # Linear(128->64) -> Dropout(eval id) -> PReLU -> Linear(64->1) -> sigmoid
    # TODO(synk): Dropout(0.3) omitted (eval-mode identity).
    cl = wl1_ref.shape[1]
    z = jnp.dot(h.astype(jnp.bfloat16), wl1_ref[...],
                preferred_element_type=jnp.float32) + V[12:13, :cl]
    z = jnp.where(z >= 0.0, z, V[13:14, :cl] * z)              # PReLU
    z2 = jnp.sum(z * V[14:15, :cl], axis=1, keepdims=True) + V[15:16, 0:1]
    # LearnableSigmoid1D(1): beta * sigmoid(slope * x)
    o_ref[0] = V[15:16, 2:3] * jax.nn.sigmoid(V[15:16, 1:2] * z2)


# ----------------------------------------------------------------------------
# JAX / numpy glue (parameter setup + conv1 im2col only)
# ----------------------------------------------------------------------------
def im2col_nhwc(x, kh=4, kw=4, stride=2, pad=1):
    """x: (B, H, W, C) -> patches (B, Ho*Wo, kh*kw*C), tap-major ordering."""
    B, H, W, C = x.shape
    xp = jnp.pad(x, ((0, 0), (pad, pad), (pad, pad), (0, 0)))
    Ho = (H + 2 * pad - kh) // stride + 1
    Wo = (W + 2 * pad - kw) // stride + 1
    taps = [xp[:, i:i + stride * Ho:stride, j:j + stride * Wo:stride, :]
            for i in range(kh) for j in range(kw)]
    p = jnp.stack(taps, axis=3)                                # (B, Ho, Wo, 16, C)
    return p.reshape(B, Ho * Wo, kh * kw * C)


def gather_matrix(hin, win, pp):
    """One-hot tap gather matrix for a 4x4/stride-2/pad-1 conv.

    Returns (16*pp, hin*win) bf16 with G[t*pp + p, ih*win + iw] = 1 for valid
    input taps, 0 otherwise (zero rows implement the conv zero padding and the
    sublane-alignment padding of P_out up to pp).
    """
    hout, wout = hin // 2, win // 2
    g = np.zeros((16 * pp, hin * win), np.float32)
    for t in range(16):
        ti, tj = divmod(t, 4)
        for p in range(hout * wout):
            oh, ow = divmod(p, wout)
            ih, iw = 2 * oh - 1 + ti, 2 * ow - 1 + tj
            if 0 <= ih < hin and 0 <= iw < win:
                g[t * pp + p, ih * win + iw] = 1.0
    return jnp.asarray(g, jnp.bfloat16)


def spectral_normalize(w_mat, n_iter=30):
    """w_mat: (out, in). Returns w_mat / sigma_max (power iteration)."""
    u = jnp.ones((w_mat.shape[0],), jnp.float32)
    u = u / jnp.linalg.norm(u)
    for _ in range(n_iter):
        v = w_mat.T @ u
        v = v / (jnp.linalg.norm(v) + 1e-12)
        u = w_mat @ v
        u = u / (jnp.linalg.norm(u) + 1e-12)
    sigma = u @ (w_mat @ v)
    return w_mat / sigma


def init_params(key, dim=16, in_channel=2, spatial=32):
    """Deterministic synthetic parameters (shapes match the PyTorch module)."""
    ks = jax.random.split(key, 8)
    chans = [in_channel, dim, dim * 2, dim * 4, dim * 8]
    params = {}
    vecs = jnp.zeros((16, 128), jnp.float32)
    names = ("w1", "w2", "w3", "w4")
    for li in range(4):
        cin, cout = chans[li], chans[li + 1]
        w = 0.1 * jax.random.normal(ks[li], (cout, cin, 4, 4), jnp.float32)
        w_sn = spectral_normalize(w.reshape(cout, -1)).reshape(cout, cin, 4, 4)
        # Re-order to tap-major (kh, kw, cin, cout) to match channels-last im2col.
        w_flat = w_sn.transpose(2, 3, 1, 0).reshape(16 * cin, cout)
        params[names[li]] = w_flat.astype(jnp.bfloat16)
        vecs = vecs.at[3 * li + 0, :cout].set(1.0)     # InstanceNorm2d gamma
        # InstanceNorm2d beta row (3*li+1) stays zero.
        vecs = vecs.at[3 * li + 2, :cout].set(0.25)    # PReLU init

    # Linear head: Linear(dim*8 -> dim*4), PReLU(dim*4), Linear(dim*4 -> 1)
    wl1 = 0.1 * jax.random.normal(ks[4], (dim * 4, dim * 8), jnp.float32)   # (out,in)
    params["wl1"] = spectral_normalize(wl1).T.astype(jnp.bfloat16)          # (128, 64)
    b1 = 0.02 * jax.random.normal(ks[5], (dim * 4,), jnp.float32)
    wl2 = spectral_normalize(
        0.1 * jax.random.normal(ks[6], (1, dim * 4), jnp.float32))          # (1, 64)
    b2 = 0.02 * jax.random.normal(ks[7], (1,), jnp.float32)
    vecs = vecs.at[12, :dim * 4].set(b1)               # Linear1 bias
    vecs = vecs.at[13, :dim * 4].set(0.25)             # head PReLU init
    vecs = vecs.at[14, :dim * 4].set(wl2[0])           # Linear2 weight row
    vecs = vecs.at[15, 0].set(b2[0])                   # Linear2 bias
    vecs = vecs.at[15, 1].set(1.0)                     # LearnableSigmoid1D slope
    vecs = vecs.at[15, 2].set(1.0)                     # LearnableSigmoid1D beta
    params["vecs"] = vecs

    # Gather matrices for in-kernel im2col of conv2..conv4.
    s1, s2, s3, s4 = spatial // 2, spatial // 4, spatial // 8, spatial // 16
    params["gv2"] = gather_matrix(s1, s1, pp=max(s2 * s2, 8))   # (1024, 256)
    params["gv3"] = gather_matrix(s2, s2, pp=max(s3 * s3, 8))   # (256, 64)
    params["gv4"] = gather_matrix(s3, s3, pp=max(s4 * s4, 8))   # (128, 16)
    return params


@jax.jit
def metric_discriminator(params, x, y):
    """x, y: (B, H, W) -> (B, 1)."""
    xy = jnp.stack((x, y), axis=-1).astype(jnp.bfloat16)        # (B, H, W, 2) NHWC
    patches = im2col_nhwc(xy)                                   # (B, 256, 32) bf16
    B, P1, K1 = patches.shape

    weights = [params[n] for n in
               ("w1", "gv2", "w2", "gv3", "w3", "gv4", "w4", "wl1", "vecs")]
    in_specs = [pl.BlockSpec((1, P1, K1), lambda b: (b, 0, 0))]
    in_specs += [pl.BlockSpec(w.shape, lambda b: (0, 0)) for w in weights]

    out = pl.pallas_call(
        metric_disc_kernel,
        out_shape=jax.ShapeDtypeStruct((B, 1, 1), jnp.float32),
        grid_spec=pltpu.PrefetchScalarGridSpec(
            num_scalar_prefetch=0,
            grid=(B,),
            in_specs=in_specs,
            out_specs=pl.BlockSpec((1, 1, 1), lambda b: (b, 0, 0)),
        ),
        compiler_params=pltpu.CompilerParams(
            dimension_semantics=("parallel",)),
    )(patches, *weights)
    return out.reshape(B, 1)


if __name__ == "__main__":
    key = jax.random.PRNGKey(0)
    k_param, k_x, k_y = jax.random.split(key, 3)

    dim, in_channel = 16, 2
    B, H, W = 2, 32, 32
    params = init_params(k_param, dim=dim, in_channel=in_channel, spatial=H)

    x = jax.random.normal(k_x, (B, H, W), jnp.float32)
    y = jax.random.normal(k_y, (B, H, W), jnp.float32)

    out = metric_discriminator(params, x, y)
    out = jax.block_until_ready(out)
    assert out.shape == (B, 1) and out.dtype == jnp.float32
    assert bool(jnp.all(jnp.isfinite(out)))
    print("KERNEL_OK")
</pallas_src>

<mosaic_0001>
module attributes {stable_mosaic.version = 11 : i64} {
  func.func @metric_disc_kernel(%arg0: i32, %arg1: memref<1x256x32xbf16, #tpu.memory_space<vmem>>, %arg2: memref<32x16xbf16, #tpu.memory_space<vmem>>, %arg3: memref<1024x256xbf16, #tpu.memory_space<vmem>>, %arg4: memref<256x32xbf16, #tpu.memory_space<vmem>>, %arg5: memref<256x64xbf16, #tpu.memory_space<vmem>>, %arg6: memref<512x64xbf16, #tpu.memory_space<vmem>>, %arg7: memref<128x16xbf16, #tpu.memory_space<vmem>>, %arg8: memref<1024x128xbf16, #tpu.memory_space<vmem>>, %arg9: memref<128x64xbf16, #tpu.memory_space<vmem>>, %arg10: memref<16x128xf32, #tpu.memory_space<vmem>>, %arg11: memref<1x1x1xf32, #tpu.memory_space<vmem>>) attributes {dimension_semantics = [#tpu.dimension_semantics<parallel>], iteration_bounds = array<i64: 2>, scalar_prefetch = 0 : i64, scratch_operands = 0 : i64, tpu.core_type = #tpu.core_type<tc>, window_params = [{transform_indices = @transform_0, window_bounds = array<i64: 1, 256, 32>}, {pipeline_mode = #tpu.pipeline_mode<synchronous>, transform_indices = @transform_1, window_bounds = array<i64: 32, 16>}, {pipeline_mode = #tpu.pipeline_mode<synchronous>, transform_indices = @transform_2, window_bounds = array<i64: 1024, 256>}, {pipeline_mode = #tpu.pipeline_mode<synchronous>, transform_indices = @transform_3, window_bounds = array<i64: 256, 32>}, {pipeline_mode = #tpu.pipeline_mode<synchronous>, transform_indices = @transform_4, window_bounds = array<i64: 256, 64>}, {pipeline_mode = #tpu.pipeline_mode<synchronous>, transform_indices = @transform_5, window_bounds = array<i64: 512, 64>}, {pipeline_mode = #tpu.pipeline_mode<synchronous>, transform_indices = @transform_6, window_bounds = array<i64: 128, 16>}, {pipeline_mode = #tpu.pipeline_mode<synchronous>, transform_indices = @transform_7, window_bounds = array<i64: 1024, 128>}, {pipeline_mode = #tpu.pipeline_mode<synchronous>, transform_indices = @transform_8, window_bounds = array<i64: 128, 64>}, {pipeline_mode = #tpu.pipeline_mode<synchronous>, transform_indices = @transform_9, window_bounds = array<i64: 16, 128>}, {transform_indices = @transform_10, window_bounds = array<i64: 1, 1, 1>}]} {
    %c0 = arith.constant 0 : index
    %c0_0 = arith.constant 0 : index
    %0 = vector.load %arg10[%c0, %c0_0] : memref<16x128xf32, #tpu.memory_space<vmem>>, vector<16x128xf32>
    %c0_1 = arith.constant 0 : index
    %c0_2 = arith.constant 0 : index
    %c0_3 = arith.constant 0 : index
    %1 = vector.load %arg1[%c0_1, %c0_2, %c0_3] : memref<1x256x32xbf16, #tpu.memory_space<vmem>>, vector<1x256x32xbf16>
    %2 = vector.shape_cast %1 : vector<1x256x32xbf16> to vector<256x32xbf16>
    %c0_4 = arith.constant 0 : index
    %c0_5 = arith.constant 0 : index
    %3 = vector.load %arg2[%c0_4, %c0_5] : memref<32x16xbf16, #tpu.memory_space<vmem>>, vector<32x16xbf16>
    %cst = arith.constant dense<0.000000e+00> : vector<256x16xf32>
    %4 = tpu.matmul %2, %3, %cst {dimension_numbers = #tpu.dot_dimension_numbers<[1], [0], [0], [1], [0, 0, 1, 1], [], []>} : vector<256x32xbf16>, vector<32x16xbf16>, vector<256x16xf32> -> vector<256x16xf32>
    %5 = vector.extract_strided_slice %0 {offsets = [0, 0], sizes = [1, 16], strides = [1, 1]} : vector<16x128xf32> to vector<1x16xf32>
    %6 = vector.extract_strided_slice %0 {offsets = [1, 0], sizes = [1, 16], strides = [1, 1]} : vector<16x128xf32> to vector<1x16xf32>
    %7 = vector.extract_strided_slice %0 {offsets = [2, 0], sizes = [1, 16], strides = [1, 1]} : vector<16x128xf32> to vector<1x16xf32>
    %cst_6 = arith.constant dense<0.000000e+00> : vector<16xf32>
    %8 = vector.multi_reduction <add>, %4, %cst_6 [0] : vector<256x16xf32> to vector<16xf32>
    %9 = vector.shape_cast %8 : vector<16xf32> to vector<1x16xf32>
    %cst_7 = arith.constant 3.906250e-03 : f32
    %10 = vector.broadcast %cst_7 : f32 to vector<1x16xf32>
    %11 = arith.mulf %9, %10 : vector<1x16xf32>
    %12 = vector.broadcast %11 : vector<1x16xf32> to vector<256x16xf32>
    %13 = arith.subf %4, %12 : vector<256x16xf32>
    %14 = arith.mulf %13, %13 : vector<256x16xf32>
    %cst_8 = arith.constant dense<0.000000e+00> : vector<16xf32>
    %15 = vector.multi_reduction <add>, %14, %cst_8 [0] : vector<256x16xf32> to vector<16xf32>
    %16 = vector.shape_cast %15 : vector<16xf32> to vector<1x16xf32>
    %cst_9 = arith.constant 3.906250e-03 : f32
    %17 = vector.broadcast %cst_9 : f32 to vector<1x16xf32>
    %18 = arith.mulf %16, %17 : vector<1x16xf32>
    %cst_10 = arith.constant 9.99999974E-6 : f32
    %19 = vector.broadcast %cst_10 : f32 to vector<1x16xf32>
    %20 = arith.addf %18, %19 : vector<1x16xf32>
    %21 = math.rsqrt %20 : vector<1x16xf32>
    %22 = vector.broadcast %21 : vector<1x16xf32> to vector<256x16xf32>
    %23 = arith.mulf %13, %22 : vector<256x16xf32>
    %24 = vector.broadcast %5 : vector<1x16xf32> to vector<256x16xf32>
    %25 = arith.mulf %23, %24 : vector<256x16xf32>
    %26 = vector.broadcast %6 : vector<1x16xf32> to vector<256x16xf32>
    %27 = arith.addf %25, %26 : vector<256x16xf32>
    %cst_11 = arith.constant 0.000000e+00 : f32
    %28 = vector.broadcast %cst_11 : f32 to vector<256x16xf32>
    %29 = arith.cmpf oge, %27, %28 : vector<256x16xf32>
    %30 = vector.broadcast %7 : vector<1x16xf32> to vector<256x16xf32>
    %31 = arith.mulf %30, %27 : vector<256x16xf32>
    %32 = arith.select %29, %27, %31 : vector<256x16xi1>, vector<256x16xf32>
    %33 = arith.truncf %32 : vector<256x16xf32> to vector<256x16xbf16>
    %c0_12 = arith.constant 0 : index
    %c0_13 = arith.constant 0 : index
    %34 = vector.load %arg3[%c0_12, %c0_13] : memref<1024x256xbf16, #tpu.memory_space<vmem>>, vector<1024x256xbf16>
    %c0_14 = arith.constant 0 : index
    %c0_15 = arith.constant 0 : index
    %35 = vector.load %arg4[%c0_14, %c0_15] : memref<256x32xbf16, #tpu.memory_space<vmem>>, vector<256x32xbf16>
    %36 = vector.extract_strided_slice %0 {offsets = [3, 0], sizes = [1, 32], strides = [1, 1]} : vector<16x128xf32> to vector<1x32xf32>
    %37 = vector.extract_strided_slice %0 {offsets = [4, 0], sizes = [1, 32], strides = [1, 1]} : vector<16x128xf32> to vector<1x32xf32>
    %38 = vector.extract_strided_slice %0 {offsets = [5, 0], sizes = [1, 32], strides = [1, 1]} : vector<16x128xf32> to vector<1x32xf32>
    %cst_16 = arith.constant dense<0.000000e+00> : vector<1024x16xf32>
    %39 = tpu.matmul %34, %33, %cst_16 {dimension_numbers = #tpu.dot_dimension_numbers<[1], [0], [0], [1], [0, 0, 1, 1], [], []>} : vector<1024x256xbf16>, vector<256x16xbf16>, vector<1024x16xf32> -> vector<1024x16xf32>
    %40 = arith.truncf %39 : vector<1024x16xf32> to vector<1024x16xbf16>
    %cst_17 = arith.constant 0.000000e+00 : f32
    %41 = vector.broadcast %cst_17 : f32 to vector<64x32xf32>
    %42 = vector.extract_strided_slice %40 {offsets = [0, 0], sizes = [64, 16], strides = [1, 1]} : vector<1024x16xbf16> to vector<64x16xbf16>
    %43 = vector.extract_strided_slice %35 {offsets = [0, 0], sizes = [16, 32], strides = [1, 1]} : vector<256x32xbf16> to vector<16x32xbf16>
    %cst_18 = arith.constant dense<0.000000e+00> : vector<64x32xf32>
    %44 = tpu.matmul %42, %43, %cst_18 {dimension_numbers = #tpu.dot_dimension_numbers<[1], [0], [0], [1], [0, 0, 1, 1], [], []>} : vector<64x16xbf16>, vector<16x32xbf16>, vector<64x32xf32> -> vector<64x32xf32>
    %45 = arith.addf %41, %44 : vector<64x32xf32>
    %46 = vector.extract_strided_slice %40 {offsets = [64, 0], sizes = [64, 16], strides = [1, 1]} : vector<1024x16xbf16> to vector<64x16xbf16>
    %47 = vector.extract_strided_slice %35 {offsets = [16, 0], sizes = [16, 32], strides = [1, 1]} : vector<256x32xbf16> to vector<16x32xbf16>
    %cst_19 = arith.constant dense<0.000000e+00> : vector<64x32xf32>
    %48 = tpu.matmul %46, %47, %cst_19 {dimension_numbers = #tpu.dot_dimension_numbers<[1], [0], [0], [1], [0, 0, 1, 1], [], []>} : vector<64x16xbf16>, vector<16x32xbf16>, vector<64x32xf32> -> vector<64x32xf32>
    %49 = arith.addf %45, %48 : vector<64x32xf32>
    %50 = vector.extract_strided_slice %40 {offsets = [128, 0], sizes = [64, 16], strides = [1, 1]} : vector<1024x16xbf16> to vector<64x16xbf16>
    %51 = vector.extract_strided_slice %35 {offsets = [32, 0], sizes = [16, 32], strides = [1, 1]} : vector<256x32xbf16> to vector<16x32xbf16>
    %cst_20 = arith.constant dense<0.000000e+00> : vector<64x32xf32>
    %52 = tpu.matmul %50, %51, %cst_20 {dimension_numbers = #tpu.dot_dimension_numbers<[1], [0], [0], [1], [0, 0, 1, 1], [], []>} : vector<64x16xbf16>, vector<16x32xbf16>, vector<64x32xf32> -> vector<64x32xf32>
    %53 = arith.addf %49, %52 : vector<64x32xf32>
    %54 = vector.extract_strided_slice %40 {offsets = [192, 0], sizes = [64, 16], strides = [1, 1]} : vector<1024x16xbf16> to vector<64x16xbf16>
    %55 = vector.extract_strided_slice %35 {offsets = [48, 0], sizes = [16, 32], strides = [1, 1]} : vector<256x32xbf16> to vector<16x32xbf16>
    %cst_21 = arith.constant dense<0.000000e+00> : vector<64x32xf32>
    %56 = tpu.matmul %54, %55, %cst_21 {dimension_numbers = #tpu.dot_dimension_numbers<[1], [0], [0], [1], [0, 0, 1, 1], [], []>} : vector<64x16xbf16>, vector<16x32xbf16>, vector<64x32xf32> -> vector<64x32xf32>
    %57 = arith.addf %53, %56 : vector<64x32xf32>
    %58 = vector.extract_strided_slice %40 {offsets = [256, 0], sizes = [64, 16], strides = [1, 1]} : vector<1024x16xbf16> to vector<64x16xbf16>
    %59 = vector.extract_strided_slice %35 {offsets = [64, 0], sizes = [16, 32], strides = [1, 1]} : vector<256x32xbf16> to vector<16x32xbf16>
    %cst_22 = arith.constant dense<0.000000e+00> : vector<64x32xf32>
    %60 = tpu.matmul %58, %59, %cst_22 {dimension_numbers = #tpu.dot_dimension_numbers<[1], [0], [0], [1], [0, 0, 1, 1], [], []>} : vector<64x16xbf16>, vector<16x32xbf16>, vector<64x32xf32> -> vector<64x32xf32>
    %61 = arith.addf %57, %60 : vector<64x32xf32>
    %62 = vector.extract_strided_slice %40 {offsets = [320, 0], sizes = [64, 16], strides = [1, 1]} : vector<1024x16xbf16> to vector<64x16xbf16>
    %63 = vector.extract_strided_slice %35 {offsets = [80, 0], sizes = [16, 32], strides = [1, 1]} : vector<256x32xbf16> to vector<16x32xbf16>
    %cst_23 = arith.constant dense<0.000000e+00> : vector<64x32xf32>
    %64 = tpu.matmul %62, %63, %cst_23 {dimension_numbers = #tpu.dot_dimension_numbers<[1], [0], [0], [1], [0, 0, 1, 1], [], []>} : vector<64x16xbf16>, vector<16x32xbf16>, vector<64x32xf32> -> vector<64x32xf32>
    %65 = arith.addf %61, %64 : vector<64x32xf32>
    %66 = vector.extract_strided_slice %40 {offsets = [384, 0], sizes = [64, 16], strides = [1, 1]} : vector<1024x16xbf16> to vector<64x16xbf16>
    %67 = vector.extract_strided_slice %35 {offsets = [96, 0], sizes = [16, 32], strides = [1, 1]} : vector<256x32xbf16> to vector<16x32xbf16>
    %cst_24 = arith.constant dense<0.000000e+00> : vector<64x32xf32>
    %68 = tpu.matmul %66, %67, %cst_24 {dimension_numbers = #tpu.dot_dimension_numbers<[1], [0], [0], [1], [0, 0, 1, 1], [], []>} : vector<64x16xbf16>, vector<16x32xbf16>, vector<64x32xf32> -> vector<64x32xf32>
    %69 = arith.addf %65, %68 : vector<64x32xf32>
    %70 = vector.extract_strided_slice %40 {offsets = [448, 0], sizes = [64, 16], strides = [1, 1]} : vector<1024x16xbf16> to vector<64x16xbf16>
    %71 = vector.extract_strided_slice %35 {offsets = [112, 0], sizes = [16, 32], strides = [1, 1]} : vector<256x32xbf16> to vector<16x32xbf16>
    %cst_25 = arith.constant dense<0.000000e+00> : vector<64x32xf32>
    %72 = tpu.matmul %70, %71, %cst_25 {dimension_numbers = #tpu.dot_dimension_numbers<[1], [0], [0], [1], [0, 0, 1, 1], [], []>} : vector<64x16xbf16>, vector<16x32xbf16>, vector<64x32xf32> -> vector<64x32xf32>
    %73 = arith.addf %69, %72 : vector<64x32xf32>
    %74 = vector.extract_strided_slice %40 {offsets = [512, 0], sizes = [64, 16], strides = [1, 1]} : vector<1024x16xbf16> to vector<64x16xbf16>
    %75 = vector.extract_strided_slice %35 {offsets = [128, 0], sizes = [16, 32], strides = [1, 1]} : vector<256x32xbf16> to vector<16x32xbf16>
    %cst_26 = arith.constant dense<0.000000e+00> : vector<64x32xf32>
    %76 = tpu.matmul %74, %75, %cst_26 {dimension_numbers = #tpu.dot_dimension_numbers<[1], [0], [0], [1], [0, 0, 1, 1], [], []>} : vector<64x16xbf16>, vector<16x32xbf16>, vector<64x32xf32> -> vector<64x32xf32>
    %77 = arith.addf %73, %76 : vector<64x32xf32>
    %78 = vector.extract_strided_slice %40 {offsets = [576, 0], sizes = [64, 16], strides = [1, 1]} : vector<1024x16xbf16> to vector<64x16xbf16>
    %79 = vector.extract_strided_slice %35 {offsets = [144, 0], sizes = [16, 32], strides = [1, 1]} : vector<256x32xbf16> to vector<16x32xbf16>
    %cst_27 = arith.constant dense<0.000000e+00> : vector<64x32xf32>
    %80 = tpu.matmul %78, %79, %cst_27 {dimension_numbers = #tpu.dot_dimension_numbers<[1], [0], [0], [1], [0, 0, 1, 1], [], []>} : vector<64x16xbf16>, vector<16x32xbf16>, vector<64x32xf32> -> vector<64x32xf32>
    %81 = arith.addf %77, %80 : vector<64x32xf32>
    %82 = vector.extract_strided_slice %40 {offsets = [640, 0], sizes = [64, 16], strides = [1, 1]} : vector<1024x16xbf16> to vector<64x16xbf16>
    %83 = vector.extract_strided_slice %35 {offsets = [160, 0], sizes = [16, 32], strides = [1, 1]} : vector<256x32xbf16> to vector<16x32xbf16>
    %cst_28 = arith.constant dense<0.000000e+00> : vector<64x32xf32>
    %84 = tpu.matmul %82, %83, %cst_28 {dimension_numbers = #tpu.dot_dimension_numbers<[1], [0], [0], [1], [0, 0, 1, 1], [], []>} : vector<64x16xbf16>, vector<16x32xbf16>, vector<64x32xf32> -> vector<64x32xf32>
    %85 = arith.addf %81, %84 : vector<64x32xf32>
    %86 = vector.extract_strided_slice %40 {offsets = [704, 0], sizes = [64, 16], strides = [1, 1]} : vector<1024x16xbf16> to vector<64x16xbf16>
    %87 = vector.extract_strided_slice %35 {offsets = [176, 0], sizes = [16, 32], strides = [1, 1]} : vector<256x32xbf16> to vector<16x32xbf16>
    %cst_29 = arith.constant dense<0.000000e+00> : vector<64x32xf32>
    %88 = tpu.matmul %86, %87, %cst_29 {dimension_numbers = #tpu.dot_dimension_numbers<[1], [0], [0], [1], [0, 0, 1, 1], [], []>} : vector<64x16xbf16>, vector<16x32xbf16>, vector<64x32xf32> -> vector<64x32xf32>
    %89 = arith.addf %85, %88 : vector<64x32xf32>
    %90 = vector.extract_strided_slice %40 {offsets = [768, 0], sizes = [64, 16], strides = [1, 1]} : vector<1024x16xbf16> to vector<64x16xbf16>
    %91 = vector.extract_strided_slice %35 {offsets = [192, 0], sizes = [16, 32], strides = [1, 1]} : vector<256x32xbf16> to vector<16x32xbf16>
    %cst_30 = arith.constant dense<0.000000e+00> : vector<64x32xf32>
    %92 = tpu.matmul %90, %91, %cst_30 {dimension_numbers = #tpu.dot_dimension_numbers<[1], [0], [0], [1], [0, 0, 1, 1], [], []>} : vector<64x16xbf16>, vector<16x32xbf16>, vector<64x32xf32> -> vector<64x32xf32>
    %93 = arith.addf %89, %92 : vector<64x32xf32>
    %94 = vector.extract_strided_slice %40 {offsets = [832, 0], sizes = [64, 16], strides = [1, 1]} : vector<1024x16xbf16> to vector<64x16xbf16>
    %95 = vector.extract_strided_slice %35 {offsets = [208, 0], sizes = [16, 32], strides = [1, 1]} : vector<256x32xbf16> to vector<16x32xbf16>
    %cst_31 = arith.constant dense<0.000000e+00> : vector<64x32xf32>
    %96 = tpu.matmul %94, %95, %cst_31 {dimension_numbers = #tpu.dot_dimension_numbers<[1], [0], [0], [1], [0, 0, 1, 1], [], []>} : vector<64x16xbf16>, vector<16x32xbf16>, vector<64x32xf32> -> vector<64x32xf32>
    %97 = arith.addf %93, %96 : vector<64x32xf32>
    %98 = vector.extract_strided_slice %40 {offsets = [896, 0], sizes = [64, 16], strides = [1, 1]} : vector<1024x16xbf16> to vector<64x16xbf16>
    %99 = vector.extract_strided_slice %35 {offsets = [224, 0], sizes = [16, 32], strides = [1, 1]} : vector<256x32xbf16> to vector<16x32xbf16>
    %cst_32 = arith.constant dense<0.000000e+00> : vector<64x32xf32>
    %100 = tpu.matmul %98, %99, %cst_32 {dimension_numbers = #tpu.dot_dimension_numbers<[1], [0], [0], [1], [0, 0, 1, 1], [], []>} : vector<64x16xbf16>, vector<16x32xbf16>, vector<64x32xf32> -> vector<64x32xf32>
    %101 = arith.addf %97, %100 : vector<64x32xf32>
    %102 = vector.extract_strided_slice %40 {offsets = [960, 0], sizes = [64, 16], strides = [1, 1]} : vector<1024x16xbf16> to vector<64x16xbf16>
    %103 = vector.extract_strided_slice %35 {offsets = [240, 0], sizes = [16, 32], strides = [1, 1]} : vector<256x32xbf16> to vector<16x32xbf16>
    %cst_33 = arith.constant dense<0.000000e+00> : vector<64x32xf32>
    %104 = tpu.matmul %102, %103, %cst_33 {dimension_numbers = #tpu.dot_dimension_numbers<[1], [0], [0], [1], [0, 0, 1, 1], [], []>} : vector<64x16xbf16>, vector<16x32xbf16>, vector<64x32xf32> -> vector<64x32xf32>
    %105 = arith.addf %101, %104 : vector<64x32xf32>
    %cst_34 = arith.constant dense<0.000000e+00> : vector<32xf32>
    %106 = vector.multi_reduction <add>, %105, %cst_34 [0] : vector<64x32xf32> to vector<32xf32>
    %107 = vector.shape_cast %106 : vector<32xf32> to vector<1x32xf32>
    %cst_35 = arith.constant 1.562500e-02 : f32
    %108 = vector.broadcast %cst_35 : f32 to vector<1x32xf32>
    %109 = arith.mulf %107, %108 : vector<1x32xf32>
    %110 = vector.broadcast %109 : vector<1x32xf32> to vector<64x32xf32>
    %111 = arith.subf %105, %110 : vector<64x32xf32>
    %112 = arith.mulf %111, %111 : vector<64x32xf32>
    %cst_36 = arith.constant dense<0.000000e+00> : vector<32xf32>
    %113 = vector.multi_reduction <add>, %112, %cst_36 [0] : vector<64x32xf32> to vector<32xf32>
    %114 = vector.shape_cast %113 : vector<32xf32> to vector<1x32xf32>
    %cst_37 = arith.constant 1.562500e-02 : f32
    %115 = vector.broadcast %cst_37 : f32 to vector<1x32xf32>
    %116 = arith.mulf %114, %115 : vector<1x32xf32>
    %cst_38 = arith.constant 9.99999974E-6 : f32
    %117 = vector.broadcast %cst_38 : f32 to vector<1x32xf32>
    %118 = arith.addf %116, %117 : vector<1x32xf32>
    %119 = math.rsqrt %118 : vector<1x32xf32>
    %120 = vector.broadcast %119 : vector<1x32xf32> to vector<64x32xf32>
    %121 = arith.mulf %111, %120 : vector<64x32xf32>
    %122 = vector.broadcast %36 : vector<1x32xf32> to vector<64x32xf32>
    %123 = arith.mulf %121, %122 : vector<64x32xf32>
    %124 = vector.broadcast %37 : vector<1x32xf32> to vector<64x32xf32>
    %125 = arith.addf %123, %124 : vector<64x32xf32>
    %cst_39 = arith.constant 0.000000e+00 : f32
    %126 = vector.broadcast %cst_39 : f32 to vector<64x32xf32>
    %127 = arith.cmpf oge, %125, %126 : vector<64x32xf32>
    %128 = vector.broadcast %38 : vector<1x32xf32> to vector<64x32xf32>
    %129 = arith.mulf %128, %125 : vector<64x32xf32>
    %130 = arith.select %127, %125, %129 : vector<64x32xi1>, vector<64x32xf32>
    %131 = arith.truncf %130 : vector<64x32xf32> to vector<64x32xbf16>
    %c0_40 = arith.constant 0 : index
    %c0_41 = arith.constant 0 : index
    %132 = vector.load %arg5[%c0_40, %c0_41] : memref<256x64xbf16, #tpu.memory_space<vmem>>, vector<256x64xbf16>
    %c0_42 = arith.constant 0 : index
    %c0_43 = arith.constant 0 : index
    %133 = vector.load %arg6[%c0_42, %c0_43] : memref<512x64xbf16, #tpu.memory_space<vmem>>, vector<512x64xbf16>
    %134 = vector.extract_strided_slice %0 {offsets = [6, 0], sizes = [1, 64], strides = [1, 1]} : vector<16x128xf32> to vector<1x64xf32>
    %135 = vector.extract_strided_slice %0 {offsets = [7, 0], sizes = [1, 64], strides = [1, 1]} : vector<16x128xf32> to vector<1x64xf32>
    %136 = vector.extract_strided_slice %0 {offsets = [8, 0], sizes = [1, 64], strides = [1, 1]} : vector<16x128xf32> to vector<1x64xf32>
    %cst_44 = arith.constant dense<0.000000e+00> : vector<256x32xf32>
    %137 = tpu.matmul %132, %131, %cst_44 {dimension_numbers = #tpu.dot_dimension_numbers<[1], [0], [0], [1], [0, 0, 1, 1], [], []>} : vector<256x64xbf16>, vector<64x32xbf16>, vector<256x32xf32> -> vector<256x32xf32>
    %138 = arith.truncf %137 : vector<256x32xf32> to vector<256x32xbf16>
    %cst_45 = arith.constant 0.000000e+00 : f32
    %139 = vector.broadcast %cst_45 : f32 to vector<16x64xf32>
    %140 = vector.extract_strided_slice %138 {offsets = [0, 0], sizes = [16, 32], strides = [1, 1]} : vector<256x32xbf16> to vector<16x32xbf16>
    %141 = vector.extract_strided_slice %133 {offsets = [0, 0], sizes = [32, 64], strides = [1, 1]} : vector<512x64xbf16> to vector<32x64xbf16>
    %cst_46 = arith.constant dense<0.000000e+00> : vector<16x64xf32>
    %142 = tpu.matmul %140, %141, %cst_46 {dimension_numbers = #tpu.dot_dimension_numbers<[1], [0], [0], [1], [0, 0, 1, 1], [], []>} : vector<16x32xbf16>, vector<32x64xbf16>, vector<16x64xf32> -> vector<16x64xf32>
    %143 = arith.addf %139, %142 : vector<16x64xf32>
    %144 = vector.extract_strided_slice %138 {offsets = [16, 0], sizes = [16, 32], strides = [1, 1]} : vector<256x32xbf16> to vector<16x32xbf16>
    %145 = vector.extract_strided_slice %133 {offsets = [32, 0], sizes = [32, 64], strides = [1, 1]} : vector<512x64xbf16> to vector<32x64xbf16>
    %cst_47 = arith.constant dense<0.000000e+00> : vector<16x64xf32>
    %146 = tpu.matmul %144, %145, %cst_47 {dimension_numbers = #tpu.dot_dimension_numbers<[1], [0], [0], [1], [0, 0, 1, 1], [], []>} : vector<16x32xbf16>, vector<32x64xbf16>, vector<16x64xf32> -> vector<16x64xf32>
    %147 = arith.addf %143, %146 : vector<16x64xf32>
    %148 = vector.extract_strided_slice %138 {offsets = [32, 0], sizes = [16, 32], strides = [1, 1]} : vector<256x32xbf16> to vector<16x32xbf16>
    %149 = vector.extract_strided_slice %133 {offsets = [64, 0], sizes = [32, 64], strides = [1, 1]} : vector<512x64xbf16> to vector<32x64xbf16>
    %cst_48 = arith.constant dense<0.000000e+00> : vector<16x64xf32>
    %150 = tpu.matmul %148, %149, %cst_48 {dimension_numbers = #tpu.dot_dimension_numbers<[1], [0], [0], [1], [0, 0, 1, 1], [], []>} : vector<16x32xbf16>, vector<32x64xbf16>, vector<16x64xf32> -> vector<16x64xf32>
    %151 = arith.addf %147, %150 : vector<16x64xf32>
    %152 = vector.extract_strided_slice %138 {offsets = [48, 0], sizes = [16, 32], strides = [1, 1]} : vector<256x32xbf16> to vector<16x32xbf16>
    %153 = vector.extract_strided_slice %133 {offsets = [96, 0], sizes = [32, 64], strides = [1, 1]} : vector<512x64xbf16> to vector<32x64xbf16>
    %cst_49 = arith.constant dense<0.000000e+00> : vector<16x64xf32>
    %154 = tpu.matmul %152, %153, %cst_49 {dimension_numbers = #tpu.dot_dimension_numbers<[1], [0], [0], [1], [0, 0, 1, 1], [], []>} : vector<16x32xbf16>, vector<32x64xbf16>, vector<16x64xf32> -> vector<16x64xf32>
    %155 = arith.addf %151, %154 : vector<16x64xf32>
    %156 = vector.extract_strided_slice %138 {offsets = [64, 0], sizes = [16, 32], strides = [1, 1]} : vector<256x32xbf16> to vector<16x32xbf16>
    %157 = vector.extract_strided_slice %133 {offsets = [128, 0], sizes = [32, 64], strides = [1, 1]} : vector<512x64xbf16> to vector<32x64xbf16>
    %cst_50 = arith.constant dense<0.000000e+00> : vector<16x64xf32>
    %158 = tpu.matmul %156, %157, %cst_50 {dimension_numbers = #tpu.dot_dimension_numbers<[1], [0], [0], [1], [0, 0, 1, 1], [], []>} : vector<16x32xbf16>, vector<32x64xbf16>, vector<16x64xf32> -> vector<16x64xf32>
    %159 = arith.addf %155, %158 : vector<16x64xf32>
    %160 = vector.extract_strided_slice %138 {offsets = [80, 0], sizes = [16, 32], strides = [1, 1]} : vector<256x32xbf16> to vector<16x32xbf16>
    %161 = vector.extract_strided_slice %133 {offsets = [160, 0], sizes = [32, 64], strides = [1, 1]} : vector<512x64xbf16> to vector<32x64xbf16>
    %cst_51 = arith.constant dense<0.000000e+00> : vector<16x64xf32>
    %162 = tpu.matmul %160, %161, %cst_51 {dimension_numbers = #tpu.dot_dimension_numbers<[1], [0], [0], [1], [0, 0, 1, 1], [], []>} : vector<16x32xbf16>, vector<32x64xbf16>, vector<16x64xf32> -> vector<16x64xf32>
    %163 = arith.addf %159, %162 : vector<16x64xf32>
    %164 = vector.extract_strided_slice %138 {offsets = [96, 0], sizes = [16, 32], strides = [1, 1]} : vector<256x32xbf16> to vector<16x32xbf16>
    %165 = vector.extract_strided_slice %133 {offsets = [192, 0], sizes = [32, 64], strides = [1, 1]} : vector<512x64xbf16> to vector<32x64xbf16>
    %cst_52 = arith.constant dense<0.000000e+00> : vector<16x64xf32>
    %166 = tpu.matmul %164, %165, %cst_52 {dimension_numbers = #tpu.dot_dimension_numbers<[1], [0], [0], [1], [0, 0, 1, 1], [], []>} : vector<16x32xbf16>, vector<32x64xbf16>, vector<16x64xf32> -> vector<16x64xf32>
    %167 = arith.addf %163, %166 : vector<16x64xf32>
    %168 = vector.extract_strided_slice %138 {offsets = [112, 0], sizes = [16, 32], strides = [1, 1]} : vector<256x32xbf16> to vector<16x32xbf16>
    %169 = vector.extract_strided_slice %133 {offsets = [224, 0], sizes = [32, 64], strides = [1, 1]} : vector<512x64xbf16> to vector<32x64xbf16>
    %cst_53 = arith.constant dense<0.000000e+00> : vector<16x64xf32>
    %170 = tpu.matmul %168, %169, %cst_53 {dimension_numbers = #tpu.dot_dimension_numbers<[1], [0], [0], [1], [0, 0, 1, 1], [], []>} : vector<16x32xbf16>, vector<32x64xbf16>, vector<16x64xf32> -> vector<16x64xf32>
    %171 = arith.addf %167, %170 : vector<16x64xf32>
    %172 = vector.extract_strided_slice %138 {offsets = [128, 0], sizes = [16, 32], strides = [1, 1]} : vector<256x32xbf16> to vector<16x32xbf16>
    %173 = vector.extract_strided_slice %133 {offsets = [256, 0], sizes = [32, 64], strides = [1, 1]} : vector<512x64xbf16> to vector<32x64xbf16>
    %cst_54 = arith.constant dense<0.000000e+00> : vector<16x64xf32>
    %174 = tpu.matmul %172, %173, %cst_54 {dimension_numbers = #tpu.dot_dimension_numbers<[1], [0], [0], [1], [0, 0, 1, 1], [], []>} : vector<16x32xbf16>, vector<32x64xbf16>, vector<16x64xf32> -> vector<16x64xf32>
    %175 = arith.addf %171, %174 : vector<16x64xf32>
    %176 = vector.extract_strided_slice %138 {offsets = [144, 0], sizes = [16, 32], strides = [1, 1]} : vector<256x32xbf16> to vector<16x32xbf16>
    %177 = vector.extract_strided_slice %133 {offsets = [288, 0], sizes = [32, 64], strides = [1, 1]} : vector<512x64xbf16> to vector<32x64xbf16>
    %cst_55 = arith.constant dense<0.000000e+00> : vector<16x64xf32>
    %178 = tpu.matmul %176, %177, %cst_55 {dimension_numbers = #tpu.dot_dimension_numbers<[1], [0], [0], [1], [0, 0, 1, 1], [], []>} : vector<16x32xbf16>, vector<32x64xbf16>, vector<16x64xf32> -> vector<16x64xf32>
    %179 = arith.addf %175, %178 : vector<16x64xf32>
    %180 = vector.extract_strided_slice %138 {offsets = [160, 0], sizes = [16, 32], strides = [1, 1]} : vector<256x32xbf16> to vector<16x32xbf16>
    %181 = vector.extract_strided_slice %133 {offsets = [320, 0], sizes = [32, 64], strides = [1, 1]} : vector<512x64xbf16> to vector<32x64xbf16>
    %cst_56 = arith.constant dense<0.000000e+00> : vector<16x64xf32>
    %182 = tpu.matmul %180, %181, %cst_56 {dimension_numbers = #tpu.dot_dimension_numbers<[1], [0], [0], [1], [0, 0, 1, 1], [], []>} : vector<16x32xbf16>, vector<32x64xbf16>, vector<16x64xf32> -> vector<16x64xf32>
    %183 = arith.addf %179, %182 : vector<16x64xf32>
    %184 = vector.extract_strided_slice %138 {offsets = [176, 0], sizes = [16, 32], strides = [1, 1]} : vector<256x32xbf16> to vector<16x32xbf16>
    %185 = vector.extract_strided_slice %133 {offsets = [352, 0], sizes = [32, 64], strides = [1, 1]} : vector<512x64xbf16> to vector<32x64xbf16>
    %cst_57 = arith.constant dense<0.000000e+00> : vector<16x64xf32>
    %186 = tpu.matmul %184, %185, %cst_57 {dimension_numbers = #tpu.dot_dimension_numbers<[1], [0], [0], [1], [0, 0, 1, 1], [], []>} : vector<16x32xbf16>, vector<32x64xbf16>, vector<16x64xf32> -> vector<16x64xf32>
    %187 = arith.addf %183, %186 : vector<16x64xf32>
    %188 = vector.extract_strided_slice %138 {offsets = [192, 0], sizes = [16, 32], strides = [1, 1]} : vector<256x32xbf16> to vector<16x32xbf16>
    %189 = vector.extract_strided_slice %133 {offsets = [384, 0], sizes = [32, 64], strides = [1, 1]} : vector<512x64xbf16> to vector<32x64xbf16>
    %cst_58 = arith.constant dense<0.000000e+00> : vector<16x64xf32>
    %190 = tpu.matmul %188, %189, %cst_58 {dimension_numbers = #tpu.dot_dimension_numbers<[1], [0], [0], [1], [0, 0, 1, 1], [], []>} : vector<16x32xbf16>, vector<32x64xbf16>, vector<16x64xf32> -> vector<16x64xf32>
    %191 = arith.addf %187, %190 : vector<16x64xf32>
    %192 = vector.extract_strided_slice %138 {offsets = [208, 0], sizes = [16, 32], strides = [1, 1]} : vector<256x32xbf16> to vector<16x32xbf16>
    %193 = vector.extract_strided_slice %133 {offsets = [416, 0], sizes = [32, 64], strides = [1, 1]} : vector<512x64xbf16> to vector<32x64xbf16>
    %cst_59 = arith.constant dense<0.000000e+00> : vector<16x64xf32>
    %194 = tpu.matmul %192, %193, %cst_59 {dimension_numbers = #tpu.dot_dimension_numbers<[1], [0], [0], [1], [0, 0, 1, 1], [], []>} : vector<16x32xbf16>, vector<32x64xbf16>, vector<16x64xf32> -> vector<16x64xf32>
    %195 = arith.addf %191, %194 : vector<16x64xf32>
    %196 = vector.extract_strided_slice %138 {offsets = [224, 0], sizes = [16, 32], strides = [1, 1]} : vector<256x32xbf16> to vector<16x32xbf16>
    %197 = vector.extract_strided_slice %133 {offsets = [448, 0], sizes = [32, 64], strides = [1, 1]} : vector<512x64xbf16> to vector<32x64xbf16>
    %cst_60 = arith.constant dense<0.000000e+00> : vector<16x64xf32>
    %198 = tpu.matmul %196, %197, %cst_60 {dimension_numbers = #tpu.dot_dimension_numbers<[1], [0], [0], [1], [0, 0, 1, 1], [], []>} : vector<16x32xbf16>, vector<32x64xbf16>, vector<16x64xf32> -> vector<16x64xf32>
    %199 = arith.addf %195, %198 : vector<16x64xf32>
    %200 = vector.extract_strided_slice %138 {offsets = [240, 0], sizes = [16, 32], strides = [1, 1]} : vector<256x32xbf16> to vector<16x32xbf16>
    %201 = vector.extract_strided_slice %133 {offsets = [480, 0], sizes = [32, 64], strides = [1, 1]} : vector<512x64xbf16> to vector<32x64xbf16>
    %cst_61 = arith.constant dense<0.000000e+00> : vector<16x64xf32>
    %202 = tpu.matmul %200, %201, %cst_61 {dimension_numbers = #tpu.dot_dimension_numbers<[1], [0], [0], [1], [0, 0, 1, 1], [], []>} : vector<16x32xbf16>, vector<32x64xbf16>, vector<16x64xf32> -> vector<16x64xf32>
    %203 = arith.addf %199, %202 : vector<16x64xf32>
    %cst_62 = arith.constant dense<0.000000e+00> : vector<64xf32>
    %204 = vector.multi_reduction <add>, %203, %cst_62 [0] : vector<16x64xf32> to vector<64xf32>
    %205 = vector.shape_cast %204 : vector<64xf32> to vector<1x64xf32>
    %cst_63 = arith.constant 6.250000e-02 : f32
    %206 = vector.broadcast %cst_63 : f32 to vector<1x64xf32>
    %207 = arith.mulf %205, %206 : vector<1x64xf32>
    %208 = vector.broadcast %207 : vector<1x64xf32> to vector<16x64xf32>
    %209 = arith.subf %203, %208 : vector<16x64xf32>
    %210 = arith.mulf %209, %209 : vector<16x64xf32>
    %cst_64 = arith.constant dense<0.000000e+00> : vector<64xf32>
    %211 = vector.multi_reduction <add>, %210, %cst_64 [0] : vector<16x64xf32> to vector<64xf32>
    %212 = vector.shape_cast %211 : vector<64xf32> to vector<1x64xf32>
    %cst_65 = arith.constant 6.250000e-02 : f32
    %213 = vector.broadcast %cst_65 : f32 to vector<1x64xf32>
    %214 = arith.mulf %212, %213 : vector<1x64xf32>
    %cst_66 = arith.constant 9.99999974E-6 : f32
    %215 = vector.broadcast %cst_66 : f32 to vector<1x64xf32>
    %216 = arith.addf %214, %215 : vector<1x64xf32>
    %217 = math.rsqrt %216 : vector<1x64xf32>
    %218 = vector.broadcast %217 : vector<1x64xf32> to vector<16x64xf32>
    %219 = arith.mulf %209, %218 : vector<16x64xf32>
    %220 = vector.broadcast %134 : vector<1x64xf32> to vector<16x64xf32>
    %221 = arith.mulf %219, %220 : vector<16x64xf32>
    %222 = vector.broadcast %135 : vector<1x64xf32> to vector<16x64xf32>
    %223 = arith.addf %221, %222 : vector<16x64xf32>
    %cst_67 = arith.constant 0.000000e+00 : f32
    %224 = vector.broadcast %cst_67 : f32 to vector<16x64xf32>
    %225 = arith.cmpf oge, %223, %224 : vector<16x64xf32>
    %226 = vector.broadcast %136 : vector<1x64xf32> to vector<16x64xf32>
    %227 = arith.mulf %226, %223 : vector<16x64xf32>
    %228 = arith.select %225, %223, %227 : vector<16x64xi1>, vector<16x64xf32>
    %229 = arith.truncf %228 : vector<16x64xf32> to vector<16x64xbf16>
    %c0_68 = arith.constant 0 : index
    %c0_69 = arith.constant 0 : index
    %230 = vector.load %arg7[%c0_68, %c0_69] : memref<128x16xbf16, #tpu.memory_space<vmem>>, vector<128x16xbf16>
    %c0_70 = arith.constant 0 : index
    %c0_71 = arith.constant 0 : index
    %231 = vector.load %arg8[%c0_70, %c0_71] : memref<1024x128xbf16, #tpu.memory_space<vmem>>, vector<1024x128xbf16>
    %232 = vector.extract_strided_slice %0 {offsets = [9, 0], sizes = [1, 128], strides = [1, 1]} : vector<16x128xf32> to vector<1x128xf32>
    %233 = vector.extract_strided_slice %0 {offsets = [10, 0], sizes = [1, 128], strides = [1, 1]} : vector<16x128xf32> to vector<1x128xf32>
    %234 = vector.extract_strided_slice %0 {offsets = [11, 0], sizes = [1, 128], strides = [1, 1]} : vector<16x128xf32> to vector<1x128xf32>
    %cst_72 = arith.constant dense<0.000000e+00> : vector<128x64xf32>
    %235 = tpu.matmul %230, %229, %cst_72 {dimension_numbers = #tpu.dot_dimension_numbers<[1], [0], [0], [1], [0, 0, 1, 1], [], []>} : vector<128x16xbf16>, vector<16x64xbf16>, vector<128x64xf32> -> vector<128x64xf32>
    %236 = arith.truncf %235 : vector<128x64xf32> to vector<128x64xbf16>
    %cst_73 = arith.constant 0.000000e+00 : f32
    %237 = vector.broadcast %cst_73 : f32 to vector<8x128xf32>
    %238 = vector.extract_strided_slice %236 {offsets = [0, 0], sizes = [8, 64], strides = [1, 1]} : vector<128x64xbf16> to vector<8x64xbf16>
    %239 = vector.extract_strided_slice %231 {offsets = [0, 0], sizes = [64, 128], strides = [1, 1]} : vector<1024x128xbf16> to vector<64x128xbf16>
    %cst_74 = arith.constant dense<0.000000e+00> : vector<8x128xf32>
    %240 = tpu.matmul %238, %239, %cst_74 {dimension_numbers = #tpu.dot_dimension_numbers<[1], [0], [0], [1], [0, 0, 1, 1], [], []>} : vector<8x64xbf16>, vector<64x128xbf16>, vector<8x128xf32> -> vector<8x128xf32>
    %241 = arith.addf %237, %240 : vector<8x128xf32>
    %242 = vector.extract_strided_slice %236 {offsets = [8, 0], sizes = [8, 64], strides = [1, 1]} : vector<128x64xbf16> to vector<8x64xbf16>
    %243 = vector.extract_strided_slice %231 {offsets = [64, 0], sizes = [64, 128], strides = [1, 1]} : vector<1024x128xbf16> to vector<64x128xbf16>
    %cst_75 = arith.constant dense<0.000000e+00> : vector<8x128xf32>
    %244 = tpu.matmul %242, %243, %cst_75 {dimension_numbers = #tpu.dot_dimension_numbers<[1], [0], [0], [1], [0, 0, 1, 1], [], []>} : vector<8x64xbf16>, vector<64x128xbf16>, vector<8x128xf32> -> vector<8x128xf32>
    %245 = arith.addf %241, %244 : vector<8x128xf32>
    %246 = vector.extract_strided_slice %236 {offsets = [16, 0], sizes = [8, 64], strides = [1, 1]} : vector<128x64xbf16> to vector<8x64xbf16>
    %247 = vector.extract_strided_slice %231 {offsets = [128, 0], sizes = [64, 128], strides = [1, 1]} : vector<1024x128xbf16> to vector<64x128xbf16>
    %cst_76 = arith.constant dense<0.000000e+00> : vector<8x128xf32>
    %248 = tpu.matmul %246, %247, %cst_76 {dimension_numbers = #tpu.dot_dimension_numbers<[1], [0], [0], [1], [0, 0, 1, 1], [], []>} : vector<8x64xbf16>, vector<64x128xbf16>, vector<8x128xf32> -> vector<8x128xf32>
    %249 = arith.addf %245, %248 : vector<8x128xf32>
    %250 = vector.extract_strided_slice %236 {offsets = [24, 0], sizes = [8, 64], strides = [1, 1]} : vector<128x64xbf16> to vector<8x64xbf16>
    %251 = vector.extract_strided_slice %231 {offsets = [192, 0], sizes = [64, 128], strides = [1, 1]} : vector<1024x128xbf16> to vector<64x128xbf16>
    %cst_77 = arith.constant dense<0.000000e+00> : vector<8x128xf32>
    %252 = tpu.matmul %250, %251, %cst_77 {dimension_numbers = #tpu.dot_dimension_numbers<[1], [0], [0], [1], [0, 0, 1, 1], [], []>} : vector<8x64xbf16>, vector<64x128xbf16>, vector<8x128xf32> -> vector<8x128xf32>
    %253 = arith.addf %249, %252 : vector<8x128xf32>
    %254 = vector.extract_strided_slice %236 {offsets = [32, 0], sizes = [8, 64], strides = [1, 1]} : vector<128x64xbf16> to vector<8x64xbf16>
    %255 = vector.extract_strided_slice %231 {offsets = [256, 0], sizes = [64, 128], strides = [1, 1]} : vector<1024x128xbf16> to vector<64x128xbf16>
    %cst_78 = arith.constant dense<0.000000e+00> : vector<8x128xf32>
    %256 = tpu.matmul %254, %255, %cst_78 {dimension_numbers = #tpu.dot_dimension_numbers<[1], [0], [0], [1], [0, 0, 1, 1], [], []>} : vector<8x64xbf16>, vector<64x128xbf16>, vector<8x128xf32> -> vector<8x128xf32>
    %257 = arith.addf %253, %256 : vector<8x128xf32>
    %258 = vector.extract_strided_slice %236 {offsets = [40, 0], sizes = [8, 64], strides = [1, 1]} : vector<128x64xbf16> to vector<8x64xbf16>
    %259 = vector.extract_strided_slice %231 {offsets = [320, 0], sizes = [64, 128], strides = [1, 1]} : vector<1024x128xbf16> to vector<64x128xbf16>
    %cst_79 = arith.constant dense<0.000000e+00> : vector<8x128xf32>
    %260 = tpu.matmul %258, %259, %cst_79 {dimension_numbers = #tpu.dot_dimension_numbers<[1], [0], [0], [1], [0, 0, 1, 1], [], []>} : vector<8x64xbf16>, vector<64x128xbf16>, vector<8x128xf32> -> vector<8x128xf32>
    %261 = arith.addf %257, %260 : vector<8x128xf32>
    %262 = vector.extract_strided_slice %236 {offsets = [48, 0], sizes = [8, 64], strides = [1, 1]} : vector<128x64xbf16> to vector<8x64xbf16>
    %263 = vector.extract_strided_slice %231 {offsets = [384, 0], sizes = [64, 128], strides = [1, 1]} : vector<1024x128xbf16> to vector<64x128xbf16>
    %cst_80 = arith.constant dense<0.000000e+00> : vector<8x128xf32>
    %264 = tpu.matmul %262, %263, %cst_80 {dimension_numbers = #tpu.dot_dimension_numbers<[1], [0], [0], [1], [0, 0, 1, 1], [], []>} : vector<8x64xbf16>, vector<64x128xbf16>, vector<8x128xf32> -> vector<8x128xf32>
    %265 = arith.addf %261, %264 : vector<8x128xf32>
    %266 = vector.extract_strided_slice %236 {offsets = [56, 0], sizes = [8, 64], strides = [1, 1]} : vector<128x64xbf16> to vector<8x64xbf16>
    %267 = vector.extract_strided_slice %231 {offsets = [448, 0], sizes = [64, 128], strides = [1, 1]} : vector<1024x128xbf16> to vector<64x128xbf16>
    %cst_81 = arith.constant dense<0.000000e+00> : vector<8x128xf32>
    %268 = tpu.matmul %266, %267, %cst_81 {dimension_numbers = #tpu.dot_dimension_numbers<[1], [0], [0], [1], [0, 0, 1, 1], [], []>} : vector<8x64xbf16>, vector<64x128xbf16>, vector<8x128xf32> -> vector<8x128xf32>
    %269 = arith.addf %265, %268 : vector<8x128xf32>
    %270 = vector.extract_strided_slice %236 {offsets = [64, 0], sizes = [8, 64], strides = [1, 1]} : vector<128x64xbf16> to vector<8x64xbf16>
    %271 = vector.extract_strided_slice %231 {offsets = [512, 0], sizes = [64, 128], strides = [1, 1]} : vector<1024x128xbf16> to vector<64x128xbf16>
    %cst_82 = arith.constant dense<0.000000e+00> : vector<8x128xf32>
    %272 = tpu.matmul %270, %271, %cst_82 {dimension_numbers = #tpu.dot_dimension_numbers<[1], [0], [0], [1], [0, 0, 1, 1], [], []>} : vector<8x64xbf16>, vector<64x128xbf16>, vector<8x128xf32> -> vector<8x128xf32>
    %273 = arith.addf %269, %272 : vector<8x128xf32>
    %274 = vector.extract_strided_slice %236 {offsets = [72, 0], sizes = [8, 64], strides = [1, 1]} : vector<128x64xbf16> to vector<8x64xbf16>
    %275 = vector.extract_strided_slice %231 {offsets = [576, 0], sizes = [64, 128], strides = [1, 1]} : vector<1024x128xbf16> to vector<64x128xbf16>
    %cst_83 = arith.constant dense<0.000000e+00> : vector<8x128xf32>
    %276 = tpu.matmul %274, %275, %cst_83 {dimension_numbers = #tpu.dot_dimension_numbers<[1], [0], [0], [1], [0, 0, 1, 1], [], []>} : vector<8x64xbf16>, vector<64x128xbf16>, vector<8x128xf32> -> vector<8x128xf32>
    %277 = arith.addf %273, %276 : vector<8x128xf32>
    %278 = vector.extract_strided_slice %236 {offsets = [80, 0], sizes = [8, 64], strides = [1, 1]} : vector<128x64xbf16> to vector<8x64xbf16>
    %279 = vector.extract_strided_slice %231 {offsets = [640, 0], sizes = [64, 128], strides = [1, 1]} : vector<1024x128xbf16> to vector<64x128xbf16>
    %cst_84 = arith.constant dense<0.000000e+00> : vector<8x128xf32>
    %280 = tpu.matmul %278, %279, %cst_84 {dimension_numbers = #tpu.dot_dimension_numbers<[1], [0], [0], [1], [0, 0, 1, 1], [], []>} : vector<8x64xbf16>, vector<64x128xbf16>, vector<8x128xf32> -> vector<8x128xf32>
    %281 = arith.addf %277, %280 : vector<8x128xf32>
    %282 = vector.extract_strided_slice %236 {offsets = [88, 0], sizes = [8, 64], strides = [1, 1]} : vector<128x64xbf16> to vector<8x64xbf16>
    %283 = vector.extract_strided_slice %231 {offsets = [704, 0], sizes = [64, 128], strides = [1, 1]} : vector<1024x128xbf16> to vector<64x128xbf16>
    %cst_85 = arith.constant dense<0.000000e+00> : vector<8x128xf32>
    %284 = tpu.matmul %282, %283, %cst_85 {dimension_numbers = #tpu.dot_dimension_numbers<[1], [0], [0], [1], [0, 0, 1, 1], [], []>} : vector<8x64xbf16>, vector<64x128xbf16>, vector<8x128xf32> -> vector<8x128xf32>
    %285 = arith.addf %281, %284 : vector<8x128xf32>
    %286 = vector.extract_strided_slice %236 {offsets = [96, 0], sizes = [8, 64], strides = [1, 1]} : vector<128x64xbf16> to vector<8x64xbf16>
    %287 = vector.extract_strided_slice %231 {offsets = [768, 0], sizes = [64, 128], strides = [1, 1]} : vector<1024x128xbf16> to vector<64x128xbf16>
    %cst_86 = arith.constant dense<0.000000e+00> : vector<8x128xf32>
    %288 = tpu.matmul %286, %287, %cst_86 {dimension_numbers = #tpu.dot_dimension_numbers<[1], [0], [0], [1], [0, 0, 1, 1], [], []>} : vector<8x64xbf16>, vector<64x128xbf16>, vector<8x128xf32> -> vector<8x128xf32>
    %289 = arith.addf %285, %288 : vector<8x128xf32>
    %290 = vector.extract_strided_slice %236 {offsets = [104, 0], sizes = [8, 64], strides = [1, 1]} : vector<128x64xbf16> to vector<8x64xbf16>
    %291 = vector.extract_strided_slice %231 {offsets = [832, 0], sizes = [64, 128], strides = [1, 1]} : vector<1024x128xbf16> to vector<64x128xbf16>
    %cst_87 = arith.constant dense<0.000000e+00> : vector<8x128xf32>
    %292 = tpu.matmul %290, %291, %cst_87 {dimension_numbers = #tpu.dot_dimension_numbers<[1], [0], [0], [1], [0, 0, 1, 1], [], []>} : vector<8x64xbf16>, vector<64x128xbf16>, vector<8x128xf32> -> vector<8x128xf32>
    %293 = arith.addf %289, %292 : vector<8x128xf32>
    %294 = vector.extract_strided_slice %236 {offsets = [112, 0], sizes = [8, 64], strides = [1, 1]} : vector<128x64xbf16> to vector<8x64xbf16>
    %295 = vector.extract_strided_slice %231 {offsets = [896, 0], sizes = [64, 128], strides = [1, 1]} : vector<1024x128xbf16> to vector<64x128xbf16>
    %cst_88 = arith.constant dense<0.000000e+00> : vector<8x128xf32>
    %296 = tpu.matmul %294, %295, %cst_88 {dimension_numbers = #tpu.dot_dimension_numbers<[1], [0], [0], [1], [0, 0, 1, 1], [], []>} : vector<8x64xbf16>, vector<64x128xbf16>, vector<8x128xf32> -> vector<8x128xf32>
    %297 = arith.addf %293, %296 : vector<8x128xf32>
    %298 = vector.extract_strided_slice %236 {offsets = [120, 0], sizes = [8, 64], strides = [1, 1]} : vector<128x64xbf16> to vector<8x64xbf16>
    %299 = vector.extract_strided_slice %231 {offsets = [960, 0], sizes = [64, 128], strides = [1, 1]} : vector<1024x128xbf16> to vector<64x128xbf16>
    %cst_89 = arith.constant dense<0.000000e+00> : vector<8x128xf32>
    %300 = tpu.matmul %298, %299, %cst_89 {dimension_numbers = #tpu.dot_dimension_numbers<[1], [0], [0], [1], [0, 0, 1, 1], [], []>} : vector<8x64xbf16>, vector<64x128xbf16>, vector<8x128xf32> -> vector<8x128xf32>
    %301 = arith.addf %297, %300 : vector<8x128xf32>
    %302 = vector.extract_strided_slice %301 {offsets = [0, 0], sizes = [4, 128], strides = [1, 1]} : vector<8x128xf32> to vector<4x128xf32>
    %cst_90 = arith.constant dense<0.000000e+00> : vector<128xf32>
    %303 = vector.multi_reduction <add>, %302, %cst_90 [0] : vector<4x128xf32> to vector<128xf32>
    %304 = vector.shape_cast %303 : vector<128xf32> to vector<1x128xf32>
    %cst_91 = arith.constant 2.500000e-01 : f32
    %305 = vector.broadcast %cst_91 : f32 to vector<1x128xf32>
    %306 = arith.mulf %304, %305 : vector<1x128xf32>
    %307 = vector.broadcast %306 : vector<1x128xf32> to vector<4x128xf32>
    %308 = arith.subf %302, %307 : vector<4x128xf32>
    %309 = arith.mulf %308, %308 : vector<4x128xf32>
    %cst_92 = arith.constant dense<0.000000e+00> : vector<128xf32>
    %310 = vector.multi_reduction <add>, %309, %cst_92 [0] : vector<4x128xf32> to vector<128xf32>
    %311 = vector.shape_cast %310 : vector<128xf32> to vector<1x128xf32>
    %cst_93 = arith.constant 2.500000e-01 : f32
    %312 = vector.broadcast %cst_93 : f32 to vector<1x128xf32>
    %313 = arith.mulf %311, %312 : vector<1x128xf32>
    %cst_94 = arith.constant 9.99999974E-6 : f32
    %314 = vector.broadcast %cst_94 : f32 to vector<1x128xf32>
    %315 = arith.addf %313, %314 : vector<1x128xf32>
    %316 = math.rsqrt %315 : vector<1x128xf32>
    %317 = vector.broadcast %316 : vector<1x128xf32> to vector<4x128xf32>
    %318 = arith.mulf %308, %317 : vector<4x128xf32>
    %319 = vector.broadcast %232 : vector<1x128xf32> to vector<4x128xf32>
    %320 = arith.mulf %318, %319 : vector<4x128xf32>
    %321 = vector.broadcast %233 : vector<1x128xf32> to vector<4x128xf32>
    %322 = arith.addf %320, %321 : vector<4x128xf32>
    %cst_95 = arith.constant 0.000000e+00 : f32
    %323 = vector.broadcast %cst_95 : f32 to vector<4x128xf32>
    %324 = arith.cmpf oge, %322, %323 : vector<4x128xf32>
    %325 = vector.broadcast %234 : vector<1x128xf32> to vector<4x128xf32>
    %326 = arith.mulf %325, %322 : vector<4x128xf32>
    %327 = arith.select %324, %322, %326 : vector<4x128xi1>, vector<4x128xf32>
    %cst_96 = arith.constant dense<0xFF800000> : vector<128xf32>
    %328 = vector.multi_reduction <maximumf>, %327, %cst_96 [0] : vector<4x128xf32> to vector<128xf32>
    %329 = vector.shape_cast %328 : vector<128xf32> to vector<1x128xf32>
    %330 = arith.truncf %329 : vector<1x128xf32> to vector<1x128xbf16>
    %c0_97 = arith.constant 0 : index
    %c0_98 = arith.constant 0 : index
    %331 = vector.load %arg9[%c0_97, %c0_98] : memref<128x64xbf16, #tpu.memory_space<vmem>>, vector<128x64xbf16>
    %cst_99 = arith.constant dense<0.000000e+00> : vector<1x64xf32>
    %332 = tpu.matmul %330, %331, %cst_99 {dimension_numbers = #tpu.dot_dimension_numbers<[1], [0], [0], [1], [0, 0, 1, 1], [], []>} : vector<1x128xbf16>, vector<128x64xbf16>, vector<1x64xf32> -> vector<1x64xf32>
    %333 = vector.extract_strided_slice %0 {offsets = [12, 0], sizes = [1, 64], strides = [1, 1]} : vector<16x128xf32> to vector<1x64xf32>
    %334 = arith.addf %332, %333 : vector<1x64xf32>
    %cst_100 = arith.constant 0.000000e+00 : f32
    %335 = vector.broadcast %cst_100 : f32 to vector<1x64xf32>
    %336 = arith.cmpf oge, %334, %335 : vector<1x64xf32>
    %337 = vector.extract_strided_slice %0 {offsets = [13, 0], sizes = [1, 64], strides = [1, 1]} : vector<16x128xf32> to vector<1x64xf32>
    %338 = arith.mulf %337, %334 : vector<1x64xf32>
    %339 = arith.select %336, %334, %338 : vector<1x64xi1>, vector<1x64xf32>
    %340 = vector.extract_strided_slice %0 {offsets = [14, 0], sizes = [1, 64], strides = [1, 1]} : vector<16x128xf32> to vector<1x64xf32>
    %341 = arith.mulf %339, %340 : vector<1x64xf32>
    %cst_101 = arith.constant dense<0.000000e+00> : vector<1xf32>
    %342 = vector.multi_reduction <add>, %341, %cst_101 [1] : vector<1x64xf32> to vector<1xf32>
    %343 = vector.shape_cast %342 : vector<1xf32> to vector<1x1xf32>
    %344 = vector.extract_strided_slice %0 {offsets = [15, 0], sizes = [1, 1], strides = [1, 1]} : vector<16x128xf32> to vector<1x1xf32>
    %345 = arith.addf %343, %344 : vector<1x1xf32>
    %346 = vector.extract_strided_slice %0 {offsets = [15, 2], sizes = [1, 1], strides = [1, 1]} : vector<16x128xf32> to vector<1x1xf32>
    %347 = vector.extract_strided_slice %0 {offsets = [15, 1], sizes = [1, 1], strides = [1, 1]} : vector<16x128xf32> to vector<1x1xf32>
    %348 = arith.mulf %347, %345 : vector<1x1xf32>
    %349 = arith.negf %348 : vector<1x1xf32>
    %350 = math.exp %349 : vector<1x1xf32>
    %cst_102 = arith.constant 1.000000e+00 : f32
    %351 = vector.broadcast %cst_102 : f32 to vector<1x1xf32>
    %352 = arith.addf %351, %350 : vector<1x1xf32>
    %353 = arith.divf %351, %352 : vector<1x1xf32>
    %354 = arith.mulf %346, %353 : vector<1x1xf32>
    %c0_103 = arith.constant 0 : index
    %c0_104 = arith.constant 0 : index
    %c0_105 = arith.constant 0 : index
    %355 = vector.load %arg11[%c0_103, %c0_104, %c0_105] : memref<1x1x1xf32, #tpu.memory_space<vmem>>, vector<1x1x1xf32>
    %356 = vector.shape_cast %355 : vector<1x1x1xf32> to vector<1x1xf32>
    %357 = vector.shape_cast %354 : vector<1x1xf32> to vector<1x1x1xf32>
    tpu.vector_store %arg11[%c0_103, %c0_104, %c0_105], %357 {strides = array<i32>} : memref<1x1x1xf32, #tpu.memory_space<vmem>>, vector<1x1x1xf32>,
    return
  }
  func.func @transform_0(%arg0: i32) -> (i32, i32, i32) {
    %c0_i32 = arith.constant 0 : i32
    %c0_i32_0 = arith.constant 0 : i32
    %c0_i32_1 = arith.constant 0 : i32
    return %arg0, %c0_i32, %c0_i32_0 : i32, i32, i32
  }
  func.func @transform_1(%arg0: i32) -> (i32, i32) {
    %c0_i32 = arith.constant 0 : i32
    %c0_i32_0 = arith.constant 0 : i32
    %c0_i32_1 = arith.constant 0 : i32
    return %c0_i32, %c0_i32_0 : i32, i32
  }
  func.func @transform_2(%arg0: i32) -> (i32, i32) {
    %c0_i32 = arith.constant 0 : i32
    %c0_i32_0 = arith.constant 0 : i32
    %c0_i32_1 = arith.constant 0 : i32
    return %c0_i32, %c0_i32_0 : i32, i32
  }
  func.func @transform_3(%arg0: i32) -> (i32, i32) {
    %c0_i32 = arith.constant 0 : i32
    %c0_i32_0 = arith.constant 0 : i32
    %c0_i32_1 = arith.constant 0 : i32
    return %c0_i32, %c0_i32_0 : i32, i32
  }
  func.func @transform_4(%arg0: i32) -> (i32, i32) {
    %c0_i32 = arith.constant 0 : i32
    %c0_i32_0 = arith.constant 0 : i32
    %c0_i32_1 = arith.constant 0 : i32
    return %c0_i32, %c0_i32_0 : i32, i32
  }
  func.func @transform_5(%arg0: i32) -> (i32, i32) {
    %c0_i32 = arith.constant 0 : i32
    %c0_i32_0 = arith.constant 0 : i32
    %c0_i32_1 = arith.constant 0 : i32
    return %c0_i32, %c0_i32_0 : i32, i32
  }
  func.func @transform_6(%arg0: i32) -> (i32, i32) {
    %c0_i32 = arith.constant 0 : i32
    %c0_i32_0 = arith.constant 0 : i32
    %c0_i32_1 = arith.constant 0 : i32
    return %c0_i32, %c0_i32_0 : i32, i32
  }
  func.func @transform_7(%arg0: i32) -> (i32, i32) {
    %c0_i32 = arith.constant 0 : i32
    %c0_i32_0 = arith.constant 0 : i32
    %c0_i32_1 = arith.constant 0 : i32
    return %c0_i32, %c0_i32_0 : i32, i32
  }
  func.func @transform_8(%arg0: i32) -> (i32, i32) {
    %c0_i32 = arith.constant 0 : i32
    %c0_i32_0 = arith.constant 0 : i32
    %c0_i32_1 = arith.constant 0 : i32
    return %c0_i32, %c0_i32_0 : i32, i32
  }
  func.func @transform_9(%arg0: i32) -> (i32, i32) {
    %c0_i32 = arith.constant 0 : i32
    %c0_i32_0 = arith.constant 0 : i32
    %c0_i32_1 = arith.constant 0 : i32
    return %c0_i32, %c0_i32_0 : i32, i32
  }
  func.func @transform_10(%arg0: i32) -> (i32, i32, i32) {
    %c0_i32 = arith.constant 0 : i32
    %c0_i32_0 = arith.constant 0 : i32
    %c0_i32_1 = arith.constant 0 : i32
    return %arg0, %c0_i32, %c0_i32_0 : i32, i32, i32
  }
}

</mosaic_0001>

<bundles_post_ra>
// kernel: metric_discriminator.1
= control target key start
LH: loop header
LB: loop body
LE: loop exit
PB: predicated region body
PF: predicated region fallthrough
CT: control target
= control target key end

     0   :  { %s9117_s13 = smov 0   ;;  %s10977_s0 = inlined_call_operand.vmem [shape: bf16[2,256,32], index: 0, kind: input, shape index: {}]   ;;  %s10978_s1 = inlined_call_operand.vmem [shape: bf16[32,16], index: 1, kind: input, shape index: {}]   ;;  %s10979_s2 = inlined_call_operand.vmem [shape: bf16[1024,256], index: 2, kind: input, shape index: {}]   ;;  %s10980_s3 = inlined_call_operand.vmem [shape: bf16[256,32], index: 3, kind: input, shape index: {}]   ;;  %s10981_s4 = inlined_call_operand.vmem [shape: bf16[256,64], index: 4, kind: input, shape index: {}]   ;;  %s10982_s5 = inlined_call_operand.vmem [shape: bf16[512,64], index: 5, kind: input, shape index: {}]   ;;  %s10983_s6 = inlined_call_operand.vmem [shape: bf16[128,16], index: 6, kind: input, shape index: {}]   ;;  %s10984_s7 = inlined_call_operand.vmem [shape: bf16[1024,128], index: 7, kind: input, shape index: {}]   ;;  %s10985_s8 = inlined_call_operand.vmem [shape: bf16[128,64], index: 8, kind: input, shape index: {}]   ;;  %s10986_s9 = inlined_call_operand.vmem [shape: f32[16,128], index: 9, kind: input, shape index: {}]   ;;  %s10987_s10 = inlined_call_operand.vmem [shape: f32[2,1,1], index: 10, kind: output, shape index: {}]  }
   0x1 LB: > { %s7134_s14 = sadd.s32 4294967295, %s9055_s13   ;;  %p7138_p0 = scmp.ge.s32.totalorder %s9055_s13, 1  ;;  %s9055_s13 = sphi %s9117_s13, %s20_s13  }
   0x2   : > { %p312_p1 = scmp.lt.s32.totalorder %s9055_s13, 3 }
   0x4   : > { %p313_p2 = pnand %p7138_p0, %p312_p1 }
   0x5   : > { %v8682_v0 = vld [vmem:[%s10978_s1] sm:$0xff] (!%p313_p2)   ;;  %p348_p3 = scmp.lt.s32.totalorder (!%p313_p2), %s7134_s14, 1  ;;  %v8683_v1 = vld [vmem:[%s10978_s1 + $0x8] sm:$0xff] (!%p313_p2)   ;;  %vm487_vm0 = vcmask (!%p313_p2), 261120   ;;  %vm697_vm1 = vcmask (!%p313_p2), 130048   ;;  %s9060_s15 = smov (!%p313_p2), 1  }
   0x6   : > { %316 = sbr.rel (%p313_p2) target bundleno = 3678 (0xe5e), region = 60  ;;  %7835 = vmatprep.subr.bf16.mxu1 (!%p313_p2), %v8682_v0  ;;  %s9061_s16 = smov (!%p313_p2), 126  }
   0x7   : > { %7836 = vmatpush3.bf16.msra.mxu1 (!%p313_p2), %v8682_v0 }
   0x8   : > { %7837 = vmatprep.subr.bf16.mxu1 (!%p313_p2), %v8683_v1 }
   0xb   : > { %7838 = vmatpush3.bf16.msra.mxu1 (!%p313_p2), %v8683_v1 }
   0xd   : > { %s10989_s14 = smov (!%p348_p3, %s7134_s14), 1 }
   0xe   : > { %s7570_s19 = sshll.u32 %s10989_s14, 7 }
   0xf   : > { %s9137_s22 = scalar_lea.vmem %s10977_s0, %s7570_s19  ;;  %s355_s19 = scalar_lea.vmem %s10987_s10, %s10989_s14 }
  0x10   : > { %v8684_v2 = vld [vmem:[%s9137_s22] sm:$0xff]   ;;  %v8685_v3 = vld [vmem:[%s9137_s22 + $0x8] sm:$0xff]   ;;  %v8686_v4 = vld [vmem:[%s9137_s22 + $0x10] sm:$0xff]  }
  0x11   : > { %7839 = vmatprep.mubr.msk.bf16.mxu1 %vm487_vm0, %v8684_v2  ;;  %v8687_v5 = vld [vmem:[%s9137_s22 + $0x18] sm:$0xff]   ;;  %v8688_v6 = vld [vmem:[%s9137_s22 + $0x20] sm:$0xff]   ;;  %v8689_v7 = vld [vmem:[%s9137_s22 + $0x28] sm:$0xff]  }
  0x12   : > { %7840 = vmatmul.mubr.msk.bf16.vlgmr.msra.gmra.mrb[0].mxu1 %vm487_vm0, %v8685_v3  ;;  %v8690_v8 = vld [vmem:[%s9137_s22 + $0x30] sm:$0xff]   ;;  %v8691_v9 = vld [vmem:[%s9137_s22 + $0x38] sm:$0xff]   ;;  %v8692_v10 = vld [vmem:[%s9137_s22 + $0x40] sm:$0xff]  }
  0x13   : > { %7843 = vmatprep.mubr.msk.bf16.mxu1 %vm487_vm0, %v8686_v4  ;;  %v8693_v11 = vld [vmem:[%s9137_s22 + $0x48] sm:$0xff]   ;;  %v8694_v12 = vld [vmem:[%s9137_s22 + $0x50] sm:$0xff]   ;;  %v8695_v13 = vld [vmem:[%s9137_s22 + $0x58] sm:$0xff]  }
  0x14   : > { %v8696_v14 = vld [vmem:[%s9137_s22 + $0x60] sm:$0xff]   ;;  %v8697_v15 = vld [vmem:[%s9137_s22 + $0x68] sm:$0xff]   ;;  %v8698_v16 = vld [vmem:[%s9137_s22 + $0x70] sm:$0xff]  }
  0x15   : > { %v8699_v17 = vld [vmem:[%s9137_s22 + $0x78] sm:$0xff]  }
  0x1a   : > { %7844 = vmatmul.mubr.msk.bf16.gmra.mrb[4].mxu1 %vm487_vm0, %v8687_v5 }
  0x1b   : > { %7847 = vmatprep.mubr.msk.bf16.mxu1 %vm487_vm0, %v8688_v6 }
  0x22   : > { %7848 = vmatmul.mubr.msk.bf16.gmra.mrb[8].mxu1 %vm487_vm0, %v8689_v7 }
  0x23   : > { %7851 = vmatprep.mubr.msk.bf16.mxu1 %vm487_vm0, %v8690_v8 }
  0x2a   : > { %7852 = vmatmul.mubr.msk.bf16.gmra.mrb[12].mxu1 %vm487_vm0, %v8691_v9 }
  0x2b   : > { %7855 = vmatprep.mubr.msk.bf16.mxu1 %vm487_vm0, %v8692_v10 }
  0x32   : > { %7856 = vmatmul.mubr.msk.bf16.gmra.mrb[16].mxu1 %vm487_vm0, %v8693_v11 }
  0x33   : > { %7859 = vmatprep.mubr.msk.bf16.mxu1 %vm487_vm0, %v8694_v12 }
  0x3a   : > { %7860 = vmatmul.mubr.msk.bf16.gmra.mrb[20].mxu1 %vm487_vm0, %v8695_v13 }
  0x3b   : > { %7863 = vmatprep.mubr.msk.bf16.mxu1 %vm487_vm0, %v8696_v14 }
  0x42   : > { %7864 = vmatmul.mubr.msk.bf16.gmra.mrb[24].mxu1 %vm487_vm0, %v8697_v15 }
  0x43   : > { %7867 = vmatprep.mubr.msk.bf16.mxu1 %vm487_vm0, %v8698_v16 }
  0x4a   : > { %7868 = vmatmul.mubr.msk.bf16.gmra.mrb[28].mxu1 %vm487_vm0, %v8699_v17 }
  0xe5   : > { %v9171_v18 = vpop.f32.mrb[0].mxu1 }
  0xe6   : > { %v9173_v19 = vpop.f32.mrb[1].mxu1  ;;  %v701_v25 = vsel %vm697_vm1, %v9171_v18, 0.0 }
  0xe7   : > { %v9175_v20 = vpop.f32.mrb[2].mxu1  ;;  %v698_v22 = vsel %vm697_vm1, %v9173_v19, 0.0 }
  0xe8   : > { %v9177_v21 = vpop.f32.mrb[3].mxu1  ;;  %v703_v27 = vsel %vm697_vm1, %v9175_v20, 0.0 }
  0xe9   : > { %v699_v23 = vsel %vm697_vm1, %v9177_v21, 0.0 }
  0xea   : > { %v700_v24 = vadd.f32 %v699_v23, %v698_v22 }
  0xec   : > { %v702_v26 = vadd.f32 %v701_v25, %v700_v24 }
  0xed   : > { %v9187_v28 = vpop.f32.mrb[4].mxu1 }
  0xee   : > { %v9189_v29 = vpop.f32.mrb[5].mxu1  ;;  %v704_v30 = vadd.f32 %v703_v27, %v702_v26  ;;  %v709_v37 = vsel %vm697_vm1, %v9187_v28, 0.0 }
  0xef   : > { %v705_v31 = vsel %vm697_vm1, %v9189_v29, 0.0  ;;  %v9193_v32 = vpop.f32.mrb[6].mxu1 }
  0xf0   : > { %v706_v33 = vadd.f32 %v705_v31, %v704_v30  ;;  %v9195_v34 = vpop.f32.mrb[7].mxu1  ;;  %v711_v39 = vsel %vm697_vm1, %v9193_v32, 0.0 }
  0xf1   : > { %v707_v35 = vsel %vm697_vm1, %v9195_v34, 0.0 }
  0xf2   : > { %v708_v36 = vadd.f32 %v707_v35, %v706_v33 }
  0xf4   : > { %v710_v38 = vadd.f32 %v709_v37, %v708_v36 }
  0xf5   : > { %v9203_v40 = vpop.f32.mrb[8].mxu1 }
  0xf6   : > { %v9205_v41 = vpop.f32.mrb[9].mxu1  ;;  %v712_v42 = vadd.f32 %v711_v39, %v710_v38  ;;  %v717_v49 = vsel %vm697_vm1, %v9203_v40, 0.0 }
  0xf7   : > { %v713_v43 = vsel %vm697_vm1, %v9205_v41, 0.0  ;;  %v9209_v44 = vpop.f32.mrb[10].mxu1 }
  0xf8   : > { %v714_v45 = vadd.f32 %v713_v43, %v712_v42  ;;  %v9211_v46 = vpop.f32.mrb[11].mxu1  ;;  %v719_v51 = vsel %vm697_vm1, %v9209_v44, 0.0 }
  0xf9   : > { %v715_v47 = vsel %vm697_vm1, %v9211_v46, 0.0 }
  0xfa   : > { %v716_v48 = vadd.f32 %v715_v47, %v714_v45 }
  0xfc   : > { %v718_v50 = vadd.f32 %v717_v49, %v716_v48 }
  0xfd   : > { %v9219_v52 = vpop.f32.mrb[12].mxu1 }
  0xfe   : > { %v9221_v53 = vpop.f32.mrb[13].mxu1  ;;  %v720_v54 = vadd.f32 %v719_v51, %v718_v50  ;;  %v725_v61 = vsel %vm697_vm1, %v9219_v52, 0.0 }
  0xff   : > { %v721_v55 = vsel %vm697_vm1, %v9221_v53, 0.0  ;;  %v9225_v56 = vpop.f32.mrb[14].mxu1 }
 0x100   : > { %v722_v57 = vadd.f32 %v721_v55, %v720_v54  ;;  %v9227_v58 = vpop.f32.mrb[15].mxu1  ;;  %v727_v63 = vsel %vm697_vm1, %v9225_v56, 0.0 }
 0x101   : > { %v723_v59 = vsel %vm697_vm1, %v9227_v58, 0.0 }
 0x102   : > { %v724_v60 = vadd.f32 %v723_v59, %v722_v57 }
 0x104   : > { %v726_v62 = vadd.f32 %v725_v61, %v724_v60 }
 0x105   : > { %v9235_v0 = vpop.f32.mrb[16].mxu1 }
 0x106   : > { %v9237_v1 = vpop.f32.mrb[17].mxu1  ;;  %v728_v2 = vadd.f32 %v727_v63, %v726_v62  ;;  %v733_v9 = vsel %vm697_vm1, %v9235_v0, 0.0 }
 0x107   : > { %v729_v3 = vsel %vm697_vm1, %v9237_v1, 0.0  ;;  %v9241_v4 = vpop.f32.mrb[18].mxu1 }
 0x108   : > { %v730_v5 = vadd.f32 %v729_v3, %v728_v2  ;;  %v9243_v6 = vpop.f32.mrb[19].mxu1  ;;  %v735_v11 = vsel %vm697_vm1, %v9241_v4, 0.0 }
 0x109   : > { %v731_v7 = vsel %vm697_vm1, %v9243_v6, 0.0 }
 0x10a   : > { %v732_v8 = vadd.f32 %v731_v7, %v730_v5 }
 0x10c   : > { %v734_v10 = vadd.f32 %v733_v9, %v732_v8 }
 0x10d   : > { %v9251_v12 = vpop.f32.mrb[20].mxu1 }
 0x10e   : > { %v9253_v13 = vpop.f32.mrb[21].mxu1  ;;  %v736_v14 = vadd.f32 %v735_v11, %v734_v10  ;;  %v741_v25 = vsel %vm697_vm1, %v9251_v12, 0.0 }
 0x10f   : > { %v737_v15 = vsel %vm697_vm1, %v9253_v13, 0.0  ;;  %v9257_v16 = vpop.f32.mrb[22].mxu1 }
 0x110   : > { %v738_v17 = vadd.f32 %v737_v15, %v736_v14  ;;  %v653_v22 = vpop.f32.mrb[23].mxu1  ;;  %v743_v27 = vsel %vm697_vm1, %v9257_v16, 0.0 }
 0x111   : > { %v739_v23 = vsel %vm697_vm1, %v653_v22, 0.0 }
 0x112   : > { %v740_v24 = vadd.f32 %v739_v23, %v738_v17 }
 0x114   : > { %v742_v26 = vadd.f32 %v741_v25, %v740_v24 }
 0x115   : > { %v7865_v30 = vpop.f32.mrb[24].mxu1 }
 0x116   : > { %v666_v31 = vpop.f32.mrb[25].mxu1  ;;  %v744_v33 = vadd.f32 %v743_v27, %v742_v26  ;;  %v749_v43 = vsel %vm697_vm1, %v7865_v30, 0.0 }
 0x117   : > { %v745_v35 = vsel %vm697_vm1, %v666_v31, 0.0  ;;  %v7866_v36 = vpop.f32.mrb[26].mxu1 }
 0x118   : > { %v746_v37 = vadd.f32 %v745_v35, %v744_v33  ;;  %v669_v38 = vpop.f32.mrb[27].mxu1  ;;  %v751_v47 = vsel %vm697_vm1, %v7866_v36, 0.0 }
 0x119   : > { %v747_v39 = vsel %vm697_vm1, %v669_v38, 0.0 }
 0x11a   : > { %v748_v42 = vadd.f32 %v747_v39, %v746_v37 }
 0x11c   : > { %v750_v45 = vadd.f32 %v749_v43, %v748_v42 }
 0x11d   : > { %v7869_v48 = vpop.f32.mrb[28].mxu1 }
 0x11e   : > { %v682_v49 = vpop.f32.mrb[29].mxu1  ;;  %v752_v50 = vadd.f32 %v751_v47, %v750_v45  ;;  %v757_v61 = vsel %vm697_vm1, %v7869_v48, 0.0 }
 0x11f   : > { %v753_v51 = vsel %vm697_vm1, %v682_v49, 0.0  ;;  %v7870_v54 = vpop.f32.mrb[30].mxu1 }
 0x120   : > { %v754_v55 = vadd.f32 %v753_v51, %v752_v50  ;;  %v685_v57 = vpop.f32.mrb[31].mxu1  ;;  %v759_v63 = vsel %vm697_vm1, %v7870_v54, 0.0 }
 0x121   : > { %v755_v59 = vsel %vm697_vm1, %v685_v57, 0.0 }
 0x122   : > { %v756_v60 = vadd.f32 %v755_v59, %v754_v55 }
 0x124   : > { %v758_v62 = vadd.f32 %v757_v61, %v756_v60  ;;  %v9057_v61 = vmov 0  }
 0x125   : > { %1924 = vmatprep.subr.bf16.mxu1 %v9057_v61 }
 0x126   : > { %v760_v2 = vadd.f32 %v759_v63, %v758_v62 }
 0x128   : > { %v761_v3 = vrot.slane %v760_v2, 4 }
 0x12a   : > { %v762_v5 = vadd.f32 %v761_v3, %v760_v2 }
 0x12c   : > { %v763_v7 = vrot.slane %v762_v5, 2 }
 0x12e   : > { %v764_v8 = vadd.f32 %v763_v7, %v762_v5 }
 0x130   : > { %v765_v9 = vrot.slane %v764_v8, 1 }
 0x132   : > { %v766_v10 = vadd.f32 %v765_v9, %v764_v8 }
 0x134   : > { %v767_v11 = vmul.f32 0.00390625, %v766_v10 }
 0x136   : > { %v9273_v14 = vsub.f32 %v9173_v19, %v767_v11  ;;  %v9276_v15 = vsub.f32 %v9177_v21, %v767_v11  ;;  %v9279_v17 = vsub.f32 %v9171_v18, %v767_v11  ;;  %v9282_v23 = vsub.f32 %v9175_v20, %v767_v11 }
 0x137   : > { %v9285_v24 = vsub.f32 %v9189_v29, %v767_v11  ;;  %v9288_v25 = vsub.f32 %v9195_v34, %v767_v11  ;;  %v9291_v26 = vsub.f32 %v9187_v28, %v767_v11  ;;  %v9294_v19 = vsub.f32 %v9193_v32, %v767_v11 }
 0x138   : > { %v9297_v21 = vsub.f32 %v9205_v41, %v767_v11  ;;  %v9300_v18 = vsub.f32 %v9211_v46, %v767_v11  ;;  %v9303_v20 = vsub.f32 %v9203_v40, %v767_v11  ;;  %v9306_v29 = vsub.f32 %v9209_v44, %v767_v11 }
 0x139   : > { %v9309_v34 = vsub.f32 %v9221_v53, %v767_v11  ;;  %v9312_v28 = vsub.f32 %v9227_v58, %v767_v11  ;;  %v9315_v32 = vsub.f32 %v9219_v52, %v767_v11  ;;  %v9318_v41 = vsub.f32 %v9225_v56, %v767_v11 }
 0x13a   : > { %v9321_v46 = vsub.f32 %v9237_v1, %v767_v11  ;;  %v9324_v40 = vsub.f32 %v9243_v6, %v767_v11  ;;  %v9327_v44 = vsub.f32 %v9235_v0, %v767_v11  ;;  %v9330_v53 = vsub.f32 %v9241_v4, %v767_v11 }
 0x13b   : > { %v9333_v58 = vsub.f32 %v9253_v13, %v767_v11  ;;  %v9335_v52 = vsub.f32 %v653_v22, %v767_v11  ;;  %v9338_v56 = vsub.f32 %v9251_v12, %v767_v11  ;;  %v9341_v1 = vsub.f32 %v9257_v16, %v767_v11 }
 0x13c   : > { %v9343_v27 = vsub.f32 %v666_v31, %v767_v11  ;;  %v9345_v6 = vsub.f32 %v669_v38, %v767_v11  ;;  %v9347_v0 = vsub.f32 %v7865_v30, %v767_v11  ;;  %v9349_v33 = vsub.f32 %v7866_v36, %v767_v11 }
 0x13d   : > { %v9351_v4 = vsub.f32 %v682_v49, %v767_v11  ;;  %v9353_v13 = vsub.f32 %v685_v57, %v767_v11  ;;  %v9355_v22 = vsub.f32 %v7869_v48, %v767_v11  ;;  %v9357_v35 = vsub.f32 %v7870_v54, %v767_v11 }
 0x13e   : > { %v800_v12 = vmul.f32 %v9273_v14, %v9273_v14  ;;  %v801_v16 = vmul.f32 %v9276_v15, %v9276_v15  ;;  %v802_v30 = vmul.f32 %v9279_v17, %v9279_v17  ;;  %v803_v31 = vmul.f32 %v9282_v23, %v9282_v23 }
 0x13f   : > { %v804_v39 = vmul.f32 %v9285_v24, %v9285_v24  ;;  %v805_v45 = vmul.f32 %v9288_v25, %v9288_v25  ;;  %v806_v49 = vmul.f32 %v9291_v26, %v9291_v26  ;;  %v807_v54 = vmul.f32 %v9294_v19, %v9294_v19 }
 0x140   : > { %v832_v36 = vsel %vm697_vm1, %v800_v12, 0.0  ;;  %v833_v37 = vsel %vm697_vm1, %v801_v16, 0.0  ;;  %v835_v42 = vsel %vm697_vm1, %v802_v30, 0.0  ;;  %v837_v47 = vsel %vm697_vm1, %v803_v31, 0.0 }
 0x141   : > { %v834_v38 = vadd.f32 %v833_v37, %v832_v36  ;;  %v839_v50 = vsel %vm697_vm1, %v804_v39, 0.0  ;;  %v841_v55 = vsel %vm697_vm1, %v805_v45, 0.0  ;;  %v808_v59 = vmul.f32 %v9297_v21, %v9297_v21 }
 0x142   : > { %v843_v60 = vsel %vm697_vm1, %v806_v49, 0.0  ;;  %v809_v63 = vmul.f32 %v9300_v18, %v9300_v18  ;;  %v845_v2 = vsel %vm697_vm1, %v807_v54, 0.0  ;;  %v810_v5 = vmul.f32 %v9303_v20, %v9303_v20 }
 0x143   : > { %v836_v43 = vadd.f32 %v835_v42, %v834_v38  ;;  %v847_v7 = vsel %vm697_vm1, %v808_v59, 0.0  ;;  %v811_v9 = vmul.f32 %v9306_v29, %v9306_v29  ;;  %v812_v12 = vmul.f32 %v9309_v34, %v9309_v34 }
 0x144   : > { %v849_v10 = vsel %vm697_vm1, %v809_v63, 0.0  ;;  %v851_v16 = vsel %vm697_vm1, %v810_v5, 0.0  ;;  %v813_v31 = vmul.f32 %v9312_v28, %v9312_v28  ;;  %v814_v38 = vmul.f32 %v9315_v32, %v9315_v32 }
 0x145   : > { %v838_v48 = vadd.f32 %v837_v47, %v836_v43  ;;  %v853_v36 = vsel %vm697_vm1, %v811_v9, 0.0  ;;  %v855_v39 = vsel %vm697_vm1, %v812_v12, 0.0  ;;  %v815_v43 = vmul.f32 %v9318_v41, %v9318_v41 }
 0x146   : > { %v857_v45 = vsel %vm697_vm1, %v813_v31, 0.0  ;;  %v859_v49 = vsel %vm697_vm1, %v814_v38, 0.0 }
 0x147   : > { %v840_v51 = vadd.f32 %v839_v50, %v838_v48  ;;  %v816_v48 = vmul.f32 %v9321_v46, %v9321_v46  ;;  %v861_v54 = vsel %vm697_vm1, %v815_v43, 0.0 }
 0x149   : > { %v842_v57 = vadd.f32 %v841_v55, %v840_v51  ;;  %v817_v51 = vmul.f32 %v9324_v40, %v9324_v40  ;;  %v863_v59 = vsel %vm697_vm1, %v816_v48, 0.0 }
 0x14b   : > { %v844_v62 = vadd.f32 %v843_v60, %v842_v57  ;;  %v818_v57 = vmul.f32 %v9327_v44, %v9327_v44  ;;  %v865_v63 = vsel %vm697_vm1, %v817_v51, 0.0 }
 0x14d   : > { %v846_v3 = vadd.f32 %v845_v2, %v844_v62  ;;  %v819_v62 = vmul.f32 %v9330_v53, %v9330_v53  ;;  %v867_v5 = vsel %vm697_vm1, %v818_v57, 0.0 }
 0x14f   : > { %v848_v8 = vadd.f32 %v847_v7, %v846_v3  ;;  %v820_v3 = vmul.f32 %v9333_v58, %v9333_v58  ;;  %v869_v9 = vsel %vm697_vm1, %v819_v62, 0.0  ;;  %v829_v62 = vmul.f32 %v9353_v13, %v9353_v13 }
 0x151   : > { %v850_v11 = vadd.f32 %v849_v10, %v848_v8  ;;  %v821_v8 = vmul.f32 %v9335_v52, %v9335_v52  ;;  %v871_v12 = vsel %vm697_vm1, %v820_v3, 0.0  ;;  %v830_v3 = vmul.f32 %v9355_v22, %v9355_v22 }
 0x153   : > { %v852_v30 = vadd.f32 %v851_v16, %v850_v11  ;;  %v822_v11 = vmul.f32 %v9338_v56, %v9338_v56  ;;  %v873_v31 = vsel %vm697_vm1, %v821_v8, 0.0  ;;  %v831_v8 = vmul.f32 %v9357_v35, %v9357_v35 }
 0x155   : > { %v854_v37 = vadd.f32 %v853_v36, %v852_v30  ;;  %v823_v30 = vmul.f32 %v9341_v1, %v9341_v1  ;;  %v875_v38 = vsel %vm697_vm1, %v822_v11, 0.0  ;;  %v891_v11 = vsel %vm697_vm1, %v830_v3, 0.0 }
 0x157   : > { %v856_v42 = vadd.f32 %v855_v39, %v854_v37  ;;  %v824_v37 = vmul.f32 %v9343_v27, %v9343_v27  ;;  %v877_v43 = vsel %vm697_vm1, %v823_v30, 0.0 }
 0x159   : > { %v858_v47 = vadd.f32 %v857_v45, %v856_v42  ;;  %v825_v42 = vmul.f32 %v9345_v6, %v9345_v6  ;;  %v879_v48 = vsel %vm697_vm1, %v824_v37, 0.0 }
 0x15b   : > { %v860_v50 = vadd.f32 %v859_v49, %v858_v47  ;;  %v826_v47 = vmul.f32 %v9347_v0, %v9347_v0  ;;  %v881_v51 = vsel %vm697_vm1, %v825_v42, 0.0 }
 0x15d   : > { %v862_v55 = vadd.f32 %v861_v54, %v860_v50  ;;  %v827_v50 = vmul.f32 %v9349_v33, %v9349_v33  ;;  %v883_v57 = vsel %vm697_vm1, %v826_v47, 0.0  ;;  %v936_v47 = vlaneseq }
 0x15f   : > { %v864_v60 = vadd.f32 %v863_v59, %v862_v55  ;;  %v828_v55 = vmul.f32 %v9351_v4, %v9351_v4 }
 0x161   : > { %v866_v2 = vadd.f32 %v865_v63, %v864_v60  ;;  %v8702_v60 = vld [vmem:[%s10979_s2 + $0x4] ss:$8 sps:$4 sm:$0xff]   ;;  %v885_v63 = vsel %vm697_vm1, %v827_v50, 0.0 }
 0x162   : > { %1956 = vmatprep.mubr.bf16.mxu1 %v8702_v60 }
 0x163   : > { %v868_v7 = vadd.f32 %v867_v5, %v866_v2  ;;  %v887_v5 = vsel %vm697_vm1, %v828_v55, 0.0 }
 0x165   : > { %v870_v10 = vadd.f32 %v869_v9, %v868_v7  ;;  %v889_v9 = vsel %vm697_vm1, %v829_v62, 0.0 }
 0x167   : > { %v872_v16 = vadd.f32 %v871_v12, %v870_v10 }
 0x169   : > { %v874_v36 = vadd.f32 %v873_v31, %v872_v16  ;;  %v893_v16 = vsel %vm697_vm1, %v831_v8, 0.0 }
 0x16b   : > { %v876_v39 = vadd.f32 %v875_v38, %v874_v36 }
 0x16d   : > { %v878_v45 = vadd.f32 %v877_v43, %v876_v39 }
 0x16f   : > { %v880_v49 = vadd.f32 %v879_v48, %v878_v45  ;;  %v9459_v48 = vshrl.u32 %v936_v47, 7 }
 0x171   : > { %v882_v54 = vadd.f32 %v881_v51, %v880_v49  ;;  %v938_v49 = vsub.s32 0, %v9459_v48  ;;  %v357_v51 = vld [vmem:[%s10986_s9] sm:$0xff]  ;;  %v974_v55 = vsub.s32 1, %v9459_v48 }
 0x173   : > { %v884_v59 = vadd.f32 %v883_v57, %v882_v54  ;;  %v9469_v54 = vrot.slane %v357_v51, %v938_v49  ;;  %v9486_v3 = vrot.slane %v357_v51, %v974_v55 }
 0x175   : > { %v886_v2 = vadd.f32 %v885_v63, %v884_v59 }
 0x177   : > { %v888_v7 = vadd.f32 %v887_v5, %v886_v2  ;;  %v1042_v5 = vsub.s32 2, %v9459_v48 }
 0x179   : > { %v890_v10 = vadd.f32 %v889_v9, %v888_v7 }
 0x17b   : > { %v892_v12 = vadd.f32 %v891_v11, %v890_v10  ;;  %v9503_v11 = vrot.slane %v357_v51, %v1042_v5 }
 0x17d   : > { %v894_v30 = vadd.f32 %v893_v16, %v892_v12 }
 0x17f   : > { %v895_v31 = vrot.slane %v894_v30, 4 }
 0x181   : > { %v896_v36 = vadd.f32 %v895_v31, %v894_v30 }
 0x183   : > { %v897_v37 = vrot.slane %v896_v36, 2 }
 0x185   : > { %v898_v38 = vadd.f32 %v897_v37, %v896_v36 }
 0x187   : > { %v899_v39 = vrot.slane %v898_v38, 1 }
 0x189   : > { %v900_v42 = vadd.f32 %v899_v39, %v898_v38 }
 0x18b   : > { %v901_v43 = vmul.f32 0.00390625, %v900_v42 }
 0x18d   : > { %v902_v45 = vadd.f32 1e-05, %v901_v43 }
 0x18f   : > { %9036 = vrsqrt.f32 %v902_v45 }
 0x199   : > { %v9462_v50 = vpop.eup %9036 }
 0x19a   : > { %v904_v57 = vmul.f32 %v9462_v50, %v9273_v14  ;;  %v905_v59 = vmul.f32 %v9462_v50, %v9276_v15  ;;  %v906_v60 = vmul.f32 %v9462_v50, %v9279_v17  ;;  %v907_v62 = vmul.f32 %v9462_v50, %v9282_v23 }
 0x19b   : > { %v908_v63 = vmul.f32 %v9462_v50, %v9285_v24  ;;  %v909_v2 = vmul.f32 %v9462_v50, %v9288_v25  ;;  %v910_v24 = vmul.f32 %v9462_v50, %v9291_v26  ;;  %v911_v25 = vmul.f32 %v9462_v50, %v9294_v19 }
 0x19c   : > { %v940_v14 = vmul.f32 %v9469_v54, %v904_v57  ;;  %v941_v15 = vmul.f32 %v9469_v54, %v905_v59  ;;  %v942_v17 = vmul.f32 %v9469_v54, %v906_v60  ;;  %v943_v23 = vmul.f32 %v9469_v54, %v907_v62 }
 0x19d   : > { %v944_v7 = vmul.f32 %v9469_v54, %v908_v63  ;;  %v945_v8 = vmul.f32 %v9469_v54, %v909_v2  ;;  %v912_v26 = vmul.f32 %v9462_v50, %v9297_v21  ;;  %v913_v19 = vmul.f32 %v9462_v50, %v9300_v18 }
 0x19e   : > { %v976_v9 = vadd.f32 %v9486_v3, %v940_v14  ;;  %v977_v10 = vadd.f32 %v9486_v3, %v941_v15  ;;  %v978_v12 = vadd.f32 %v9486_v3, %v942_v17  ;;  %v979_v16 = vadd.f32 %v9486_v3, %v943_v23 }
 0x19f   : > { %v914_v30 = vmul.f32 %v9462_v50, %v9303_v20  ;;  %v946_v31 = vmul.f32 %v9469_v54, %v910_v24  ;;  %v947_v36 = vmul.f32 %v9469_v54, %v911_v25  ;;  %v980_v37 = vadd.f32 %v9486_v3, %v944_v7 }
 0x1a0   : > { %v981_v38 = vadd.f32 %v9486_v3, %v945_v8  ;;  %vm1008_vm2 = vcmp.ge.f32.partialorder %v976_v9, 0.0  ;;  %vm1009_vm3 = vcmp.ge.f32.partialorder %v977_v10, 0.0  ;;  %v1044_v39 = vmul.f32 %v9503_v11, %v976_v9 }
 0x1a1   : > { %v1045_v21 = vmul.f32 %v9503_v11, %v977_v10  ;;  %vm1010_vm4 = vcmp.ge.f32.partialorder %v978_v12, 0.0  ;;  %vm1011_vm5 = vcmp.ge.f32.partialorder %v979_v16, 0.0  ;;  %v1046_v18 = vmul.f32 %v9503_v11, %v978_v12 }
 0x1a2   : > { %v1047_v20 = vmul.f32 %v9503_v11, %v979_v16  ;;  %v915_v42 = vmul.f32 %v9462_v50, %v9306_v29  ;;  %v948_v43 = vmul.f32 %v9469_v54, %v912_v26  ;;  %v1076_v45 = vsel %vm1008_vm2, %v976_v9, %v1044_v39 }
 0x1a3   : > { %v1077_v47 = vsel %vm1009_vm3, %v977_v10, %v1045_v21  ;;  %v949_v51 = vmul.f32 %v9469_v54, %v913_v19  ;;  %v982_v57 = vadd.f32 %v9486_v3, %v946_v31  ;;  %v983_v59 = vadd.f32 %v9486_v3, %v947_v36 }
 0x1a4   : > { %v1108_v60 = vpack.c.bf16 %v1077_v47, %v1076_v45  ;;  %v1078_v62 = vsel %vm1010_vm4, %v978_v12, %v1046_v18  ;;  %v1079_v63 = vsel %vm1011_vm5, %v979_v16, %v1047_v20  ;;  %v1048_v2 = vmul.f32 %v9503_v11, %v980_v37 }
 0x1a5   : > { %v1049_v14 = vmul.f32 %v9503_v11, %v981_v38  ;;  %vm1012_vm6 = vcmp.ge.f32.partialorder %v980_v37, 0.0  ;;  %vm1013_vm7 = vcmp.ge.f32.partialorder %v981_v38, 0.0  ;;  %v916_v29 = vmul.f32 %v9462_v50, %v9309_v34 }
 0x1a6   : > { %1925 = vmatpush1.bf16.msra.mxu1 %v1108_v60  ;;  %v917_v15 = vmul.f32 %v9462_v50, %v9312_v28  ;;  %v950_v17 = vmul.f32 %v9469_v54, %v914_v30  ;;  %v951_v23 = vmul.f32 %v9469_v54, %v915_v42  ;;  %v984_v24 = vadd.f32 %v9486_v3, %v948_v43 }
 0x1a7   : > { %1926 = vmatprep.subr.bf16.mxu1 %v9057_v61  ;;  %v985_v25 = vadd.f32 %v9486_v3, %v949_v51  ;;  %v1109_v7 = vpack.c.bf16 %v1079_v63, %v1078_v62  ;;  %v1080_v8 = vsel %vm1012_vm6, %v980_v37, %v1048_v2  ;;  %v1081_v9 = vsel %vm1013_vm7, %v981_v38, %v1049_v14 }
 0x1a8   : > { %v1050_v10 = vmul.f32 %v9503_v11, %v982_v57  ;;  %v1051_v34 = vmul.f32 %v9503_v11, %v983_v59  ;;  %vm1014_vm8 = vcmp.ge.f32.partialorder %v982_v57, 0.0  ;;  %vm1015_vm9 = vcmp.ge.f32.partialorder %v983_v59, 0.0 }
 0x1a9   : > { %v918_v28 = vmul.f32 %v9462_v50, %v9315_v32  ;;  %v919_v12 = vmul.f32 %v9462_v50, %v9318_v41  ;;  %v952_v16 = vmul.f32 %v9469_v54, %v916_v29  ;;  %v953_v26 = vmul.f32 %v9469_v54, %v917_v15 }
 0x1aa   : > { %1927 = vmatpush1.bf16.msra.mxu1 %v1109_v7  ;;  %v986_v19 = vadd.f32 %v9486_v3, %v950_v17  ;;  %v987_v30 = vadd.f32 %v9486_v3, %v951_v23  ;;  %v1110_v31 = vpack.c.bf16 %v1081_v9, %v1080_v8  ;;  %v1082_v36 = vsel %vm1014_vm8, %v982_v57, %v1050_v10 }
 0x1ab   : > { %1928 = vmatprep.subr.bf16.mxu1 %v9057_v61  ;;  %v1083_v37 = vsel %vm1015_vm9, %v983_v59, %v1051_v34  ;;  %v1052_v38 = vmul.f32 %v9503_v11, %v984_v24  ;;  %v1053_v32 = vmul.f32 %v9503_v11, %v985_v25  ;;  %vm1016_vm10 = vcmp.ge.f32.partialorder %v984_v24, 0.0 }
 0x1ac   : > { %vm1017_vm11 = vcmp.ge.f32.partialorder %v985_v25, 0.0  ;;  %v920_v41 = vmul.f32 %v9462_v50, %v9321_v46  ;;  %v921_v39 = vmul.f32 %v9462_v50, %v9324_v40  ;;  %v954_v21 = vmul.f32 %v9469_v54, %v918_v28 }
 0x1ad   : > { %v955_v18 = vmul.f32 %v9469_v54, %v919_v12  ;;  %v988_v20 = vadd.f32 %v9486_v3, %v952_v16  ;;  %v989_v42 = vadd.f32 %v9486_v3, %v953_v26  ;;  %v1111_v43 = vpack.c.bf16 %v1083_v37, %v1082_v36 }
 0x1ae   : > { %1929 = vmatpush1.bf16.msra.mxu1 %v1110_v31  ;;  %v1084_v45 = vsel %vm1016_vm10, %v984_v24, %v1052_v38  ;;  %v1085_v47 = vsel %vm1017_vm11, %v985_v25, %v1053_v32  ;;  %v1054_v51 = vmul.f32 %v9503_v11, %v986_v19  ;;  %v1055_v46 = vmul.f32 %v9503_v11, %v987_v30 }
 0x1af   : > { %1930 = vmatprep.subr.bf16.mxu1 %v9057_v61  ;;  %vm1018_vm12 = vcmp.ge.f32.partialorder %v986_v19, 0.0  ;;  %vm1019_vm13 = vcmp.ge.f32.partialorder %v987_v30, 0.0  ;;  %v922_v40 = vmul.f32 %v9462_v50, %v9327_v44  ;;  %v923_v57 = vmul.f32 %v9462_v50, %v9330_v53 }
 0x1b0   : > { %v956_v59 = vmul.f32 %v9469_v54, %v920_v41  ;;  %v957_v60 = vmul.f32 %v9469_v54, %v921_v39  ;;  %v990_v62 = vadd.f32 %v9486_v3, %v954_v21  ;;  %v991_v63 = vadd.f32 %v9486_v3, %v955_v18 }
 0x1b1   : > { %v1112_v2 = vpack.c.bf16 %v1085_v47, %v1084_v45  ;;  %v1086_v14 = vsel %vm1018_vm12, %v986_v19, %v1054_v51  ;;  %v1087_v29 = vsel %vm1019_vm13, %v987_v30, %v1055_v46  ;;  %v1056_v15 = vmul.f32 %v9503_v11, %v988_v20 }
 0x1b2   : > { %1931 = vmatpush1.bf16.msra.mxu1 %v1111_v43  ;;  %v1057_v44 = vmul.f32 %v9503_v11, %v989_v42  ;;  %vm1020_vm14 = vcmp.ge.f32.partialorder %v988_v20, 0.0  ;;  %vm1021_vm15 = vcmp.ge.f32.partialorder %v989_v42, 0.0  ;;  %v924_v53 = vmul.f32 %v9462_v50, %v9333_v58 }
 0x1b3   : > { %1932 = vmatprep.subr.bf16.mxu1 %v9057_v61  ;;  %v925_v17 = vmul.f32 %v9462_v50, %v9335_v52  ;;  %v958_v23 = vmul.f32 %v9469_v54, %v922_v40  ;;  %v959_v24 = vmul.f32 %v9469_v54, %v923_v57  ;;  %v992_v25 = vadd.f32 %v9486_v3, %v956_v59 }
 0x1b4   : > { %v993_v7 = vadd.f32 %v9486_v3, %v957_v60  ;;  %v1113_v8 = vpack.c.bf16 %v1087_v29, %v1086_v14  ;;  %v1088_v9 = vsel %vm1020_vm14, %v988_v20, %v1056_v15  ;;  %v1089_v10 = vsel %vm1021_vm15, %v989_v42, %v1057_v44 }
 0x1b5   : > { %v1058_v34 = vmul.f32 %v9503_v11, %v990_v62  ;;  %v1059_v58 = vmul.f32 %v9503_v11, %v991_v63  ;;  %vm1022_vm2 = vcmp.ge.f32.partialorder %v990_v62, 0.0  ;;  %vm1023_vm3 = vcmp.ge.f32.partialorder %v991_v63, 0.0 }
 0x1b6   : > { %1933 = vmatpush1.bf16.msra.mxu1 %v1112_v2  ;;  %v926_v52 = vmul.f32 %v9462_v50, %v9338_v56  ;;  %v927_v28 = vmul.f32 %v9462_v50, %v9341_v1  ;;  %v960_v12 = vmul.f32 %v9469_v54, %v924_v53  ;;  %v961_v16 = vmul.f32 %v9469_v54, %v925_v17 }
 0x1b7   : > { %1934 = vmatprep.subr.bf16.mxu1 %v9057_v61  ;;  %v994_v26 = vadd.f32 %v9486_v3, %v958_v23  ;;  %v995_v19 = vadd.f32 %v9486_v3, %v959_v24  ;;  %v1114_v30 = vpack.c.bf16 %v1089_v10, %v1088_v9  ;;  %v1090_v31 = vsel %vm1022_vm2, %v990_v62, %v1058_v34 }
 0x1b8   : > { %v1091_v36 = vsel %vm1023_vm3, %v991_v63, %v1059_v58  ;;  %v1060_v37 = vmul.f32 %v9503_v11, %v992_v25  ;;  %v1061_v56 = vmul.f32 %v9503_v11, %v993_v7  ;;  %vm1024_vm4 = vcmp.ge.f32.partialorder %v992_v25, 0.0 }
 0x1b9   : > { %vm1025_vm5 = vcmp.ge.f32.partialorder %v993_v7, 0.0  ;;  %v928_v1 = vmul.f32 %v9462_v50, %v9343_v27  ;;  %v929_v38 = vmul.f32 %v9462_v50, %v9345_v6  ;;  %v962_v32 = vmul.f32 %v9469_v54, %v926_v52 }
 0x1ba   : > { %1935 = vmatpush1.bf16.msra.mxu1 %v1113_v8  ;;  %v963_v41 = vmul.f32 %v9469_v54, %v927_v28  ;;  %v996_v39 = vadd.f32 %v9486_v3, %v960_v12  ;;  %v997_v21 = vadd.f32 %v9486_v3, %v961_v16  ;;  %v1115_v18 = vpack.c.bf16 %v1091_v36, %v1090_v31 }
 0x1bb   : > { %1936 = vmatprep.subr.bf16.mxu1 %v9057_v61  ;;  %v1092_v20 = vsel %vm1024_vm4, %v992_v25, %v1060_v37  ;;  %v1093_v42 = vsel %vm1025_vm5, %v993_v7, %v1061_v56  ;;  %v1062_v43 = vmul.f32 %v9503_v11, %v994_v26  ;;  %v1063_v27 = vmul.f32 %v9503_v11, %v995_v19 }
 0x1bc   : > { %vm1026_vm6 = vcmp.ge.f32.partialorder %v994_v26, 0.0  ;;  %vm1027_vm7 = vcmp.ge.f32.partialorder %v995_v19, 0.0  ;;  %v930_v6 = vmul.f32 %v9462_v50, %v9347_v0  ;;  %v931_v45 = vmul.f32 %v9462_v50, %v9349_v33 }
 0x1bd   : > { %v964_v47 = vmul.f32 %v9469_v54, %v928_v1  ;;  %v965_v51 = vmul.f32 %v9469_v54, %v929_v38  ;;  %v998_v46 = vadd.f32 %v9486_v3, %v962_v32  ;;  %v999_v40 = vadd.f32 %v9486_v3, %v963_v41 }
 0x1be   : > { %1937 = vmatpush1.bf16.msra.mxu1 %v1114_v30  ;;  %v1116_v57 = vpack.c.bf16 %v1093_v42, %v1092_v20  ;;  %v1094_v59 = vsel %vm1026_vm6, %v994_v26, %v1062_v43  ;;  %v1095_v60 = vsel %vm1027_vm7, %v995_v19, %v1063_v27  ;;  %v1064_v62 = vmul.f32 %v9503_v11, %v996_v39 }
 0x1bf   : > { %1938 = vmatprep.subr.bf16.mxu1 %v9057_v61  ;;  %v1065_v0 = vmul.f32 %v9503_v11, %v997_v21  ;;  %vm1028_vm8 = vcmp.ge.f32.partialorder %v996_v39, 0.0  ;;  %vm1029_vm9 = vcmp.ge.f32.partialorder %v997_v21, 0.0  ;;  %v933_v33 = vmul.f32 %v9462_v50, %v9353_v13 }
 0x1c0   : > { %v932_v63 = vmul.f32 %v9462_v50, %v9351_v4  ;;  %v966_v2 = vmul.f32 %v9469_v54, %v930_v6  ;;  %v967_v14 = vmul.f32 %v9469_v54, %v931_v45  ;;  %v1000_v29 = vadd.f32 %v9486_v3, %v964_v47  ;;  %v8700_v6 = vld [vmem:[%s10979_s2] ss:$8 sps:$4 sm:$0xff]   ;;  %v8705_v45 = vld [vmem:[%s10979_s2 + $0x10] ss:$8 sps:$4 sm:$0xff]  }
 0x1c1   : > { %v1001_v15 = vadd.f32 %v9486_v3, %v965_v51  ;;  %v1117_v44 = vpack.c.bf16 %v1095_v60, %v1094_v59  ;;  %v1096_v53 = vsel %vm1028_vm8, %v996_v39, %v1064_v62  ;;  %v1097_v17 = vsel %vm1029_vm9, %v997_v21, %v1065_v0  ;;  %v8708_v47 = vld [vmem:[%s10979_s2 + $0x20] ss:$8 sps:$4 sm:$0xff]   ;;  %v8709_v51 = vld [vmem:[%s10979_s2 + $0x34] ss:$8 sps:$4 sm:$0xff]   ;;  %v8717_v60 = vld [vmem:[%s10979_s2 + $0x50] ss:$8 sps:$4 sm:$0xff]  }
 0x1c2   : > { %1939 = vmatpush1.bf16.msra.mxu1 %v1115_v18  ;;  %v1066_v23 = vmul.f32 %v9503_v11, %v998_v46  ;;  %v1067_v13 = vmul.f32 %v9503_v11, %v999_v40  ;;  %vm1030_vm10 = vcmp.ge.f32.partialorder %v998_v46, 0.0  ;;  %vm1031_vm11 = vcmp.ge.f32.partialorder %v999_v40, 0.0  ;;  %v8715_v59 = vld [vmem:[%s10979_s2 + $0x54] ss:$8 sps:$4 sm:$0xff]   ;;  %v8718_v62 = vld [vmem:[%s10979_s2 + $0x64] ss:$8 sps:$4 sm:$0xff]  }
 0x1c3   : > { %1940 = vmatprep.subr.bf16.mxu1 %v9057_v61  ;;  %v969_v4 = vmul.f32 %v9469_v54, %v933_v33  ;;  %v934_v24 = vmul.f32 %v9462_v50, %v9355_v22  ;;  %v935_v25 = vmul.f32 %v9462_v50, %v9357_v35  ;;  %v968_v7 = vmul.f32 %v9469_v54, %v932_v63  ;;  %v8720_v0 = vld [vmem:[%s10979_s2 + $0x60] ss:$8 sps:$4 sm:$0xff]   ;;  %v8721_v33 = vld [vmem:[%s10979_s2 + $0x74] ss:$8 sps:$4 sm:$0xff]   ;;  %v8723_v63 = vld [vmem:[%s10979_s2 + $0x70] ss:$8 sps:$4 sm:$0xff]  }
 0x1c4   : > { %v1002_v8 = vadd.f32 %v9486_v3, %v966_v2  ;;  %v1003_v9 = vadd.f32 %v9486_v3, %v967_v14  ;;  %v1118_v10 = vpack.c.bf16 %v1097_v17, %v1096_v53  ;;  %v1098_v34 = vsel %vm1030_vm10, %v998_v46, %v1066_v23  ;;  %v8711_v46 = vld [vmem:[%s10979_s2 + $0x30] ss:$8 sps:$4 sm:$0xff]   ;;  %v8724_v2 = vld [vmem:[%s10979_s2 + $0x84] ss:$8 sps:$4 sm:$0xff]   ;;  %v8726_v14 = vld [vmem:[%s10979_s2 + $0x80] ss:$8 sps:$4 sm:$0xff]  }
 0x1c5   : > { %v1099_v58 = vsel %vm1031_vm11, %v999_v40, %v1067_v13  ;;  %v1068_v52 = vmul.f32 %v9503_v11, %v1000_v29  ;;  %v1069_v28 = vmul.f32 %v9503_v11, %v1001_v15  ;;  %vm1032_vm12 = vcmp.ge.f32.partialorder %v1000_v29, 0.0  ;;  %v8712_v40 = vld [vmem:[%s10979_s2 + $0x44] ss:$8 sps:$4 sm:$0xff]   ;;  %v8732_v53 = vld [vmem:[%s10979_s2 + $0xa0] ss:$8 sps:$4 sm:$0xff]  }
 0x1c6   : > { %1941 = vmatpush1.bf16.msra.mxu1 %v1116_v57  ;;  %vm1033_vm13 = vcmp.ge.f32.partialorder %v1001_v15, 0.0  ;;  %v1005_v22 = vadd.f32 %v9486_v3, %v969_v4  ;;  %v970_v35 = vmul.f32 %v9469_v54, %v934_v24  ;;  %v971_v50 = vmul.f32 %v9469_v54, %v935_v25  ;;  %v8714_v57 = vld [vmem:[%s10979_s2 + $0x40] ss:$8 sps:$4 sm:$0xff]   ;;  %v8733_v17 = vld [vmem:[%s10979_s2 + $0xb4] ss:$8 sps:$4 sm:$0xff]  }
 0x1c7   : > { %1942 = vmatprep.subr.bf16.mxu1 %v9057_v61  ;;  %v1004_v12 = vadd.f32 %v9486_v3, %v968_v7  ;;  %v1119_v16 = vpack.c.bf16 %v1099_v58, %v1098_v34  ;;  %v1100_v26 = vsel %vm1032_vm12, %v1000_v29, %v1068_v52  ;;  %v1101_v19 = vsel %vm1033_vm13, %v1001_v15, %v1069_v28  ;;  %v8727_v29 = vld [vmem:[%s10979_s2 + $0x94] ss:$8 sps:$4 sm:$0xff]   ;;  %v8729_v15 = vld [vmem:[%s10979_s2 + $0x90] ss:$8 sps:$4 sm:$0xff]   ;;  %v8736_v13 = vld [vmem:[%s10979_s2 + $0xc4] ss:$8 sps:$4 sm:$0xff]  }
 0x1c8   : > { %v1070_v30 = vmul.f32 %v9503_v11, %v1002_v8  ;;  %v1071_v31 = vmul.f32 %v9503_v11, %v1003_v9  ;;  %vm1034_vm14 = vcmp.ge.f32.partialorder %v1002_v8, 0.0  ;;  %vm1035_vm15 = vcmp.ge.f32.partialorder %v1003_v9, 0.0  ;;  %v8735_v23 = vld [vmem:[%s10979_s2 + $0xb0] ss:$8 sps:$4 sm:$0xff]   ;;  %v8738_v4 = vld [vmem:[%s10979_s2 + $0xc0] ss:$8 sps:$4 sm:$0xff]  }
 0x1c9   : > { %v1006_v36 = vadd.f32 %v9486_v3, %v970_v35  ;;  %v1007_v37 = vadd.f32 %v9486_v3, %v971_v50  ;;  %v1120_v56 = vpack.c.bf16 %v1101_v19, %v1100_v26  ;;  %v1072_v38 = vmul.f32 %v9503_v11, %v1004_v12  ;;  %v8739_v24 = vld [vmem:[%s10979_s2 + $0xd4] ss:$8 sps:$4 sm:$0xff]   ;;  %v8741_v25 = vld [vmem:[%s10979_s2 + $0xd0] ss:$8 sps:$4 sm:$0xff]   ;;  %v8742_v7 = vld [vmem:[%s10979_s2 + $0xe4] ss:$8 sps:$4 sm:$0xff]  }
 0x1ca   : > { %1943 = vmatpush1.bf16.msra.mxu1 %v1117_v44  ;;  %v1102_v54 = vsel %vm1034_vm14, %v1002_v8, %v1070_v30  ;;  %v1103_v1 = vsel %vm1035_vm15, %v1003_v9, %v1071_v31  ;;  %v1073_v32 = vmul.f32 %v9503_v11, %v1005_v22  ;;  %vm1036_vm2 = vcmp.ge.f32.partialorder %v1004_v12, 0.0  ;;  %v8730_v44 = vld [vmem:[%s10979_s2 + $0xa4] ss:$8 sps:$4 sm:$0xff]   ;;  %v8744_v8 = vld [vmem:[%s10979_s2 + $0xe0] ss:$8 sps:$4 sm:$0xff]  }
 0x1cb   : > { %1944 = vmatprep.subr.bf16.mxu1 %v9057_v61  ;;  %vm1037_vm3 = vcmp.ge.f32.partialorder %v1005_v22, 0.0  ;;  %v1121_v41 = vpack.c.bf16 %v1103_v1, %v1102_v54  ;;  %v1104_v39 = vsel %vm1036_vm2, %v1004_v12, %v1072_v38  ;;  %v1074_v18 = vmul.f32 %v9503_v11, %v1006_v36  ;;  %v8745_v9 = vld [vmem:[%s10979_s2 + $0xf4] ss:$8 sps:$4 sm:$0xff]   ;;  %v8748_v34 = vld [vmem:[%s10979_s2 + $0x104] ss:$8 sps:$4 sm:$0xff]  }
 0x1cc   : > { %v1105_v21 = vsel %vm1037_vm3, %v1005_v22, %v1073_v32  ;;  %v1075_v20 = vmul.f32 %v9503_v11, %v1007_v37  ;;  %vm1038_vm4 = vcmp.ge.f32.partialorder %v1006_v36, 0.0  ;;  %vm1039_vm5 = vcmp.ge.f32.partialorder %v1007_v37, 0.0  ;;  %v8703_v11 = vld [vmem:[%s10979_s2 + $0x14] ss:$8 sps:$4 sm:$0xff]   ;;  %v8750_v58 = vld [vmem:[%s10979_s2 + $0x100] ss:$8 sps:$4 sm:$0xff]  }
 0x1cd   : > { %v1122_v3 = vpack.c.bf16 %v1105_v21, %v1104_v39  ;;  %v1106_v42 = vsel %vm1038_vm4, %v1006_v36, %v1074_v18  ;;  %v8796_v52 = vld [vmem:[%s10980_s3 + $0x8] sm:$0xff]   ;;  %v8751_v28 = vld [vmem:[%s10979_s2 + $0x114] ss:$8 sps:$4 sm:$0xff]   ;;  %v8753_v22 = vld [vmem:[%s10979_s2 + $0x110] ss:$8 sps:$4 sm:$0xff]   ;;  %vm4275_vm6 = vcmask 523264  }
 0x1ce   : > { %1945 = vmatpush1.bf16.msra.mxu1 %v1118_v10  ;;  %v1107_v43 = vsel %vm1039_vm5, %v1007_v37, %v1075_v20  ;;  %v8747_v10 = vld [vmem:[%s10979_s2 + $0xf0] ss:$8 sps:$4 sm:$0xff]   ;;  %7871 = vmatprep.subr.bf16.mxu0 %v8796_v52  ;;  %v8754_v35 = vld [vmem:[%s10979_s2 + $0x124] ss:$8 sps:$4 sm:$0xff]   ;;  %v8756_v50 = vld [vmem:[%s10979_s2 + $0x120] ss:$8 sps:$4 sm:$0xff]  }
 0x1cf   : > { %1946 = vmatprep.subr.bf16.mxu1 %v9057_v61  ;;  %v1123_v27 = vpack.c.bf16 %v1107_v43, %v1106_v42  ;;  %7872 = vmatpush3.bf16.msra.mxu0 %v8796_v52  ;;  %v8757_v12 = vld [vmem:[%s10979_s2 + $0x134] ss:$8 sps:$4 sm:$0xff]   ;;  %v9779_v26 = vld [vmem:[%s10980_s3] sm:$0xff]   ;;  %v8765_v36 = vld [vmem:[%s10979_s2 + $0x150] ss:$8 sps:$4 sm:$0xff]   ;;  %vm9059_vm15 = vmmov 0  }
 0x1d0   : > { %v8760_v19 = vld [vmem:[%s10979_s2 + $0x144] ss:$8 sps:$4 sm:$0xff]   ;;  %7881 = vmatprep.subr.bf16.mxu0 %v9779_v26  ;;  %v8762_v30 = vld [vmem:[%s10979_s2 + $0x140] ss:$8 sps:$4 sm:$0xff]   ;;  %v8763_v31 = vld [vmem:[%s10979_s2 + $0x154] ss:$8 sps:$4 sm:$0xff]  }
 0x1d1   : > { %v8766_v37 = vld [vmem:[%s10979_s2 + $0x164] ss:$8 sps:$4 sm:$0xff]   ;;  %v8769_v54 = vld [vmem:[%s10979_s2 + $0x174] ss:$8 sps:$4 sm:$0xff]   ;;  %v8771_v1 = vld [vmem:[%s10979_s2 + $0x170] ss:$8 sps:$4 sm:$0xff]  }
 0x1d2   : > { %1947 = vmatpush1.bf16.msra.mxu1 %v1119_v16  ;;  %v8759_v16 = vld [vmem:[%s10979_s2 + $0x130] ss:$8 sps:$4 sm:$0xff]   ;;  %v8772_v38 = vld [vmem:[%s10979_s2 + $0x184] ss:$8 sps:$4 sm:$0xff]   ;;  %v8774_v32 = vld [vmem:[%s10979_s2 + $0x180] ss:$8 sps:$4 sm:$0xff]  }
 0x1d3   : > { %1948 = vmatprep.subr.bf16.mxu1 %v9057_v61  ;;  %v8777_v39 = vld [vmem:[%s10979_s2 + $0x190] ss:$8 sps:$4 sm:$0xff]   ;;  %v8778_v21 = vld [vmem:[%s10979_s2 + $0x1a4] ss:$8 sps:$4 sm:$0xff]   ;;  %v8780_v18 = vld [vmem:[%s10979_s2 + $0x1a0] ss:$8 sps:$4 sm:$0xff]  }
 0x1d4   : > { %v8781_v20 = vld [vmem:[%s10979_s2 + $0x1b4] ss:$8 sps:$4 sm:$0xff]   ;;  %v8783_v43 = vld [vmem:[%s10979_s2 + $0x1b0] ss:$8 sps:$4 sm:$0xff]   ;;  %v8799_v52 = vld [vmem:[%s10979_s2 + $0x200] ss:$8 sps:$4 sm:$0xff]  }
 0x1d5   : > { %vm7057_vm5 = vcmask 516096  }
 0x1d6   : > { %1949 = vmatpush1.bf16.msra.mxu1 %v1120_v56  ;;  %v8768_v56 = vld [vmem:[%s10979_s2 + $0x160] ss:$8 sps:$4 sm:$0xff]  }
 0x1d7   : > { %1950 = vmatprep.subr.bf16.mxu1 %v9057_v61 }
 0x1da   : > { %1951 = vmatpush1.bf16.msra.mxu1 %v1121_v41  ;;  %v8775_v41 = vld [vmem:[%s10979_s2 + $0x194] ss:$8 sps:$4 sm:$0xff]  }
 0x1db   : > { %1952 = vmatprep.subr.bf16.mxu1 %v9057_v61 }
 0x1de   : > { %1953 = vmatpush1.bf16.msra.mxu1 %v1122_v3 }
 0x1df   : > { %1954 = vmatprep.subr.bf16.mxu1 %v9057_v61  ;;  %v8706_v61 = vld [vmem:[%s10979_s2 + $0x24] ss:$8 sps:$4 sm:$0xff]  }
 0x1e2   : > { %1955 = vmatpush1.bf16.msra.mxu1 %v1123_v27 }
 0x1e5   : > { %1957 = vmatmul.mubr.bf16.vlgmr.msra.gmra.mrb[32].mxu1 %v8700_v6  ;;  %v8784_v6 = vld [vmem:[%s10979_s2 + $0x1c4] ss:$8 sps:$4 sm:$0xff]  }
 0x1e6   : > { %1964 = vmatprep.mubr.bf16.mxu1 %v8703_v11 }
 0x1ed   : > { %1965 = vmatmul.mubr.bf16.gmra.mrb[36].mxu1 %v8705_v45 }
 0x1ee   : > { %1972 = vmatprep.mubr.bf16.mxu1 %v8706_v61 }
 0x1f5   : > { %1973 = vmatmul.mubr.bf16.gmra.mrb[40].mxu1 %v8708_v47 }
 0x1f6   : > { %1980 = vmatprep.mubr.bf16.mxu1 %v8709_v51  ;;  %v8786_v51 = vld [vmem:[%s10979_s2 + $0x1c0] ss:$8 sps:$4 sm:$0xff]  }
 0x1fd   : > { %1981 = vmatmul.mubr.bf16.gmra.mrb[44].mxu1 %v8711_v46 }
 0x1fe   : > { %1988 = vmatprep.mubr.bf16.mxu1 %v8712_v40  ;;  %v8787_v40 = vld [vmem:[%s10979_s2 + $0x1d4] ss:$8 sps:$4 sm:$0xff]  }
 0x205   : > { %1989 = vmatmul.mubr.bf16.gmra.mrb[48].mxu1 %v8714_v57 }
 0x206   : > { %1996 = vmatprep.mubr.bf16.mxu1 %v8715_v59 }
 0x20d   : > { %1997 = vmatmul.mubr.bf16.gmra.mrb[52].mxu1 %v8717_v60 }
 0x20e   : > { %2004 = vmatprep.mubr.bf16.mxu1 %v8718_v62 }
 0x215   : > { %2005 = vmatmul.mubr.bf16.gmra.mrb[56].mxu1 %v8720_v0  ;;  %v8789_v0 = vld [vmem:[%s10979_s2 + $0x1d0] ss:$8 sps:$4 sm:$0xff]  }
 0x216   : > { %2012 = vmatprep.mubr.bf16.mxu1 %v8721_v33 }
 0x21d   : > { %2013 = vmatmul.mubr.bf16.gmra.mrb[60].mxu1 %v8723_v63  ;;  %v8790_v63 = vld [vmem:[%s10979_s2 + $0x1e4] ss:$8 sps:$4 sm:$0xff]  }
 0x21e   : > { %2020 = vmatprep.mubr.bf16.mxu1 %v8724_v2 }
 0x225   : > { %2021 = vmatmul.mubr.bf16.gmra.mrb[64].mxu1 %v8726_v14 }
 0x226   : > { %2028 = vmatprep.mubr.bf16.mxu1 %v8727_v29 }
 0x22d   : > { %2029 = vmatmul.mubr.bf16.gmra.mrb[68].mxu1 %v8729_v15 }
 0x22e   : > { %2036 = vmatprep.mubr.bf16.mxu1 %v8730_v44  ;;  %v8792_v44 = vld [vmem:[%s10979_s2 + $0x1e0] ss:$8 sps:$4 sm:$0xff]  }
 0x235   : > { %2037 = vmatmul.mubr.bf16.gmra.mrb[72].mxu1 %v8732_v53 }
 0x236   : > { %2044 = vmatprep.mubr.bf16.mxu1 %v8733_v17  ;;  %v8793_v17 = vld [vmem:[%s10979_s2 + $0x1f4] ss:$8 sps:$4 sm:$0xff]  }
 0x23d   : > { %2045 = vmatmul.mubr.bf16.gmra.mrb[76].mxu1 %v8735_v23 }
 0x23e   : > { %2052 = vmatprep.mubr.bf16.mxu1 %v8736_v13 }
 0x245   : > { %2053 = vmatmul.mubr.bf16.gmra.mrb[80].mxu1 %v8738_v4 }
 0x246   : > { %2060 = vmatprep.mubr.bf16.mxu1 %v8739_v24 }
 0x24d   : > { %2061 = vmatmul.mubr.bf16.gmra.mrb[84].mxu1 %v8741_v25  ;;  %v8795_v25 = vld [vmem:[%s10979_s2 + $0x1f0] ss:$8 sps:$4 sm:$0xff]  }
 0x24e   : > { %2068 = vmatprep.mubr.bf16.mxu1 %v8742_v7 }
 0x255   : > { %2069 = vmatmul.mubr.bf16.gmra.mrb[88].mxu1 %v8744_v8  ;;  %v8797_v8 = vld [vmem:[%s10979_s2 + $0x204] ss:$8 sps:$4 sm:$0xff]  }
 0x256   : > { %2076 = vmatprep.mubr.bf16.mxu1 %v8745_v9 }
 0x25d   : > { %2077 = vmatmul.mubr.bf16.gmra.mrb[92].mxu1 %v8747_v10 }
 0x25e   : > { %2084 = vmatprep.mubr.bf16.mxu1 %v8748_v34 }
 0x265   : > { %2085 = vmatmul.mubr.bf16.gmra.mrb[96].mxu1 %v8750_v58 }
 0x266   : > { %2092 = vmatprep.mubr.bf16.mxu1 %v8751_v28 }
 0x26d   : > { %2093 = vmatmul.mubr.bf16.gmra.mrb[100].mxu1 %v8753_v22  ;;  %v8800_v22 = vld [vmem:[%s10979_s2 + $0x214] ss:$8 sps:$4 sm:$0xff]  }
 0x26e   : > { %2100 = vmatprep.mubr.bf16.mxu1 %v8754_v35 }
 0x275   : > { %2101 = vmatmul.mubr.bf16.gmra.mrb[104].mxu1 %v8756_v50 }
 0x276   : > { %2108 = vmatprep.mubr.bf16.mxu1 %v8757_v12  ;;  %v8813_v12 = vld [vmem:[%s10980_s3 + $0x10] sm:$0xff]  }
 0x27d   : > { %2109 = vmatmul.mubr.bf16.gmra.mrb[108].mxu1 %v8759_v16 }
 0x27e   : > { %2116 = vmatprep.mubr.bf16.mxu1 %v8760_v19 }
 0x285   : > { %2117 = vmatmul.mubr.bf16.gmra.mrb[112].mxu1 %v8762_v30  ;;  %v8802_v30 = vld [vmem:[%s10979_s2 + $0x210] ss:$8 sps:$4 sm:$0xff]  }
 0x286   : > { %2124 = vmatprep.mubr.bf16.mxu1 %v8763_v31 }
 0x28d   : > { %2125 = vmatmul.mubr.bf16.gmra.mrb[116].mxu1 %v8765_v36  ;;  %v8803_v36 = vld [vmem:[%s10979_s2 + $0x224] ss:$8 sps:$4 sm:$0xff]  }
 0x28e   : > { %2132 = vmatprep.mubr.bf16.mxu1 %v8766_v37 }
 0x295   : > { %2133 = vmatmul.mubr.bf16.gmra.mrb[120].mxu1 %v8768_v56 }
 0x296   : > { %2140 = vmatprep.mubr.bf16.mxu1 %v8769_v54 }
 0x29d   : > { %2141 = vmatmul.mubr.bf16.gmra.mrb[124].mxu1 %v8771_v1  ;;  %v8805_v1 = vld [vmem:[%s10979_s2 + $0x220] ss:$8 sps:$4 sm:$0xff]  }
 0x29e   : > { %2148 = vmatprep.mubr.bf16.mxu1 %v8772_v38 }
 0x2a5   : > { %2149 = vmatmul.mubr.bf16.gmra.mrb[128].mxu1 %v8774_v32  ;;  %v8807_v32 = vld [vmem:[%s10979_s2 + $0x234] ss:$8 sps:$4 sm:$0xff]  }
 0x2a6   : > { %2156 = vmatprep.mubr.bf16.mxu1 %v8775_v41 }
 0x2ad   : > { %2157 = vmatmul.mubr.bf16.gmra.mrb[132].mxu1 %v8777_v39 }
 0x2ae   : > { %2164 = vmatprep.mubr.bf16.mxu1 %v8778_v21 }
 0x2b5   : > { %2165 = vmatmul.mubr.bf16.gmra.mrb[136].mxu1 %v8780_v18 }
 0x2b6   : > { %2172 = vmatprep.mubr.bf16.mxu1 %v8781_v20  ;;  %v8809_v20 = vld [vmem:[%s10979_s2 + $0x230] ss:$8 sps:$4 sm:$0xff]  }
 0x2b8   : > { %v9827_v3 = vpop.f32.mrb[32].mxu1 }
 0x2b9   : > { %v1960_v42 = vpop.f32.mrb[33].mxu1 }
 0x2ba   : > { %v9832_v27 = vpop.f32.mrb[34].mxu1 }
 0x2bb   : > { %v2469_v11 = vpack.c.bf16 %v9832_v27, %v9827_v3  ;;  %v1963_v45 = vpop.f32.mrb[35].mxu1  ;;  %v8823_v3 = vld [vmem:[%s10980_s3 + $0x18] sm:$0xff]  }
 0x2bd   : > { %2173 = vmatmul.mubr.bf16.gmra.mrb[140].mxu1 %v8783_v43  ;;  %v8810_v43 = vld [vmem:[%s10979_s2 + $0x244] ss:$8 sps:$4 sm:$0xff]  }
 0x2be   : > { %2180 = vmatprep.mubr.bf16.mxu1 %v8784_v6 }
 0x2c0   : > { %v9839_v61 = vpop.f32.mrb[36].mxu1 }
 0x2c1   : > { %v1968_v47 = vpop.f32.mrb[37].mxu1 }
 0x2c2   : > { %v9844_v46 = vpop.f32.mrb[38].mxu1  ;;  %v8812_v47 = vld [vmem:[%s10979_s2 + $0x240] ss:$8 sps:$4 sm:$0xff]  }
 0x2c3   : > { %v2470_v57 = vpack.c.bf16 %v9844_v46, %v9839_v61  ;;  %v1971_v59 = vpop.f32.mrb[39].mxu1  ;;  %v8814_v61 = vld [vmem:[%s10979_s2 + $0x254] ss:$8 sps:$4 sm:$0xff]  }
 0x2c5   : > { %2181 = vmatmul.mubr.bf16.gmra.mrb[144].mxu1 %v8786_v51 }
 0x2c6   : > { %2188 = vmatprep.mubr.bf16.mxu1 %v8787_v40 }
 0x2c8   : > { %v9851_v60 = vpop.f32.mrb[40].mxu1 }
 0x2c9   : > { %v1976_v62 = vpop.f32.mrb[41].mxu1 }
 0x2ca   : > { %v9856_v33 = vpop.f32.mrb[42].mxu1 }
 0x2cb   : > { %v2471_v2 = vpack.c.bf16 %v9856_v33, %v9851_v60  ;;  %v1979_v14 = vpop.f32.mrb[43].mxu1  ;;  %v8816_v60 = vld [vmem:[%s10979_s2 + $0x250] ss:$8 sps:$4 sm:$0xff]  }
 0x2cd   : > { %2189 = vmatmul.mubr.bf16.gmra.mrb[148].mxu1 %v8789_v0  ;;  %v8817_v0 = vld [vmem:[%s10979_s2 + $0x264] ss:$8 sps:$4 sm:$0xff]  }
 0x2ce   : > { %2196 = vmatprep.mubr.bf16.mxu1 %v8790_v63 }
 0x2d0   : > { %v9863_v29 = vpop.f32.mrb[44].mxu1 }
 0x2d1   : > { %v1984_v15 = vpop.f32.mrb[45].mxu1 }
 0x2d2   : > { %v9868_v53 = vpop.f32.mrb[46].mxu1  ;;  %v8819_v15 = vld [vmem:[%s10979_s2 + $0x260] ss:$8 sps:$4 sm:$0xff]  }
 0x2d3   : > { %v2472_v23 = vpack.c.bf16 %v9868_v53, %v9863_v29  ;;  %v1987_v13 = vpop.f32.mrb[47].mxu1  ;;  %v8820_v53 = vld [vmem:[%s10979_s2 + $0x274] ss:$8 sps:$4 sm:$0xff]  }
 0x2d5   : > { %2197 = vmatmul.mubr.bf16.gmra.mrb[152].mxu1 %v8792_v44 }
 0x2d6   : > { %2204 = vmatprep.mubr.bf16.mxu1 %v8793_v17 }
 0x2d8   : > { %v1990_v4 = vpop.f32.mrb[48].mxu1 }
 0x2d9   : > { %v1992_v24 = vpop.f32.mrb[49].mxu1 }
 0x2da   : > { %v1993_v7 = vpop.f32.mrb[50].mxu1  ;;  %v8822_v24 = vld [vmem:[%s10979_s2 + $0x270] ss:$8 sps:$4 sm:$0xff]  }
 0x2db   : > { %v1995_v9 = vpop.f32.mrb[51].mxu1  ;;  %v2473_v10 = vpack.c.bf16 %v1993_v7, %v1990_v4  ;;  %v8824_v7 = vld [vmem:[%s10979_s2 + $0x284] ss:$8 sps:$4 sm:$0xff]  }
 0x2dd   : > { %2205 = vmatmul.mubr.bf16.gmra.mrb[156].mxu1 %v8795_v25  ;;  %7873 = vmatprep.mubr.msk.bf16.mxu0 %vm697_vm1, %v2473_v10 }
 0x2de   : > { %2212 = vmatprep.mubr.bf16.mxu1 %v8797_v8 }
 0x2e0   : > { %v1998_v34 = vpop.f32.mrb[52].mxu1 }
 0x2e1   : > { %v2000_v58 = vpop.f32.mrb[53].mxu1 }
 0x2e2   : > { %v2001_v28 = vpop.f32.mrb[54].mxu1  ;;  %v8826_v58 = vld [vmem:[%s10979_s2 + $0x280] ss:$8 sps:$4 sm:$0xff]  }
 0x2e3   : > { %v2474_v35 = vpack.c.bf16 %v2001_v28, %v1998_v34  ;;  %v2003_v50 = vpop.f32.mrb[55].mxu1  ;;  %v8827_v28 = vld [vmem:[%s10979_s2 + $0x294] ss:$8 sps:$4 sm:$0xff]  }
 0x2e4   : > { %v8849_v50 = vld [vmem:[%s10980_s3 + $0x28] sm:$0xff]  }
 0x2e5   : > { %2213 = vmatmul.mubr.bf16.gmra.mrb[160].mxu1 %v8799_v52  ;;  %7874 = vmatmul.mubr.msk.bf16.vlgmr.msra.gmra.mrb[0].mxu0 %vm697_vm1, %v2474_v35 }
 0x2e6   : > { %2220 = vmatprep.mubr.bf16.mxu1 %v8800_v22  ;;  %7882 = vmatpush3.bf16.msra.mxu0 %v9779_v26 }
 0x2e7   : > { %7891 = vmatprep.subr.bf16.mxu0 %v8813_v12 }
 0x2e8   : > { %v2006_v16 = vpop.f32.mrb[56].mxu1 }
 0x2e9   : > { %v2008_v19 = vpop.f32.mrb[57].mxu1 }
 0x2ea   : > { %v2009_v31 = vpop.f32.mrb[58].mxu1  ;;  %v8829_v19 = vld [vmem:[%s10979_s2 + $0x290] ss:$8 sps:$4 sm:$0xff]  }
 0x2eb   : > { %v2475_v37 = vpack.c.bf16 %v2009_v31, %v2006_v16  ;;  %v2011_v56 = vpop.f32.mrb[59].mxu1  ;;  %v8830_v31 = vld [vmem:[%s10979_s2 + $0x2a4] ss:$8 sps:$4 sm:$0xff]  }
 0x2ed   : > { %2221 = vmatmul.mubr.bf16.gmra.mrb[164].mxu1 %v8802_v30  ;;  %7877 = vmatprep.mubr.msk.bf16.mxu0 %vm697_vm1, %v2475_v37 }
 0x2ee   : > { %2228 = vmatprep.mubr.bf16.mxu1 %v8803_v36 }
 0x2f0   : > { %v2014_v54 = vpop.f32.mrb[60].mxu1 }
 0x2f1   : > { %v2016_v26 = vpop.f32.mrb[61].mxu1 }
 0x2f2   : > { %v2017_v38 = vpop.f32.mrb[62].mxu1  ;;  %v8832_v26 = vld [vmem:[%s10979_s2 + $0x2a0] ss:$8 sps:$4 sm:$0xff]  }
 0x2f3   : > { %v2476_v41 = vpack.c.bf16 %v2017_v38, %v2014_v54  ;;  %v2019_v39 = vpop.f32.mrb[63].mxu1  ;;  %v8833_v38 = vld [vmem:[%s10979_s2 + $0x2b4] ss:$8 sps:$4 sm:$0xff]  }
 0x2f5   : > { %2229 = vmatmul.mubr.bf16.gmra.mrb[168].mxu1 %v8805_v1  ;;  %7878 = vmatmul.mubr.msk.bf16.gmra.mrb[4].mxu0 %vm697_vm1, %v2476_v41 }
 0x2f6   : > { %7883 = vmatprep.mubr.msk.bf16.mxu0 %vm697_vm1, %v2469_v11  ;;  %2236 = vmatprep.mubr.bf16.mxu1 %v8807_v32 }
 0x2f8   : > { %v2022_v21 = vpop.f32.mrb[64].mxu1 }
 0x2f9   : > { %v2024_v18 = vpop.f32.mrb[65].mxu1 }
 0x2fa   : > { %v2025_v42 = vpop.f32.mrb[66].mxu1  ;;  %v8835_v18 = vld [vmem:[%s10979_s2 + $0x2b0] ss:$8 sps:$4 sm:$0xff]  }
 0x2fb   : > { %v2477_v6 = vpack.c.bf16 %v2025_v42, %v2022_v21  ;;  %v2027_v45 = vpop.f32.mrb[67].mxu1  ;;  %v8837_v42 = vld [vmem:[%s10979_s2 + $0x2c4] ss:$8 sps:$4 sm:$0xff]  }
 0x2fd   : > { %2237 = vmatmul.mubr.bf16.gmra.mrb[172].mxu1 %v8809_v20  ;;  %7884 = vmatmul.mubr.msk.bf16.vlgmr.msra.gmra.mrb[0].mxu0 %vm697_vm1, %v2470_v57 }
 0x2fe   : > { %7887 = vmatprep.mubr.msk.bf16.mxu0 %vm697_vm1, %v2471_v2  ;;  %2244 = vmatprep.mubr.bf16.mxu1 %v8810_v43  ;;  %v8836_v2 = vld [vmem:[%s10980_s3 + $0x20] sm:$0xff]  }
 0x2ff   : > { %7892 = vmatpush3.bf16.msra.mxu0 %v8813_v12 }
 0x300   : > { %v2030_v27 = vpop.f32.mrb[68].mxu1  ;;  %7901 = vmatprep.subr.bf16.mxu0 %v8823_v3 }
 0x301   : > { %v2032_v11 = vpop.f32.mrb[69].mxu1 }
 0x302   : > { %v2033_v51 = vpop.f32.mrb[70].mxu1 }
 0x303   : > { %v2478_v46 = vpack.c.bf16 %v2033_v51, %v2030_v27  ;;  %v2035_v40 = vpop.f32.mrb[71].mxu1  ;;  %v8839_v27 = vld [vmem:[%s10979_s2 + $0x2c0] ss:$8 sps:$4 sm:$0xff]  }
 0x305   : > { %2245 = vmatmul.mubr.bf16.gmra.mrb[176].mxu1 %v8812_v47  ;;  %7888 = vmatmul.mubr.msk.bf16.gmra.mrb[4].mxu0 %vm697_vm1, %v2472_v23  ;;  %v8840_v47 = vld [vmem:[%s10979_s2 + $0x2d4] ss:$8 sps:$4 sm:$0xff]  }
 0x306   : > { %7893 = vmatprep.mubr.msk.bf16.mxu0 %vm697_vm1, %v2477_v6  ;;  %2252 = vmatprep.mubr.bf16.mxu1 %v8814_v61 }
 0x308   : > { %v2038_v57 = vpop.f32.mrb[72].mxu1 }
 0x309   : > { %v2040_v59 = vpop.f32.mrb[73].mxu1 }
 0x30a   : > { %v2041_v62 = vpop.f32.mrb[74].mxu1  ;;  %v8842_v59 = vld [vmem:[%s10979_s2 + $0x2d0] ss:$8 sps:$4 sm:$0xff]  }
 0x30b   : > { %v2479_v33 = vpack.c.bf16 %v2041_v62, %v2038_v57  ;;  %v2043_v63 = vpop.f32.mrb[75].mxu1  ;;  %v8843_v62 = vld [vmem:[%s10979_s2 + $0x2e4] ss:$8 sps:$4 sm:$0xff]  }
 0x30d   : > { %2253 = vmatmul.mubr.bf16.gmra.mrb[180].mxu1 %v8816_v60  ;;  %7894 = vmatmul.mubr.msk.bf16.vlgmr.msra.gmra.mrb[0].mxu0 %vm697_vm1, %v2478_v46  ;;  %v8862_v46 = vld [vmem:[%s10980_s3 + $0x30] sm:$0xff]  }
 0x30e   : > { %7897 = vmatprep.mubr.msk.bf16.mxu0 %vm697_vm1, %v2479_v33  ;;  %2260 = vmatprep.mubr.bf16.mxu1 %v8817_v0 }
 0x30f   : > { %7902 = vmatpush3.bf16.msra.mxu0 %v8823_v3 }
 0x310   : > { %v2046_v14 = vpop.f32.mrb[76].mxu1  ;;  %7911 = vmatprep.subr.bf16.mxu0 %v8836_v2 }
 0x311   : > { %v2048_v29 = vpop.f32.mrb[77].mxu1 }
 0x312   : > { %v2049_v44 = vpop.f32.mrb[78].mxu1 }
 0x313   : > { %v2480_v17 = vpack.c.bf16 %v2049_v44, %v2046_v14  ;;  %v2051_v23 = vpop.f32.mrb[79].mxu1  ;;  %v8845_v14 = vld [vmem:[%s10979_s2 + $0x2e0] ss:$8 sps:$4 sm:$0xff]  }
 0x315   : > { %2261 = vmatmul.mubr.bf16.gmra.mrb[184].mxu1 %v8819_v15  ;;  %7898 = vmatmul.mubr.msk.bf16.gmra.mrb[4].mxu0 %vm697_vm1, %v2480_v17  ;;  %v8846_v15 = vld [vmem:[%s10979_s2 + $0x2f4] ss:$8 sps:$4 sm:$0xff]  }
 0x316   : > { %2268 = vmatprep.mubr.bf16.mxu1 %v8820_v53 }
 0x318   : > { %v2054_v13 = vpop.f32.mrb[80].mxu1 }
 0x319   : > { %v2056_v4 = vpop.f32.mrb[81].mxu1 }
 0x31a   : > { %v2057_v25 = vpop.f32.mrb[82].mxu1 }
 0x31b   : > { %v2481_v8 = vpack.c.bf16 %v2057_v25, %v2054_v13  ;;  %v2059_v9 = vpop.f32.mrb[83].mxu1  ;;  %v8848_v13 = vld [vmem:[%s10979_s2 + $0x2f0] ss:$8 sps:$4 sm:$0xff]  }
 0x31d   : > { %2269 = vmatmul.mubr.bf16.gmra.mrb[188].mxu1 %v8822_v24  ;;  %7903 = vmatprep.mubr.msk.bf16.mxu0 %vm697_vm1, %v2481_v8  ;;  %v8850_v24 = vld [vmem:[%s10979_s2 + $0x304] ss:$8 sps:$4 sm:$0xff]  }
 0x31e   : > { %2276 = vmatprep.mubr.bf16.mxu1 %v8824_v7 }
 0x320   : > { %v2062_v10 = vpop.f32.mrb[84].mxu1 }
 0x321   : > { %v2064_v34 = vpop.f32.mrb[85].mxu1 }
 0x322   : > { %v2065_v52 = vpop.f32.mrb[86].mxu1 }
 0x323   : > { %v2482_v22 = vpack.c.bf16 %v2065_v52, %v2062_v10  ;;  %v2067_v35 = vpop.f32.mrb[87].mxu1  ;;  %v8852_v10 = vld [vmem:[%s10979_s2 + $0x300] ss:$8 sps:$4 sm:$0xff]  }
 0x325   : > { %2277 = vmatmul.mubr.bf16.gmra.mrb[192].mxu1 %v8826_v58  ;;  %7904 = vmatmul.mubr.msk.bf16.vlgmr.msra.gmra.mrb[0].mxu0 %vm697_vm1, %v2482_v22  ;;  %v8853_v58 = vld [vmem:[%s10979_s2 + $0x314] ss:$8 sps:$4 sm:$0xff]  }
 0x326   : > { %2284 = vmatprep.mubr.bf16.mxu1 %v8827_v28  ;;  %7912 = vmatpush3.bf16.msra.mxu0 %v8836_v2  ;;  %v8875_v22 = vld [vmem:[%s10980_s3 + $0x38] sm:$0xff]  }
 0x327   : > { %7921 = vmatprep.subr.bf16.mxu0 %v8849_v50 }
 0x328   : > { %v2070_v12 = vpop.f32.mrb[88].mxu1 }
 0x329   : > { %v2072_v16 = vpop.f32.mrb[89].mxu1 }
 0x32a   : > { %v2073_v30 = vpop.f32.mrb[90].mxu1 }
 0x32b   : > { %v2483_v36 = vpack.c.bf16 %v2073_v30, %v2070_v12  ;;  %v2075_v37 = vpop.f32.mrb[91].mxu1  ;;  %v8855_v12 = vld [vmem:[%s10979_s2 + $0x310] ss:$8 sps:$4 sm:$0xff]  }
 0x32d   : > { %2285 = vmatmul.mubr.bf16.gmra.mrb[196].mxu1 %v8829_v19  ;;  %7907 = vmatprep.mubr.msk.bf16.mxu0 %vm697_vm1, %v2483_v36  ;;  %v8856_v19 = vld [vmem:[%s10979_s2 + $0x324] ss:$8 sps:$4 sm:$0xff]  }
 0x32e   : > { %2292 = vmatprep.mubr.bf16.mxu1 %v8830_v31 }
 0x330   : > { %v2078_v56 = vpop.f32.mrb[92].mxu1 }
 0x331   : > { %v2080_v54 = vpop.f32.mrb[93].mxu1 }
 0x332   : > { %v2081_v1 = vpop.f32.mrb[94].mxu1 }
 0x333   : > { %v2484_v32 = vpack.c.bf16 %v2081_v1, %v2078_v56  ;;  %v2083_v41 = vpop.f32.mrb[95].mxu1  ;;  %v8858_v56 = vld [vmem:[%s10979_s2 + $0x320] ss:$8 sps:$4 sm:$0xff]  }
 0x335   : > { %2293 = vmatmul.mubr.bf16.gmra.mrb[200].mxu1 %v8832_v26  ;;  %7908 = vmatmul.mubr.msk.bf16.gmra.mrb[4].mxu0 %vm697_vm1, %v2484_v32  ;;  %v8859_v26 = vld [vmem:[%s10979_s2 + $0x334] ss:$8 sps:$4 sm:$0xff]  }
 0x336   : > { %2300 = vmatprep.mubr.bf16.mxu1 %v8833_v38 }
 0x338   : > { %v2086_v39 = vpop.f32.mrb[96].mxu1 }
 0x339   : > { %v2088_v21 = vpop.f32.mrb[97].mxu1 }
 0x33a   : > { %v2089_v20 = vpop.f32.mrb[98].mxu1 }
 0x33b   : > { %v2485_v43 = vpack.c.bf16 %v2089_v20, %v2086_v39  ;;  %v2091_v6 = vpop.f32.mrb[99].mxu1  ;;  %v8861_v39 = vld [vmem:[%s10979_s2 + $0x330] ss:$8 sps:$4 sm:$0xff]  }
 0x33d   : > { %2301 = vmatmul.mubr.bf16.gmra.mrb[204].mxu1 %v8835_v18  ;;  %7913 = vmatprep.mubr.msk.bf16.mxu0 %vm697_vm1, %v2485_v43  ;;  %v8863_v18 = vld [vmem:[%s10979_s2 + $0x344] ss:$8 sps:$4 sm:$0xff]  }
 0x33e   : > { %2308 = vmatprep.mubr.bf16.mxu1 %v8837_v42 }
 0x340   : > { %v2094_v45 = vpop.f32.mrb[100].mxu1 }
 0x341   : > { %v2096_v3 = vpop.f32.mrb[101].mxu1 }
 0x342   : > { %v2097_v11 = vpop.f32.mrb[102].mxu1 }
 0x343   : > { %v2486_v51 = vpack.c.bf16 %v2097_v11, %v2094_v45  ;;  %v2099_v61 = vpop.f32.mrb[103].mxu1  ;;  %v8865_v45 = vld [vmem:[%s10979_s2 + $0x340] ss:$8 sps:$4 sm:$0xff]  }
 0x345   : > { %2309 = vmatmul.mubr.bf16.gmra.mrb[208].mxu1 %v8839_v27  ;;  %7914 = vmatmul.mubr.msk.bf16.vlgmr.msra.gmra.mrb[0].mxu0 %vm697_vm1, %v2486_v51  ;;  %v8866_v27 = vld [vmem:[%s10979_s2 + $0x354] ss:$8 sps:$4 sm:$0xff]   ;;  %v8888_v51 = vld [vmem:[%s10980_s3 + $0x40] sm:$0xff]  }
 0x346   : > { %2316 = vmatprep.mubr.bf16.mxu1 %v8840_v47  ;;  %7922 = vmatpush3.bf16.msra.mxu0 %v8849_v50 }
 0x347   : > { %7931 = vmatprep.subr.bf16.mxu0 %v8862_v46 }
 0x348   : > { %v2102_v40 = vpop.f32.mrb[104].mxu1 }
 0x349   : > { %v2104_v57 = vpop.f32.mrb[105].mxu1 }
 0x34a   : > { %v2105_v60 = vpop.f32.mrb[106].mxu1 }
 0x34b   : > { %v2487_v0 = vpack.c.bf16 %v2105_v60, %v2102_v40  ;;  %v2107_v33 = vpop.f32.mrb[107].mxu1  ;;  %v8868_v40 = vld [vmem:[%s10979_s2 + $0x350] ss:$8 sps:$4 sm:$0xff]  }
 0x34d   : > { %2317 = vmatmul.mubr.bf16.gmra.mrb[212].mxu1 %v8842_v59  ;;  %7917 = vmatprep.mubr.msk.bf16.mxu0 %vm697_vm1, %v2487_v0  ;;  %v8869_v59 = vld [vmem:[%s10979_s2 + $0x364] ss:$8 sps:$4 sm:$0xff]  }
 0x34e   : > { %2324 = vmatprep.mubr.bf16.mxu1 %v8843_v62 }
 0x350   : > { %v2110_v63 = vpop.f32.mrb[108].mxu1 }
 0x351   : > { %v2112_v2 = vpop.f32.mrb[109].mxu1 }
 0x352   : > { %v2113_v29 = vpop.f32.mrb[110].mxu1 }
 0x353   : > { %v2488_v44 = vpack.c.bf16 %v2113_v29, %v2110_v63  ;;  %v2115_v53 = vpop.f32.mrb[111].mxu1  ;;  %v8871_v63 = vld [vmem:[%s10979_s2 + $0x360] ss:$8 sps:$4 sm:$0xff]  }
 0x355   : > { %2325 = vmatmul.mubr.bf16.gmra.mrb[216].mxu1 %v8845_v14  ;;  %7918 = vmatmul.mubr.msk.bf16.gmra.mrb[4].mxu0 %vm697_vm1, %v2488_v44  ;;  %v8872_v14 = vld [vmem:[%s10979_s2 + $0x374] ss:$8 sps:$4 sm:$0xff]  }
 0x356   : > { %2332 = vmatprep.mubr.bf16.mxu1 %v8846_v15 }
 0x358   : > { %v2118_v17 = vpop.f32.mrb[112].mxu1 }
 0x359   : > { %v2120_v23 = vpop.f32.mrb[113].mxu1 }
 0x35a   : > { %v2121_v4 = vpop.f32.mrb[114].mxu1 }
 0x35b   : > { %v2489_v25 = vpack.c.bf16 %v2121_v4, %v2118_v17  ;;  %v2123_v7 = vpop.f32.mrb[115].mxu1  ;;  %v8874_v17 = vld [vmem:[%s10979_s2 + $0x370] ss:$8 sps:$4 sm:$0xff]  }
 0x35d   : > { %2333 = vmatmul.mubr.bf16.gmra.mrb[220].mxu1 %v8848_v13  ;;  %7923 = vmatprep.mubr.msk.bf16.mxu0 %vm697_vm1, %v2489_v25  ;;  %v8878_v13 = vld [vmem:[%s10979_s2 + $0x384] ss:$8 sps:$4 sm:$0xff]  }
 0x35e   : > { %2340 = vmatprep.mubr.bf16.mxu1 %v8850_v24 }
 0x360   : > { %v2126_v8 = vpop.f32.mrb[116].mxu1 }
 0x361   : > { %v2128_v9 = vpop.f32.mrb[117].mxu1 }
 0x362   : > { %v2129_v34 = vpop.f32.mrb[118].mxu1 }
 0x363   : > { %v2490_v52 = vpack.c.bf16 %v2129_v34, %v2126_v8  ;;  %v2131_v28 = vpop.f32.mrb[119].mxu1  ;;  %v8876_v8 = vld [vmem:[%s10979_s2 + $0x380] ss:$8 sps:$4 sm:$0xff]  }
 0x365   : > { %2341 = vmatmul.mubr.bf16.gmra.mrb[224].mxu1 %v8852_v10  ;;  %7924 = vmatmul.mubr.msk.bf16.vlgmr.msra.gmra.mrb[0].mxu0 %vm697_vm1, %v2490_v52  ;;  %v8881_v10 = vld [vmem:[%s10979_s2 + $0x394] ss:$8 sps:$4 sm:$0xff]   ;;  %v8901_v52 = vld [vmem:[%s10980_s3 + $0x48] sm:$0xff]  }
 0x366   : > { %2348 = vmatprep.mubr.bf16.mxu1 %v8853_v58  ;;  %7932 = vmatpush3.bf16.msra.mxu0 %v8862_v46 }
 0x367   : > { %7941 = vmatprep.subr.bf16.mxu0 %v8875_v22 }
 0x368   : > { %v2134_v35 = vpop.f32.mrb[120].mxu1 }
 0x369   : > { %v2136_v50 = vpop.f32.mrb[121].mxu1 }
 0x36a   : > { %v2137_v16 = vpop.f32.mrb[122].mxu1 }
 0x36b   : > { %v2491_v30 = vpack.c.bf16 %v2137_v16, %v2134_v35  ;;  %v2139_v31 = vpop.f32.mrb[123].mxu1  ;;  %v8879_v35 = vld [vmem:[%s10979_s2 + $0x390] ss:$8 sps:$4 sm:$0xff]  }
 0x36d   : > { %2349 = vmatmul.mubr.bf16.gmra.mrb[228].mxu1 %v8855_v12  ;;  %7927 = vmatprep.mubr.msk.bf16.mxu0 %vm697_vm1, %v2491_v30  ;;  %v8884_v12 = vld [vmem:[%s10979_s2 + $0x3a4] ss:$8 sps:$4 sm:$0xff]  }
 0x36e   : > { %2356 = vmatprep.mubr.bf16.mxu1 %v8856_v19 }
 0x370   : > { %v2142_v36 = vpop.f32.mrb[124].mxu1 }
 0x371   : > { %v2144_v37 = vpop.f32.mrb[125].mxu1 }
 0x372   : > { %v2145_v54 = vpop.f32.mrb[126].mxu1 }
 0x373   : > { %v2492_v1 = vpack.c.bf16 %v2145_v54, %v2142_v36  ;;  %v2147_v38 = vpop.f32.mrb[127].mxu1  ;;  %v8882_v36 = vld [vmem:[%s10979_s2 + $0x3a0] ss:$8 sps:$4 sm:$0xff]  }
 0x375   : > { %2357 = vmatmul.mubr.bf16.gmra.mrb[232].mxu1 %v8858_v56  ;;  %7928 = vmatmul.mubr.msk.bf16.gmra.mrb[4].mxu0 %vm697_vm1, %v2492_v1  ;;  %v8887_v56 = vld [vmem:[%s10979_s2 + $0x3b4] ss:$8 sps:$4 sm:$0xff]  }
 0x376   : > { %2364 = vmatprep.mubr.bf16.mxu1 %v8859_v26 }
 0x378   : > { %v2150_v32 = vpop.f32.mrb[128].mxu1 }
 0x379   : > { %v2152_v41 = vpop.f32.mrb[129].mxu1 }
 0x37a   : > { %v2153_v21 = vpop.f32.mrb[130].mxu1 }
 0x37b   : > { %v2493_v20 = vpack.c.bf16 %v2153_v21, %v2150_v32  ;;  %v2155_v42 = vpop.f32.mrb[131].mxu1  ;;  %v8885_v32 = vld [vmem:[%s10979_s2 + $0x3b0] ss:$8 sps:$4 sm:$0xff]  }
 0x37d   : > { %2365 = vmatmul.mubr.bf16.gmra.mrb[236].mxu1 %v8861_v39  ;;  %7933 = vmatprep.mubr.msk.bf16.mxu0 %vm697_vm1, %v2493_v20  ;;  %v8891_v39 = vld [vmem:[%s10979_s2 + $0x3c4] ss:$8 sps:$4 sm:$0xff]  }
 0x37e   : > { %2372 = vmatprep.mubr.bf16.mxu1 %v8863_v18 }
 0x380   : > { %v2158_v43 = vpop.f32.mrb[132].mxu1 }
 0x381   : > { %v2160_v6 = vpop.f32.mrb[133].mxu1 }
 0x382   : > { %v2161_v3 = vpop.f32.mrb[134].mxu1 }
 0x383   : > { %v2494_v11 = vpack.c.bf16 %v2161_v3, %v2158_v43  ;;  %v2163_v47 = vpop.f32.mrb[135].mxu1  ;;  %v8889_v43 = vld [vmem:[%s10979_s2 + $0x3c0] ss:$8 sps:$4 sm:$0xff]  }
 0x385   : > { %2373 = vmatmul.mubr.bf16.gmra.mrb[240].mxu1 %v8865_v45  ;;  %7934 = vmatmul.mubr.msk.bf16.vlgmr.msra.gmra.mrb[0].mxu0 %vm697_vm1, %v2494_v11  ;;  %v8894_v45 = vld [vmem:[%s10979_s2 + $0x3d4] ss:$8 sps:$4 sm:$0xff]  }
 0x386   : > { %2380 = vmatprep.mubr.bf16.mxu1 %v8866_v27  ;;  %7942 = vmatpush3.bf16.msra.mxu0 %v8875_v22  ;;  %v8902_v11 = vld [vmem:[%s10980_s3 + $0x50] sm:$0xff]  }
 0x387   : > { %7951 = vmatprep.subr.bf16.mxu0 %v8888_v51 }
 0x388   : > { %v2166_v61 = vpop.f32.mrb[136].mxu1 }
 0x389   : > { %v2168_v46 = vpop.f32.mrb[137].mxu1 }
 0x38a   : > { %v2169_v57 = vpop.f32.mrb[138].mxu1 }
 0x38b   : > { %v2495_v60 = vpack.c.bf16 %v2169_v57, %v2166_v61  ;;  %v2171_v62 = vpop.f32.mrb[139].mxu1  ;;  %v8892_v61 = vld [vmem:[%s10979_s2 + $0x3d0] ss:$8 sps:$4 sm:$0xff]  }
 0x38d   : > { %2381 = vmatmul.mubr.bf16.gmra.mrb[244].mxu1 %v8868_v40  ;;  %7937 = vmatprep.mubr.msk.bf16.mxu0 %vm697_vm1, %v2495_v60  ;;  %v8897_v40 = vld [vmem:[%s10979_s2 + $0x3e4] ss:$8 sps:$4 sm:$0xff]  }
 0x38e   : > { %2388 = vmatprep.mubr.bf16.mxu1 %v8869_v59 }
 0x390   : > { %v2174_v0 = vpop.f32.mrb[140].mxu1 }
 0x391   : > { %v2176_v33 = vpop.f32.mrb[141].mxu1 }
 0x392   : > { %v2177_v2 = vpop.f32.mrb[142].mxu1 }
 0x393   : > { %v2496_v29 = vpack.c.bf16 %v2177_v2, %v2174_v0  ;;  %v2179_v15 = vpop.f32.mrb[143].mxu1  ;;  %v8895_v0 = vld [vmem:[%s10979_s2 + $0x3e0] ss:$8 sps:$4 sm:$0xff]  }
 0x395   : > { %2389 = vmatmul.mubr.bf16.gmra.mrb[248].mxu1 %v8871_v63  ;;  %7938 = vmatmul.mubr.msk.bf16.gmra.mrb[4].mxu0 %vm697_vm1, %v2496_v29  ;;  %v8900_v63 = vld [vmem:[%s10979_s2 + $0x3f4] ss:$8 sps:$4 sm:$0xff]  }
 0x396   : > { %2396 = vmatprep.mubr.bf16.mxu1 %v8872_v14 }
 0x398   : > { %v2182_v44 = vpop.f32.mrb[144].mxu1 }
 0x399   : > { %v2184_v53 = vpop.f32.mrb[145].mxu1 }
 0x39a   : > { %v2185_v23 = vpop.f32.mrb[146].mxu1 }
 0x39b   : > { %v2497_v4 = vpack.c.bf16 %v2185_v23, %v2182_v44  ;;  %v2187_v24 = vpop.f32.mrb[147].mxu1  ;;  %v8898_v44 = vld [vmem:[%s10979_s2 + $0x3f0] ss:$8 sps:$4 sm:$0xff]  }
 0x39d   : > { %2397 = vmatmul.mubr.bf16.gmra.mrb[252].mxu1 %v8874_v17  ;;  %7943 = vmatprep.mubr.msk.bf16.mxu0 %vm697_vm1, %v2497_v4 }
 0x39e   : > { %2404 = vmatprep.mubr.bf16.mxu1 %v8878_v13 }
 0x3a0   : > { %v2190_v25 = vpop.f32.mrb[148].mxu1 }
 0x3a1   : > { %v2192_v7 = vpop.f32.mrb[149].mxu1 }
 0x3a2   : > { %v2193_v9 = vpop.f32.mrb[150].mxu1 }
 0x3a3   : > { %v2498_v34 = vpack.c.bf16 %v2193_v9, %v2190_v25  ;;  %v2195_v58 = vpop.f32.mrb[151].mxu1 }
 0x3a5   : > { %2405 = vmatmul.mubr.bf16.gmra.mrb[0].mxu1 %v8876_v8  ;;  %7944 = vmatmul.mubr.msk.bf16.vlgmr.msra.gmra.mrb[0].mxu0 %vm697_vm1, %v2498_v34  ;;  %v8903_v8 = vld [vmem:[%s10980_s3 + $0x58] sm:$0xff]  }
 0x3a6   : > { %2412 = vmatprep.mubr.bf16.mxu1 %v8881_v10  ;;  %7952 = vmatpush3.bf16.msra.mxu0 %v8888_v51 }
 0x3a7   : > { %7961 = vmatprep.subr.bf16.mxu0 %v8901_v52 }
 0x3a8   : > { %v2198_v28 = vpop.f32.mrb[152].mxu1 }
 0x3a9   : > { %v2200_v22 = vpop.f32.mrb[153].mxu1 }
 0x3aa   : > { %v2201_v50 = vpop.f32.mrb[154].mxu1 }
 0x3ab   : > { %v2499_v16 = vpack.c.bf16 %v2201_v50, %v2198_v28  ;;  %v2203_v19 = vpop.f32.mrb[155].mxu1 }
 0x3ad   : > { %2413 = vmatmul.mubr.bf16.gmra.mrb[4].mxu1 %v8879_v35  ;;  %7947 = vmatprep.mubr.msk.bf16.mxu0 %vm697_vm1, %v2499_v16 }
 0x3ae   : > { %2420 = vmatprep.mubr.bf16.mxu1 %v8884_v12 }
 0x3b0   : > { %v2206_v30 = vpop.f32.mrb[156].mxu1 }
 0x3b1   : > { %v2208_v31 = vpop.f32.mrb[157].mxu1 }
 0x3b2   : > { %v2209_v37 = vpop.f32.mrb[158].mxu1 }
 0x3b3   : > { %v2500_v54 = vpack.c.bf16 %v2209_v37, %v2206_v30  ;;  %v2211_v26 = vpop.f32.mrb[159].mxu1 }
 0x3b5   : > { %2421 = vmatmul.mubr.bf16.gmra.mrb[8].mxu1 %v8882_v36  ;;  %7948 = vmatmul.mubr.msk.bf16.gmra.mrb[4].mxu0 %vm697_vm1, %v2500_v54 }
 0x3b6   : > { %2428 = vmatprep.mubr.bf16.mxu1 %v8887_v56 }
 0x3b8   : > { %v2214_v1 = vpop.f32.mrb[160].mxu1 }
 0x3b9   : > { %v2216_v38 = vpop.f32.mrb[161].mxu1 }
 0x3ba   : > { %v2217_v41 = vpop.f32.mrb[162].mxu1  ;;  %v8904_v38 = vld [vmem:[%s10980_s3 + $0x60] sm:$0xff]  }
 0x3bb   : > { %v2501_v21 = vpack.c.bf16 %v2217_v41, %v2214_v1  ;;  %v2219_v18 = vpop.f32.mrb[163].mxu1 }
 0x3bd   : > { %2429 = vmatmul.mubr.bf16.gmra.mrb[12].mxu1 %v8885_v32  ;;  %7953 = vmatprep.mubr.msk.bf16.mxu0 %vm697_vm1, %v2501_v21 }
 0x3be   : > { %2436 = vmatprep.mubr.bf16.mxu1 %v8891_v39 }
 0x3c0   : > { %v2222_v20 = vpop.f32.mrb[164].mxu1 }
 0x3c1   : > { %v2224_v42 = vpop.f32.mrb[165].mxu1 }
 0x3c2   : > { %v2225_v6 = vpop.f32.mrb[166].mxu1 }
 0x3c3   : > { %v2502_v3 = vpack.c.bf16 %v2225_v6, %v2222_v20  ;;  %v2227_v27 = vpop.f32.mrb[167].mxu1 }
 0x3c5   : > { %2437 = vmatmul.mubr.bf16.gmra.mrb[16].mxu1 %v8889_v43  ;;  %7954 = vmatmul.mubr.msk.bf16.vlgmr.msra.gmra.mrb[0].mxu0 %vm697_vm1, %v2502_v3 }
 0x3c6   : > { %2444 = vmatprep.mubr.bf16.mxu1 %v8894_v45  ;;  %7962 = vmatpush3.bf16.msra.mxu0 %v8901_v52 }
 0x3c7   : > { %7971 = vmatprep.subr.bf16.mxu0 %v8902_v11 }
 0x3c8   : > { %v2230_v47 = vpop.f32.mrb[168].mxu1 }
 0x3c9   : > { %v2232_v51 = vpop.f32.mrb[169].mxu1 }
 0x3ca   : > { %v2233_v46 = vpop.f32.mrb[170].mxu1 }
 0x3cb   : > { %v2503_v57 = vpack.c.bf16 %v2233_v46, %v2230_v47  ;;  %v2235_v59 = vpop.f32.mrb[171].mxu1 }
 0x3cd   : > { %2445 = vmatmul.mubr.bf16.gmra.mrb[20].mxu1 %v8892_v61  ;;  %7957 = vmatprep.mubr.msk.bf16.mxu0 %vm697_vm1, %v2503_v57 }
 0x3ce   : > { %2452 = vmatprep.mubr.bf16.mxu1 %v8897_v40 }
 0x3d0   : > { %v2238_v60 = vpop.f32.mrb[172].mxu1 }
 0x3d1   : > { %v2240_v62 = vpop.f32.mrb[173].mxu1 }
 0x3d2   : > { %v2241_v33 = vpop.f32.mrb[174].mxu1 }
 0x3d3   : > { %v2504_v2 = vpack.c.bf16 %v2241_v33, %v2238_v60  ;;  %v2243_v14 = vpop.f32.mrb[175].mxu1  ;;  %v8905_v60 = vld [vmem:[%s10980_s3 + $0x68] sm:$0xff]  }
 0x3d5   : > { %2453 = vmatmul.mubr.bf16.gmra.mrb[24].mxu1 %v8895_v0  ;;  %7958 = vmatmul.mubr.msk.bf16.gmra.mrb[4].mxu0 %vm697_vm1, %v2504_v2 }
 0x3d6   : > { %2460 = vmatprep.mubr.bf16.mxu1 %v8900_v63 }
 0x3d8   : > { %v2246_v29 = vpop.f32.mrb[176].mxu1 }
 0x3d9   : > { %v2248_v15 = vpop.f32.mrb[177].mxu1 }
 0x3da   : > { %v2249_v53 = vpop.f32.mrb[178].mxu1 }
 0x3db   : > { %v2505_v17 = vpack.c.bf16 %v2249_v53, %v2246_v29  ;;  %v2251_v23 = vpop.f32.mrb[179].mxu1 }
 0x3dd   : > { %2461 = vmatmul.mubr.bf16.gmra.mrb[28].mxu1 %v8898_v44  ;;  %7963 = vmatprep.mubr.msk.bf16.mxu0 %vm697_vm1, %v2505_v17 }
 0x3e0   : > { %v2254_v13 = vpop.f32.mrb[180].mxu1 }
 0x3e1   : > { %v2256_v4 = vpop.f32.mrb[181].mxu1 }
 0x3e2   : > { %v2257_v24 = vpop.f32.mrb[182].mxu1 }
 0x3e3   : > { %v2506_v25 = vpack.c.bf16 %v2257_v24, %v2254_v13  ;;  %v2259_v7 = vpop.f32.mrb[183].mxu1 }
 0x3e5   : > { %7964 = vmatmul.mubr.msk.bf16.vlgmr.msra.gmra.mrb[0].mxu0 %vm697_vm1, %v2506_v25 }
 0x3e6   : > { %7972 = vmatpush3.bf16.msra.mxu0 %v8902_v11 }
 0x3e7   : > { %7981 = vmatprep.subr.bf16.mxu0 %v8903_v8 }
 0x3e8   : > { %v2262_v9 = vpop.f32.mrb[184].mxu1 }
 0x3e9   : > { %v2264_v10 = vpop.f32.mrb[185].mxu1 }
 0x3ea   : > { %v2265_v34 = vpop.f32.mrb[186].mxu1 }
 0x3eb   : > { %v2507_v58 = vpack.c.bf16 %v2265_v34, %v2262_v9  ;;  %v2267_v52 = vpop.f32.mrb[187].mxu1  ;;  %v8906_v34 = vld [vmem:[%s10980_s3 + $0x70] sm:$0xff]  }
 0x3ed   : > { %7967 = vmatprep.mubr.msk.bf16.mxu0 %vm697_vm1, %v2507_v58 }
 0x3f0   : > { %v2270_v28 = vpop.f32.mrb[188].mxu1 }
 0x3f1   : > { %v2272_v22 = vpop.f32.mrb[189].mxu1 }
 0x3f2   : > { %v2273_v35 = vpop.f32.mrb[190].mxu1 }
 0x3f3   : > { %v2508_v50 = vpack.c.bf16 %v2273_v35, %v2270_v28  ;;  %v2275_v12 = vpop.f32.mrb[191].mxu1 }
 0x3f5   : > { %7968 = vmatmul.mubr.msk.bf16.gmra.mrb[4].mxu0 %vm697_vm1, %v2508_v50 }
 0x3f8   : > { %v2278_v16 = vpop.f32.mrb[192].mxu1 }
 0x3f9   : > { %v2280_v19 = vpop.f32.mrb[193].mxu1 }
 0x3fa   : > { %v2281_v30 = vpop.f32.mrb[194].mxu1 }
 0x3fb   : > { %v2509_v31 = vpack.c.bf16 %v2281_v30, %v2278_v16  ;;  %v2283_v36 = vpop.f32.mrb[195].mxu1 }
 0x3fd   : > { %7973 = vmatprep.mubr.msk.bf16.mxu0 %vm697_vm1, %v2509_v31 }
 0x400   : > { %v2286_v37 = vpop.f32.mrb[196].mxu1 }
 0x401   : > { %v2288_v56 = vpop.f32.mrb[197].mxu1 }
 0x402   : > { %v2289_v54 = vpop.f32.mrb[198].mxu1 }
 0x403   : > { %v2510_v26 = vpack.c.bf16 %v2289_v54, %v2286_v37  ;;  %v2291_v1 = vpop.f32.mrb[199].mxu1 }
 0x405   : > { %7974 = vmatmul.mubr.msk.bf16.vlgmr.msra.gmra.mrb[0].mxu0 %vm697_vm1, %v2510_v26 }
 0x406   : > { %7982 = vmatpush3.bf16.msra.mxu0 %v8903_v8 }
 0x407   : > { %7991 = vmatprep.subr.bf16.mxu0 %v8904_v38 }
 0x408   : > { %v2294_v32 = vpop.f32.mrb[200].mxu1 }
 0x409   : > { %v2296_v41 = vpop.f32.mrb[201].mxu1 }
 0x40a   : > { %v2297_v39 = vpop.f32.mrb[202].mxu1 }
 0x40b   : > { %v2511_v21 = vpack.c.bf16 %v2297_v39, %v2294_v32  ;;  %v2299_v18 = vpop.f32.mrb[203].mxu1  ;;  %v8907_v39 = vld [vmem:[%s10980_s3 + $0x78] sm:$0xff]  }
 0x40d   : > { %7977 = vmatprep.mubr.msk.bf16.mxu0 %vm697_vm1, %v2511_v21 }
 0x410   : > { %v2302_v20 = vpop.f32.mrb[204].mxu1 }
 0x411   : > { %v2304_v42 = vpop.f32.mrb[205].mxu1 }
 0x412   : > { %v2305_v43 = vpop.f32.mrb[206].mxu1 }
 0x413   : > { %v2512_v6 = vpack.c.bf16 %v2305_v43, %v2302_v20  ;;  %v2307_v45 = vpop.f32.mrb[207].mxu1 }
 0x415   : > { %7978 = vmatmul.mubr.msk.bf16.gmra.mrb[4].mxu0 %vm697_vm1, %v2512_v6 }
 0x418   : > { %v2310_v3 = vpop.f32.mrb[208].mxu1 }
 0x419   : > { %v2312_v27 = vpop.f32.mrb[209].mxu1 }
 0x41a   : > { %v2313_v11 = vpop.f32.mrb[210].mxu1 }
 0x41b   : > { %v2513_v47 = vpack.c.bf16 %v2313_v11, %v2310_v3  ;;  %v2315_v51 = vpop.f32.mrb[211].mxu1 }
 0x41d   : > { %7983 = vmatprep.mubr.msk.bf16.mxu0 %vm697_vm1, %v2513_v47 }
 0x420   : > { %v2318_v61 = vpop.f32.mrb[212].mxu1 }
 0x421   : > { %v2320_v46 = vpop.f32.mrb[213].mxu1 }
 0x422   : > { %v2321_v40 = vpop.f32.mrb[214].mxu1 }
 0x423   : > { %v2514_v57 = vpack.c.bf16 %v2321_v40, %v2318_v61  ;;  %v2323_v59 = vpop.f32.mrb[215].mxu1 }
 0x425   : > { %7984 = vmatmul.mubr.msk.bf16.vlgmr.msra.gmra.mrb[0].mxu0 %vm697_vm1, %v2514_v57 }
 0x426   : > { %7992 = vmatpush3.bf16.msra.mxu0 %v8904_v38 }
 0x427   : > { %8001 = vmatprep.subr.bf16.mxu0 %v8905_v60 }
 0x428   : > { %v2326_v62 = vpop.f32.mrb[216].mxu1 }
 0x429   : > { %v2328_v0 = vpop.f32.mrb[217].mxu1 }
 0x42a   : > { %v2329_v33 = vpop.f32.mrb[218].mxu1 }
 0x42b   : > { %v2515_v63 = vpack.c.bf16 %v2329_v33, %v2326_v62  ;;  %v2331_v2 = vpop.f32.mrb[219].mxu1 }
 0x42d   : > { %7987 = vmatprep.mubr.msk.bf16.mxu0 %vm697_vm1, %v2515_v63 }
 0x430   : > { %v2334_v14 = vpop.f32.mrb[220].mxu1 }
 0x431   : > { %v2336_v29 = vpop.f32.mrb[221].mxu1 }
 0x432   : > { %v2337_v15 = vpop.f32.mrb[222].mxu1 }
 0x433   : > { %v2516_v44 = vpack.c.bf16 %v2337_v15, %v2334_v14  ;;  %v2339_v53 = vpop.f32.mrb[223].mxu1 }
 0x435   : > { %7988 = vmatmul.mubr.msk.bf16.gmra.mrb[4].mxu0 %vm697_vm1, %v2516_v44 }
 0x438   : > { %v2342_v17 = vpop.f32.mrb[224].mxu1 }
 0x439   : > { %v2344_v23 = vpop.f32.mrb[225].mxu1 }
 0x43a   : > { %v2345_v13 = vpop.f32.mrb[226].mxu1 }
 0x43b   : > { %v2517_v4 = vpack.c.bf16 %v2345_v13, %v2342_v17  ;;  %v2347_v24 = vpop.f32.mrb[227].mxu1 }
 0x43d   : > { %7993 = vmatprep.mubr.msk.bf16.mxu0 %vm697_vm1, %v2517_v4 }
 0x440   : > { %v2350_v25 = vpop.f32.mrb[228].mxu1 }
 0x441   : > { %v2352_v7 = vpop.f32.mrb[229].mxu1 }
 0x442   : > { %v2353_v8 = vpop.f32.mrb[230].mxu1 }
 0x443   : > { %v2518_v9 = vpack.c.bf16 %v2353_v8, %v2350_v25  ;;  %v2355_v10 = vpop.f32.mrb[231].mxu1 }
 0x445   : > { %7994 = vmatmul.mubr.msk.bf16.vlgmr.msra.gmra.mrb[0].mxu0 %vm697_vm1, %v2518_v9 }
 0x446   : > { %8002 = vmatpush3.bf16.msra.mxu0 %v8905_v60 }
 0x447   : > { %8011 = vmatprep.subr.bf16.mxu0 %v8906_v34 }
 0x448   : > { %v2358_v58 = vpop.f32.mrb[232].mxu1 }
 0x449   : > { %v2360_v52 = vpop.f32.mrb[233].mxu1 }
 0x44a   : > { %v2361_v28 = vpop.f32.mrb[234].mxu1 }
 0x44b   : > { %v2519_v22 = vpack.c.bf16 %v2361_v28, %v2358_v58  ;;  %v2363_v35 = vpop.f32.mrb[235].mxu1 }
 0x44d   : > { %7997 = vmatprep.mubr.msk.bf16.mxu0 %vm697_vm1, %v2519_v22 }
 0x450   : > { %v2366_v50 = vpop.f32.mrb[236].mxu1 }
 0x451   : > { %v2368_v12 = vpop.f32.mrb[237].mxu1 }
 0x452   : > { %v2369_v16 = vpop.f32.mrb[238].mxu1 }
 0x453   : > { %v2520_v19 = vpack.c.bf16 %v2369_v16, %v2366_v50  ;;  %v2371_v30 = vpop.f32.mrb[239].mxu1 }
 0x455   : > { %7998 = vmatmul.mubr.msk.bf16.gmra.mrb[4].mxu0 %vm697_vm1, %v2520_v19 }
 0x458   : > { %v2374_v31 = vpop.f32.mrb[240].mxu1 }
 0x459   : > { %v2376_v36 = vpop.f32.mrb[241].mxu1 }
 0x45a   : > { %v2377_v37 = vpop.f32.mrb[242].mxu1  ;;  %v8908_v36 = vld [vmem:[%s10981_s4] sm:$0xff]  }
 0x45b   : > { %v2521_v56 = vpack.c.bf16 %v2377_v37, %v2374_v31  ;;  %v2379_v54 = vpop.f32.mrb[243].mxu1  ;;  %8039 = vmatprep.mubr.msk.bf16.mxu1 %vm4275_vm6, %v8908_v36 }
 0x45d   : > { %8003 = vmatprep.mubr.msk.bf16.mxu0 %vm697_vm1, %v2521_v56 }
 0x460   : > { %v2382_v26 = vpop.f32.mrb[244].mxu1 }
 0x461   : > { %v2384_v1 = vpop.f32.mrb[245].mxu1 }
 0x462   : > { %v2385_v38 = vpop.f32.mrb[246].mxu1 }
 0x463   : > { %v2522_v32 = vpack.c.bf16 %v2385_v38, %v2382_v26  ;;  %v2387_v41 = vpop.f32.mrb[247].mxu1 }
 0x465   : > { %8004 = vmatmul.mubr.msk.bf16.vlgmr.msra.gmra.mrb[0].mxu0 %vm697_vm1, %v2522_v32 }
 0x466   : > { %8012 = vmatpush3.bf16.msra.mxu0 %v8906_v34 }
 0x467   : > { %8021 = vmatprep.subr.bf16.mxu0 %v8907_v39 }
 0x468   : > { %v2390_v21 = vpop.f32.mrb[248].mxu1 }
 0x469   : > { %v2392_v18 = vpop.f32.mrb[249].mxu1 }
 0x46a   : > { %v2393_v20 = vpop.f32.mrb[250].mxu1 }
 0x46b   : > { %v2523_v42 = vpack.c.bf16 %v2393_v20, %v2390_v21  ;;  %v2395_v43 = vpop.f32.mrb[251].mxu1 }
 0x46d   : > { %8007 = vmatprep.mubr.msk.bf16.mxu0 %vm697_vm1, %v2523_v42 }
 0x470   : > { %v2398_v6 = vpop.f32.mrb[252].mxu1 }
 0x471   : > { %v2400_v45 = vpop.f32.mrb[253].mxu1 }
 0x472   : > { %v2401_v3 = vpop.f32.mrb[254].mxu1 }
 0x473   : > { %v2524_v27 = vpack.c.bf16 %v2401_v3, %v2398_v6  ;;  %v2403_v11 = vpop.f32.mrb[255].mxu1 }
 0x475   : > { %8008 = vmatmul.mubr.msk.bf16.gmra.mrb[4].mxu0 %vm697_vm1, %v2524_v27 }
 0x478   : > { %v2406_v47 = vpop.f32.mrb[0].mxu1 }
 0x479   : > { %v2408_v51 = vpop.f32.mrb[1].mxu1 }
 0x47a   : > { %v2409_v61 = vpop.f32.mrb[2].mxu1 }
 0x47b   : > { %v2525_v46 = vpack.c.bf16 %v2409_v61, %v2406_v47  ;;  %v2411_v40 = vpop.f32.mrb[3].mxu1 }
 0x47d   : > { %8013 = vmatprep.mubr.msk.bf16.mxu0 %vm697_vm1, %v2525_v46 }
 0x480   : > { %v2414_v57 = vpop.f32.mrb[4].mxu1 }
 0x481   : > { %v2416_v59 = vpop.f32.mrb[5].mxu1 }
 0x482   : > { %v2417_v60 = vpop.f32.mrb[6].mxu1 }
 0x483   : > { %v2526_v62 = vpack.c.bf16 %v2417_v60, %v2414_v57  ;;  %v2419_v0 = vpop.f32.mrb[7].mxu1 }
 0x485   : > { %8014 = vmatmul.mubr.msk.bf16.vlgmr.msra.gmra.mrb[0].mxu0 %vm697_vm1, %v2526_v62 }
 0x486   : > { %8022 = vmatpush3.bf16.msra.mxu0 %v8907_v39 }
 0x488   : > { %v2422_v33 = vpop.f32.mrb[8].mxu1 }
 0x489   : > { %v2424_v63 = vpop.f32.mrb[9].mxu1 }
 0x48a   : > { %v2425_v2 = vpop.f32.mrb[10].mxu1 }
 0x48b   : > { %v2527_v14 = vpack.c.bf16 %v2425_v2, %v2422_v33  ;;  %v2427_v29 = vpop.f32.mrb[11].mxu1 }
 0x48d   : > { %8017 = vmatprep.mubr.msk.bf16.mxu0 %vm697_vm1, %v2527_v14 }
 0x490   : > { %v2430_v15 = vpop.f32.mrb[12].mxu1 }
 0x491   : > { %v2432_v44 = vpop.f32.mrb[13].mxu1 }
 0x492   : > { %v2433_v53 = vpop.f32.mrb[14].mxu1 }
 0x493   : > { %v2528_v17 = vpack.c.bf16 %v2433_v53, %v2430_v15  ;;  %v2435_v23 = vpop.f32.mrb[15].mxu1 }
 0x495   : > { %8018 = vmatmul.mubr.msk.bf16.gmra.mrb[4].mxu0 %vm697_vm1, %v2528_v17 }
 0x498   : > { %v2438_v13 = vpop.f32.mrb[16].mxu1 }
 0x499   : > { %v2440_v4 = vpop.f32.mrb[17].mxu1 }
 0x49a   : > { %v2441_v24 = vpop.f32.mrb[18].mxu1 }
 0x49b   : > { %v2529_v25 = vpack.c.bf16 %v2441_v24, %v2438_v13  ;;  %v2443_v7 = vpop.f32.mrb[19].mxu1 }
 0x49d   : > { %8023 = vmatprep.mubr.msk.bf16.mxu0 %vm697_vm1, %v2529_v25 }
 0x4a0   : > { %v2446_v8 = vpop.f32.mrb[20].mxu1 }
 0x4a1   : > { %v2448_v9 = vpop.f32.mrb[21].mxu1 }
 0x4a2   : > { %v2449_v10 = vpop.f32.mrb[22].mxu1 }
 0x4a3   : > { %v2530_v34 = vpack.c.bf16 %v2449_v10, %v2446_v8  ;;  %v2451_v58 = vpop.f32.mrb[23].mxu1  ;;  %v8924_v8 = vld [vmem:[%s10982_s5 + $0x10] sm:$0xff]  }
 0x4a5   : > { %8024 = vmatmul.mubr.msk.bf16.vlgmr.msra.gmra.mrb[0].mxu0 %vm697_vm1, %v2530_v34 }
 0x4a8   : > { %v2454_v52 = vpop.f32.mrb[24].mxu1 }
 0x4a9   : > { %v2456_v28 = vpop.f32.mrb[25].mxu1 }
 0x4aa   : > { %v2457_v22 = vpop.f32.mrb[26].mxu1 }
 0x4ab   : > { %v2531_v35 = vpack.c.bf16 %v2457_v22, %v2454_v52  ;;  %v2459_v50 = vpop.f32.mrb[27].mxu1  ;;  %v9058_v52 = vmov 0.0  }
 0x4ac   : > { %8071 = vmatprep.subr.bf16.mxu0 %v9058_v52 }
 0x4ad   : > { %8027 = vmatprep.mubr.msk.bf16.mxu0 %vm697_vm1, %v2531_v35  ;;  %8072 = vmatpush3.bf16.msra.mxu0 %v8924_v8 }
 0x4ae   : > { %8073 = vmatprep.subr.bf16.mxu0 %v9058_v52 }
 0x4b0   : > { %v2462_v12 = vpop.f32.mrb[28].mxu1 }
 0x4b1   : > { %v2464_v16 = vpop.f32.mrb[29].mxu1 }
 0x4b2   : > { %v2465_v19 = vpop.f32.mrb[30].mxu1 }
 0x4b3   : > { %v2532_v30 = vpack.c.bf16 %v2465_v19, %v2462_v12  ;;  %v2467_v31 = vpop.f32.mrb[31].mxu1 }
 0x4b5   : > { %8028 = vmatmul.mubr.msk.bf16.gmra.mrb[4].mxu0 %vm697_vm1, %v2532_v30 }
 0x4b6   : > { %8075 = vmatprep.mubr.msk.bf16.mxu0 %vm9059_vm15, %v9058_v52 }
 0x578   : > { %v8025_v37 = vpop.f32.mrb[0].mxu0 }
 0x579   : > { %v3934_v56 = vpop.f32.mrb[1].mxu0  ;;  %v3976_v41 = vsel %vm487_vm0, %v8025_v37, 0.0 }
 0x57a   : > { %v8026_v54 = vpop.f32.mrb[2].mxu0  ;;  %v3973_v1 = vsel %vm487_vm0, %v3934_v56, 0.0 }
 0x57b   : > { %v3937_v26 = vpop.f32.mrb[3].mxu0  ;;  %v3978_v21 = vsel %vm487_vm0, %v8026_v54, 0.0 }
 0x57c   : > { %v3974_v38 = vsel %vm487_vm0, %v3937_v26, 0.0 }
 0x57d   : > { %v3975_v32 = vadd.f32 %v3974_v38, %v3973_v1 }
 0x57f   : > { %v3977_v39 = vadd.f32 %v3976_v41, %v3975_v32 }
 0x581   : > { %v3979_v18 = vadd.f32 %v3978_v21, %v3977_v39 }
 0x588   : > { %v8029_v20 = vpop.f32.mrb[4].mxu0 }
 0x589   : > { %v3950_v42 = vpop.f32.mrb[5].mxu0  ;;  %v3984_v47 = vsel %vm487_vm0, %v8029_v20, 0.0 }
 0x58a   : > { %v3980_v43 = vsel %vm487_vm0, %v3950_v42, 0.0  ;;  %v8030_v6 = vpop.f32.mrb[6].mxu0 }
 0x58b   : > { %v3981_v45 = vadd.f32 %v3980_v43, %v3979_v18  ;;  %v3953_v3 = vpop.f32.mrb[7].mxu0  ;;  %v3986_v61 = vsel %vm487_vm0, %v8030_v6, 0.0  ;;  %v4077_v43 = vsub.s32 5, %v9459_v48 }
 0x58c   : > { %v3982_v27 = vsel %vm487_vm0, %v3953_v3, 0.0 }
 0x58d   : > { %v3983_v11 = vadd.f32 %v3982_v27, %v3981_v45 }
 0x58f   : > { %v3985_v51 = vadd.f32 %v3984_v47, %v3983_v11 }
 0x591   : > { %v3987_v46 = vadd.f32 %v3986_v61, %v3985_v51 }
 0x593   : > { %v3988_v40 = vrot.slane %v3987_v46, 4 }
 0x595   : > { %v3989_v57 = vadd.f32 %v3988_v40, %v3987_v46 }
 0x597   : > { %v3990_v59 = vrot.slane %v3989_v57, 2 }
 0x599   : > { %v3991_v60 = vadd.f32 %v3990_v59, %v3989_v57 }
 0x59b   : > { %v3992_v62 = vrot.slane %v3991_v60, 1 }
 0x59d   : > { %v3993_v0 = vadd.f32 %v3992_v62, %v3991_v60 }
 0x59f   : > { %v3994_v33 = vmul.f32 0.015625, %v3993_v0 }
 0x5a1   : > { %v3995_v63 = vsub.f32 %v3934_v56, %v3994_v33  ;;  %v3996_v2 = vsub.f32 %v3937_v26, %v3994_v33  ;;  %v3997_v14 = vsub.f32 %v8025_v37, %v3994_v33  ;;  %v3998_v29 = vsub.f32 %v8026_v54, %v3994_v33 }
 0x5a2   : > { %v3999_v15 = vsub.f32 %v3950_v42, %v3994_v33  ;;  %v4000_v44 = vsub.f32 %v3953_v3, %v3994_v33  ;;  %v4001_v53 = vsub.f32 %v8029_v20, %v3994_v33  ;;  %v4002_v17 = vsub.f32 %v8030_v6, %v3994_v33  ;;  %v10220_v6 = vld [vmem:[%s10986_s9] sm:$0xff] }
 0x5a3   : > { %v4003_v23 = vmul.f32 %v3995_v63, %v3995_v63  ;;  %v4004_v13 = vmul.f32 %v3996_v2, %v3996_v2  ;;  %v4005_v4 = vmul.f32 %v3997_v14, %v3997_v14  ;;  %v4006_v24 = vmul.f32 %v3998_v29, %v3998_v29 }
 0x5a4   : > { %v4007_v10 = vmul.f32 %v3999_v15, %v3999_v15  ;;  %v4008_v28 = vmul.f32 %v4000_v44, %v4000_v44  ;;  %v4009_v50 = vmul.f32 %v4001_v53, %v4001_v53  ;;  %v4010_v19 = vmul.f32 %v4002_v17, %v4002_v17 }
 0x5a5   : > { %v4011_v25 = vsel %vm487_vm0, %v4003_v23, 0.0  ;;  %v4012_v7 = vsel %vm487_vm0, %v4004_v13, 0.0  ;;  %v4014_v34 = vsel %vm487_vm0, %v4005_v4, 0.0  ;;  %v4016_v22 = vsel %vm487_vm0, %v4006_v24, 0.0 }
 0x5a6   : > { %v4013_v9 = vadd.f32 %v4012_v7, %v4011_v25  ;;  %v4018_v12 = vsel %vm487_vm0, %v4007_v10, 0.0  ;;  %v4020_v30 = vsel %vm487_vm0, %v4008_v28, 0.0  ;;  %v4022_v36 = vsel %vm487_vm0, %v4009_v50, 0.0 }
 0x5a7   : > { %v4024_v56 = vsel %vm487_vm0, %v4010_v19, 0.0  ;;  %v4045_v20 = vsub.s32 3, %v9459_v48  ;;  %v4057_v42 = vsub.s32 4, %v9459_v48  ;;  %v4078_v11 = vrot.slane %v10220_v6, %v4077_v43  ;;  %v8917_v43 = vld [vmem:[%s10981_s4 + $0x48] sm:$0xff]  }
 0x5a8   : > { %v4015_v58 = vadd.f32 %v4014_v34, %v4013_v9 }
 0x5a9   : > { %v4046_v45 = vrot.slane %v10220_v6, %v4045_v20  ;;  %v4058_v27 = vrot.slane %v10220_v6, %v4057_v42  ;;  %v8916_v42 = vld [vmem:[%s10981_s4 + $0x40] sm:$0xff]  }
 0x5aa   : > { %v4017_v35 = vadd.f32 %v4016_v22, %v4015_v58 }
 0x5ac   : > { %v4019_v16 = vadd.f32 %v4018_v12, %v4017_v35 }
 0x5ae   : > { %v4021_v31 = vadd.f32 %v4020_v30, %v4019_v16 }
 0x5b0   : > { %v4023_v37 = vadd.f32 %v4022_v36, %v4021_v31 }
 0x5b2   : > { %v4025_v54 = vadd.f32 %v4024_v56, %v4023_v37 }
 0x5b4   : > { %v4026_v26 = vrot.slane %v4025_v54, 4 }
 0x5b6   : > { %v4027_v1 = vadd.f32 %v4026_v26, %v4025_v54 }
 0x5b8   : > { %v4028_v38 = vrot.slane %v4027_v1, 2 }
 0x5ba   : > { %v4029_v32 = vadd.f32 %v4028_v38, %v4027_v1  ;;  %v8909_v1 = vld [vmem:[%s10981_s4 + $0x8] sm:$0xff]   ;;  %v8910_v38 = vld [vmem:[%s10981_s4 + $0x10] sm:$0xff]  }
 0x5bc   : > { %v4030_v41 = vrot.slane %v4029_v32, 1 }
 0x5be   : > { %v4031_v39 = vadd.f32 %v4030_v41, %v4029_v32  ;;  %v8911_v32 = vld [vmem:[%s10981_s4 + $0x18] sm:$0xff]   ;;  %v8912_v41 = vld [vmem:[%s10981_s4 + $0x20] sm:$0xff]  }
 0x5c0   : > { %v4032_v21 = vmul.f32 0.015625, %v4031_v39  ;;  %v8913_v39 = vld [vmem:[%s10981_s4 + $0x28] sm:$0xff]  }
 0x5c2   : > { %v4033_v18 = vadd.f32 1e-05, %v4032_v21  ;;  %v8914_v21 = vld [vmem:[%s10981_s4 + $0x30] sm:$0xff]  }
 0x5c4   : > { %9038 = vrsqrt.f32 %v4033_v18  ;;  %v8915_v18 = vld [vmem:[%s10981_s4 + $0x38] sm:$0xff]  }
 0x5ce   : > { %v9039_v3 = vpop.eup %9038 }
 0x5cf   : > { %v4040_v47 = vmul.f32 %v9039_v3, %v4000_v44  ;;  %v4035_v51 = vmul.f32 %v9039_v3, %v3995_v63  ;;  %v4036_v61 = vmul.f32 %v9039_v3, %v3996_v2  ;;  %v4037_v46 = vmul.f32 %v9039_v3, %v3997_v14 }
 0x5d0   : > { %v4038_v40 = vmul.f32 %v9039_v3, %v3998_v29  ;;  %v4039_v57 = vmul.f32 %v9039_v3, %v3999_v15  ;;  %v4041_v59 = vmul.f32 %v9039_v3, %v4001_v53  ;;  %v4042_v60 = vmul.f32 %v9039_v3, %v4002_v17  ;;  %v8919_v3 = vld [vmem:[%s10981_s4 + $0x58] sm:$0xff]  }
 0x5d1   : > { %v4052_v62 = vmul.f32 %v4046_v45, %v4040_v47  ;;  %v4047_v0 = vmul.f32 %v4046_v45, %v4035_v51  ;;  %v4048_v33 = vmul.f32 %v4046_v45, %v4036_v61  ;;  %v4049_v23 = vmul.f32 %v4046_v45, %v4037_v46  ;;  %v8922_v47 = vld [vmem:[%s10981_s4 + $0x70] sm:$0xff]   ;;  %v8923_v51 = vld [vmem:[%s10981_s4 + $0x78] sm:$0xff]  }
 0x5d2   : > { %v4050_v13 = vmul.f32 %v4046_v45, %v4038_v40  ;;  %v4051_v4 = vmul.f32 %v4046_v45, %v4039_v57  ;;  %v4053_v24 = vmul.f32 %v4046_v45, %v4041_v59  ;;  %v4054_v25 = vmul.f32 %v4046_v45, %v4042_v60  ;;  %v8918_v45 = vld [vmem:[%s10981_s4 + $0x50] sm:$0xff]   ;;  %v8925_v61 = vld [vmem:[%s10982_s5 + $0x18] sm:$0xff]   ;;  %v8926_v59 = vld [vmem:[%s10982_s5] sm:$0xff]  }
 0x5d3   : > { %v4064_v7 = vadd.f32 %v4058_v27, %v4052_v62  ;;  %v4059_v8 = vadd.f32 %v4058_v27, %v4047_v0  ;;  %v4060_v9 = vadd.f32 %v4058_v27, %v4048_v33  ;;  %v4061_v10 = vadd.f32 %v4058_v27, %v4049_v23  ;;  %8074 = vmatpush3.bf16.msra.mxu0 %v8925_v61  ;;  %v8927_v33 = vld [vmem:[%s10982_s5 + $0x8] sm:$0xff]  }
 0x5d4   : > { %v4062_v44 = vadd.f32 %v4058_v27, %v4050_v13  ;;  %v4063_v63 = vadd.f32 %v4058_v27, %v4051_v4  ;;  %v4065_v2 = vadd.f32 %v4058_v27, %v4053_v24  ;;  %v4066_v14 = vadd.f32 %v4058_v27, %v4054_v25  ;;  %v8920_v27 = vld [vmem:[%s10981_s4 + $0x60] sm:$0xff]   ;;  %8079 = vmatprep.subr.bf16.mxu0 %v9058_v52 }
 0x5d5   : > { %vm4067_vm7 = vcmp.ge.f32.partialorder %v4059_v8, 0.0  ;;  %vm4068_vm8 = vcmp.ge.f32.partialorder %v4060_v9, 0.0  ;;  %v4079_v29 = vmul.f32 %v4078_v11, %v4059_v8  ;;  %v4080_v15 = vmul.f32 %v4078_v11, %v4060_v9 }
 0x5d6   : > { %vm4069_vm9 = vcmp.ge.f32.partialorder %v4061_v10, 0.0  ;;  %vm4070_vm10 = vcmp.ge.f32.partialorder %v4062_v44, 0.0  ;;  %v4081_v53 = vmul.f32 %v4078_v11, %v4061_v10  ;;  %v4082_v17 = vmul.f32 %v4078_v11, %v4062_v44 }
 0x5d7   : > { %v4087_v34 = vsel %vm4067_vm7, %v4059_v8, %v4079_v29  ;;  %v4088_v58 = vsel %vm4068_vm8, %v4060_v9, %v4080_v15  ;;  %vm4071_vm11 = vcmp.ge.f32.partialorder %v4063_v63, 0.0  ;;  %vm4072_vm12 = vcmp.ge.f32.partialorder %v4064_v7, 0.0  ;;  %v8928_v8 = vld [vmem:[%s10982_s5 + $0x20] sm:$0xff]  }
 0x5d8   : > { %v4095_v28 = vpack.c.bf16 %v4088_v58, %v4087_v34  ;;  %v4089_v22 = vsel %vm4069_vm9, %v4061_v10, %v4081_v53  ;;  %v4090_v35 = vsel %vm4070_vm10, %v4062_v44, %v4082_v17  ;;  %v4083_v50 = vmul.f32 %v4078_v11, %v4063_v63  ;;  %v8929_v44 = vld [vmem:[%s10982_s5 + $0x28] sm:$0xff]   ;;  %v8930_v17 = vld [vmem:[%s10982_s5 + $0x30] sm:$0xff]  }
 0x5d9   : > { %v4096_v12 = vpack.c.bf16 %v4090_v35, %v4089_v22  ;;  %v4084_v16 = vmul.f32 %v4078_v11, %v4064_v7  ;;  %vm4073_vm13 = vcmp.ge.f32.partialorder %v4065_v2, 0.0  ;;  %vm4074_vm14 = vcmp.ge.f32.partialorder %v4066_v14, 0.0  ;;  %v8931_v35 = vld [vmem:[%s10982_s5 + $0x38] sm:$0xff]  }
 0x5da   : > { %8031 = vmatprep.subr.bf16.mxu1 %v4095_v28  ;;  %v4091_v19 = vsel %vm4071_vm11, %v4063_v63, %v4083_v50  ;;  %v4085_v30 = vmul.f32 %v4078_v11, %v4065_v2  ;;  %v4086_v31 = vmul.f32 %v4078_v11, %v4066_v14  ;;  %v8921_v11 = vld [vmem:[%s10981_s4 + $0x68] sm:$0xff]  }
 0x5db   : > { %8032 = vmatpush3.bf16.msra.mxu1 %v4095_v28  ;;  %v4092_v36 = vsel %vm4072_vm12, %v4064_v7, %v4084_v16 }
 0x5dc   : > { %8033 = vmatprep.subr.bf16.mxu1 %v4096_v12  ;;  %v4097_v37 = vpack.c.bf16 %v4092_v36, %v4091_v19  ;;  %v4093_v56 = vsel %vm4073_vm13, %v4065_v2, %v4085_v30  ;;  %v4094_v54 = vsel %vm4074_vm14, %v4066_v14, %v4086_v31  ;;  %v8932_v36 = vld [vmem:[%s10982_s5 + $0x40] sm:$0xff]  }
 0x5dd   : > { %v4098_v26 = vpack.c.bf16 %v4094_v54, %v4093_v56  ;;  %v8933_v54 = vld [vmem:[%s10982_s5 + $0x48] sm:$0xff]  }
 0x5df   : > { %8034 = vmatpush3.bf16.msra.mxu1 %v4096_v12 }
 0x5e0   : > { %8035 = vmatprep.subr.bf16.mxu1 %v4097_v37 }
 0x5e3   : > { %8036 = vmatpush3.bf16.msra.mxu1 %v4097_v37 }
 0x5e4   : > { %8037 = vmatprep.subr.bf16.mxu1 %v4098_v26 }
 0x5e7   : > { %8038 = vmatpush3.bf16.msra.mxu1 %v4098_v26 }
 0x5e8   : > { %8409 = vmatprep.subr.bf16.mxu1 %v9058_v52 }
 0x5ea   : > { %8040 = vmatmul.mubr.msk.bf16.vlgmr.msra.gmra.mrb[32].mxu1 %vm4275_vm6, %v8909_v1 }
 0x5eb   : > { %8043 = vmatprep.mubr.msk.bf16.mxu1 %vm4275_vm6, %v8910_v38 }
 0x5f2   : > { %8044 = vmatmul.mubr.msk.bf16.gmra.mrb[36].mxu1 %vm4275_vm6, %v8911_v32 }
 0x5f3   : > { %8047 = vmatprep.mubr.msk.bf16.mxu1 %vm4275_vm6, %v8912_v41 }
 0x5fa   : > { %8048 = vmatmul.mubr.msk.bf16.gmra.mrb[40].mxu1 %vm4275_vm6, %v8913_v39 }
 0x5fb   : > { %8051 = vmatprep.mubr.msk.bf16.mxu1 %vm4275_vm6, %v8914_v21  ;;  %v8934_v21 = vld [vmem:[%s10982_s5 + $0x50] sm:$0xff]  }
 0x602   : > { %8052 = vmatmul.mubr.msk.bf16.gmra.mrb[44].mxu1 %vm4275_vm6, %v8915_v18 }
 0x603   : > { %8055 = vmatprep.mubr.msk.bf16.mxu1 %vm4275_vm6, %v8916_v42 }
 0x60a   : > { %8056 = vmatmul.mubr.msk.bf16.gmra.mrb[48].mxu1 %vm4275_vm6, %v8917_v43 }
 0x60b   : > { %8059 = vmatprep.mubr.msk.bf16.mxu1 %vm4275_vm6, %v8918_v45 }
 0x612   : > { %8060 = vmatmul.mubr.msk.bf16.gmra.mrb[52].mxu1 %vm4275_vm6, %v8919_v3  ;;  %v8935_v3 = vld [vmem:[%s10982_s5 + $0x58] sm:$0xff]  }
 0x613   : > { %8063 = vmatprep.mubr.msk.bf16.mxu1 %vm4275_vm6, %v8920_v27 }
 0x61a   : > { %8064 = vmatmul.mubr.msk.bf16.gmra.mrb[56].mxu1 %vm4275_vm6, %v8921_v11 }
 0x61b   : > { %8067 = vmatprep.mubr.msk.bf16.mxu1 %vm4275_vm6, %v8922_v47 }
 0x622   : > { %8068 = vmatmul.mubr.msk.bf16.gmra.mrb[60].mxu1 %vm4275_vm6, %v8923_v51 }
 0x623   : > { %8425 = vmatprep.mubr.msk.bf16.mxu1 %vm9059_vm15, %v9058_v52 }
 0x6bd   : > { %v8041_v46 = vpop.f32.mrb[32].mxu1 }
 0x6be   : > { %v4358_v40 = vpop.f32.mrb[33].mxu1 }
 0x6bf   : > { %v8042_v57 = vpop.f32.mrb[34].mxu1 }
 0x6c0   : > { %v4486_v60 = vpack.c.bf16 %v8042_v57, %v8041_v46  ;;  %v4361_v62 = vpop.f32.mrb[35].mxu1  ;;  %v8937_v57 = vld [vmem:[%s10982_s5 + $0x68] sm:$0xff]  }
 0x6c1   : > { %v4485_v0 = vpack.c.bf16 %v4361_v62, %v4358_v40  ;;  %v8936_v40 = vld [vmem:[%s10982_s5 + $0x60] sm:$0xff]  }
 0x6c2   : > { %8076 = vmatmul.mubr.msk.bf16.vlgmr.msra.gmra.mrb[8].mxu0 %vm487_vm0, %v4486_v60  ;;  %v8939_v60 = vld [vmem:[%s10982_s5 + $0x78] sm:$0xff]   ;;  %v8940_v62 = vld [vmem:[%s10982_s5 + $0x80] sm:$0xff]  }
 0x6c3   : > { %8080 = vmatpush3.bf16.msra.mxu0 %v8926_v59  ;;  %8083 = vmatprep.mubr.msk.bf16.mxu0 %vm9059_vm15, %v9058_v52  ;;  %v8938_v59 = vld [vmem:[%s10982_s5 + $0x70] sm:$0xff]  }
 0x6c4   : > { %8081 = vmatprep.subr.bf16.mxu0 %v9058_v52 }
 0x6c5   : > { %v8045_v23 = vpop.f32.mrb[36].mxu1 }
 0x6c6   : > { %v4374_v13 = vpop.f32.mrb[37].mxu1 }
 0x6c7   : > { %8082 = vmatpush3.bf16.msra.mxu0 %v8927_v33  ;;  %v8046_v4 = vpop.f32.mrb[38].mxu1  ;;  %v8942_v33 = vld [vmem:[%s10982_s5 + $0x90] sm:$0xff]  }
 0x6c8   : > { %8087 = vmatprep.subr.bf16.mxu0 %v9058_v52  ;;  %v4488_v24 = vpack.c.bf16 %v8046_v4, %v8045_v23  ;;  %v4377_v25 = vpop.f32.mrb[39].mxu1  ;;  %v8943_v23 = vld [vmem:[%s10982_s5 + $0x98] sm:$0xff]   ;;  %v8945_v4 = vld [vmem:[%s10982_s5 + $0xa8] sm:$0xff]  }
 0x6c9   : > { %v4487_v7 = vpack.c.bf16 %v4377_v25, %v4374_v13  ;;  %v8944_v13 = vld [vmem:[%s10982_s5 + $0xa0] sm:$0xff]   ;;  %v8947_v25 = vld [vmem:[%s10982_s5 + $0xb8] sm:$0xff]  }
 0x6cd   : > { %v10310_v9 = vpop.f32.mrb[40].mxu1 }
 0x6ce   : > { %8084 = vmatmul.mubr.msk.bf16.vlgmr.msra.gmra.mrb[8].mxu0 %vm487_vm0, %v4485_v0  ;;  %v4390_v10 = vpop.f32.mrb[41].mxu1  ;;  %v8941_v0 = vld [vmem:[%s10982_s5 + $0x88] sm:$0xff]  }
 0x6cf   : > { %8088 = vmatpush3.bf16.msra.mxu0 %v8928_v8  ;;  %8091 = vmatprep.mubr.msk.bf16.mxu0 %vm9059_vm15, %v9058_v52  ;;  %v10318_v63 = vpop.f32.mrb[42].mxu1  ;;  %v8949_v8 = vld [vmem:[%s10982_s5 + $0xc8] sm:$0xff]  }
 0x6d0   : > { %8089 = vmatprep.subr.bf16.mxu0 %v9058_v52  ;;  %v4490_v2 = vpack.c.bf16 %v10318_v63, %v10310_v9  ;;  %v4393_v14 = vpop.f32.mrb[43].mxu1  ;;  %v8950_v9 = vld [vmem:[%s10982_s5 + $0xd0] sm:$0xff]   ;;  %v8953_v63 = vld [vmem:[%s10982_s5 + $0xe8] sm:$0xff]  }
 0x6d1   : > { %v4489_v29 = vpack.c.bf16 %v4393_v14, %v4390_v10  ;;  %v8951_v10 = vld [vmem:[%s10982_s5 + $0xd8] sm:$0xff]  }
 0x6d2   : > { %v8955_v14 = vld [vmem:[%s10982_s5 + $0xf8] sm:$0xff]  }
 0x6d3   : > { %8090 = vmatpush3.bf16.msra.mxu0 %v8929_v44  ;;  %v8952_v44 = vld [vmem:[%s10982_s5 + $0xe0] sm:$0xff]  }
 0x6d4   : > { %8095 = vmatprep.subr.bf16.mxu0 %v9058_v52 }
 0x6d5   : > { %v10324_v15 = vpop.f32.mrb[44].mxu1 }
 0x6d6   : > { %v10326_v53 = vpop.f32.mrb[45].mxu1 }
 0x6d7   : > { %v10331_v34 = vpop.f32.mrb[46].mxu1 }
 0x6d8   : > { %v4492_v58 = vpack.c.bf16 %v10331_v34, %v10324_v15  ;;  %v4409_v28 = vpop.f32.mrb[47].mxu1 }
 0x6d9   : > { %v4491_v22 = vpack.c.bf16 %v4409_v28, %v10326_v53 }
 0x6da   : > { %8092 = vmatmul.mubr.msk.bf16.vlgmr.msra.gmra.mrb[8].mxu0 %vm487_vm0, %v4487_v7  ;;  %v8948_v7 = vld [vmem:[%s10982_s5 + $0xc0] sm:$0xff]  }
 0x6db   : > { %8096 = vmatpush3.bf16.msra.mxu0 %v8930_v17  ;;  %8099 = vmatprep.mubr.msk.bf16.mxu0 %vm9059_vm15, %v9058_v52 }
 0x6dc   : > { %8097 = vmatprep.subr.bf16.mxu0 %v9058_v52 }
 0x6dd   : > { %v10343_v50 = vpop.f32.mrb[48].mxu1 }
 0x6de   : > { %v10345_v12 = vpop.f32.mrb[49].mxu1 }
 0x6df   : > { %8098 = vmatpush3.bf16.msra.mxu0 %v8931_v35  ;;  %v10347_v16 = vpop.f32.mrb[50].mxu1 }
 0x6e0   : > { %8103 = vmatprep.subr.bf16.mxu0 %v9058_v52  ;;  %v4494_v19 = vpack.c.bf16 %v10347_v16, %v10343_v50  ;;  %v4425_v30 = vpop.f32.mrb[51].mxu1 }
 0x6e1   : > { %v4493_v31 = vpack.c.bf16 %v4425_v30, %v10345_v12 }
 0x6e5   : > { %v10356_v37 = vpop.f32.mrb[52].mxu1 }
 0x6e6   : > { %8100 = vmatmul.mubr.msk.bf16.vlgmr.msra.gmra.mrb[8].mxu0 %vm487_vm0, %v4488_v24  ;;  %v10359_v56 = vpop.f32.mrb[53].mxu1  ;;  %v8946_v24 = vld [vmem:[%s10982_s5 + $0xb0] sm:$0xff]  }
 0x6e7   : > { %8104 = vmatpush3.bf16.msra.mxu0 %v8932_v36  ;;  %8107 = vmatprep.mubr.msk.bf16.mxu0 %vm9059_vm15, %v9058_v52  ;;  %v10366_v26 = vpop.f32.mrb[54].mxu1 }
 0x6e8   : > { %8105 = vmatprep.subr.bf16.mxu0 %v9058_v52  ;;  %v4496_v1 = vpack.c.bf16 %v10366_v26, %v10356_v37  ;;  %v10371_v38 = vpop.f32.mrb[55].mxu1 }
 0x6e9   : > { %v4495_v32 = vpack.c.bf16 %v10371_v38, %v10359_v56 }
 0x6eb   : > { %8106 = vmatpush3.bf16.msra.mxu0 %v8933_v54 }
 0x6ec   : > { %8111 = vmatprep.subr.bf16.mxu0 %v9058_v52 }
 0x6ed   : > { %v10376_v41 = vpop.f32.mrb[56].mxu1 }
 0x6ee   : > { %v10378_v39 = vpop.f32.mrb[57].mxu1 }
 0x6ef   : > { %v10383_v18 = vpop.f32.mrb[58].mxu1 }
 0x6f0   : > { %v4498_v42 = vpack.c.bf16 %v10383_v18, %v10376_v41  ;;  %v10387_v43 = vpop.f32.mrb[59].mxu1 }
 0x6f1   : > { %v4497_v45 = vpack.c.bf16 %v10387_v43, %v10378_v39 }
 0x6f2   : > { %8108 = vmatmul.mubr.msk.bf16.vlgmr.msra.gmra.mrb[8].mxu0 %vm487_vm0, %v4489_v29  ;;  %v8956_v29 = vld [vmem:[%s10983_s6] sm:$0xff]  }
 0x6f3   : > { %8112 = vmatpush3.bf16.msra.mxu0 %v8934_v21  ;;  %8115 = vmatprep.mubr.msk.bf16.mxu0 %vm9059_vm15, %v9058_v52 }
 0x6f4   : > { %8113 = vmatprep.subr.bf16.mxu0 %v9058_v52 }
 0x6f5   : > { %v10398_v27 = vpop.f32.mrb[60].mxu1 }
 0x6f6   : > { %v10400_v11 = vpop.f32.mrb[61].mxu1 }
 0x6f7   : > { %8114 = vmatpush3.bf16.msra.mxu0 %v8935_v3  ;;  %v10402_v47 = vpop.f32.mrb[62].mxu1  ;;  %v5455_v3 = vsub.s32 6, %v9459_v48 }
 0x6f8   : > { %8119 = vmatprep.subr.bf16.mxu0 %v9058_v52  ;;  %v4500_v51 = vpack.c.bf16 %v10402_v47, %v10398_v27  ;;  %v10407_v61 = vpop.f32.mrb[63].mxu1  ;;  %v5461_v27 = vsub.s32 7, %v9459_v48 }
 0x6f9   : > { %v4499_v46 = vpack.c.bf16 %v10407_v61, %v10400_v11  ;;  %v5456_v11 = vrot.slane %v10220_v6, %v5455_v3  ;;  %v8979_v3 = vld [vmem:[%s10984_s7 + $0x78] sm:$0xff]  }
 0x6fe   : > { %8116 = vmatmul.mubr.msk.bf16.vlgmr.msra.gmra.mrb[8].mxu0 %vm487_vm0, %v4490_v2  ;;  %v8954_v2 = vld [vmem:[%s10982_s5 + $0xf0] sm:$0xff]  }
 0x6ff   : > { %8120 = vmatpush3.bf16.msra.mxu0 %v8936_v40  ;;  %8123 = vmatprep.mubr.msk.bf16.mxu0 %vm9059_vm15, %v9058_v52  ;;  %v5462_v40 = vrot.slane %v10220_v6, %v5461_v27  ;;  %v8957_v6 = vld [vmem:[%s10983_s6 + $0x8] sm:$0xff]   ;;  %v8980_v27 = vld [vmem:[%s10984_s7 + $0x80] sm:$0xff]  }
 0x700   : > { %8121 = vmatprep.subr.bf16.mxu0 %v9058_v52 }
 0x703   : > { %8122 = vmatpush3.bf16.msra.mxu0 %v8937_v57 }
 0x704   : > { %8127 = vmatprep.subr.bf16.mxu0 %v9058_v52 }
 0x70a   : > { %8124 = vmatmul.mubr.msk.bf16.vlgmr.msra.gmra.mrb[8].mxu0 %vm487_vm0, %v4491_v22 }
 0x70b   : > { %8128 = vmatpush3.bf16.msra.mxu0 %v8938_v59  ;;  %8131 = vmatprep.mubr.msk.bf16.mxu0 %vm9059_vm15, %v9058_v52 }
 0x70c   : > { %8129 = vmatprep.subr.bf16.mxu0 %v9058_v52 }
 0x70f   : > { %8130 = vmatpush3.bf16.msra.mxu0 %v8939_v60 }
 0x710   : > { %8135 = vmatprep.subr.bf16.mxu0 %v9058_v52 }
 0x716   : > { %8132 = vmatmul.mubr.msk.bf16.vlgmr.msra.gmra.mrb[8].mxu0 %vm487_vm0, %v4492_v58 }
 0x717   : > { %8136 = vmatpush3.bf16.msra.mxu0 %v8940_v62  ;;  %8139 = vmatprep.mubr.msk.bf16.mxu0 %vm9059_vm15, %v9058_v52 }
 0x718   : > { %8137 = vmatprep.subr.bf16.mxu0 %v9058_v52 }
 0x71b   : > { %8138 = vmatpush3.bf16.msra.mxu0 %v8941_v0 }
 0x71c   : > { %8143 = vmatprep.subr.bf16.mxu0 %v9058_v52 }
 0x722   : > { %8140 = vmatmul.mubr.msk.bf16.vlgmr.msra.gmra.mrb[8].mxu0 %vm487_vm0, %v4493_v31 }
 0x723   : > { %8144 = vmatpush3.bf16.msra.mxu0 %v8942_v33  ;;  %8147 = vmatprep.mubr.msk.bf16.mxu0 %vm9059_vm15, %v9058_v52 }
 0x724   : > { %8145 = vmatprep.subr.bf16.mxu0 %v9058_v52 }
 0x727   : > { %8146 = vmatpush3.bf16.msra.mxu0 %v8943_v23 }
 0x728   : > { %8151 = vmatprep.subr.bf16.mxu0 %v9058_v52 }
 0x72e   : > { %8148 = vmatmul.mubr.msk.bf16.vlgmr.msra.gmra.mrb[8].mxu0 %vm487_vm0, %v4494_v19 }
 0x72f   : > { %8152 = vmatpush3.bf16.msra.mxu0 %v8944_v13  ;;  %8155 = vmatprep.mubr.msk.bf16.mxu0 %vm9059_vm15, %v9058_v52 }
 0x730   : > { %8153 = vmatprep.subr.bf16.mxu0 %v9058_v52 }
 0x733   : > { %8154 = vmatpush3.bf16.msra.mxu0 %v8945_v4 }
 0x734   : > { %8159 = vmatprep.subr.bf16.mxu0 %v9058_v52 }
 0x73a   : > { %8156 = vmatmul.mubr.msk.bf16.vlgmr.msra.gmra.mrb[8].mxu0 %vm487_vm0, %v4495_v32 }
 0x73b   : > { %8160 = vmatpush3.bf16.msra.mxu0 %v8946_v24  ;;  %8163 = vmatprep.mubr.msk.bf16.mxu0 %vm9059_vm15, %v9058_v52 }
 0x73c   : > { %8161 = vmatprep.subr.bf16.mxu0 %v9058_v52 }
 0x73f   : > { %8162 = vmatpush3.bf16.msra.mxu0 %v8947_v25  ;;  %v8958_v25 = vld [vmem:[%s10983_s6 + $0x10] sm:$0xff]  }
 0x740   : > { %8167 = vmatprep.subr.bf16.mxu0 %v9058_v52 }
 0x746   : > { %8164 = vmatmul.mubr.msk.bf16.vlgmr.msra.gmra.mrb[8].mxu0 %vm487_vm0, %v4496_v1 }
 0x747   : > { %8168 = vmatpush3.bf16.msra.mxu0 %v8948_v7  ;;  %8171 = vmatprep.mubr.msk.bf16.mxu0 %vm9059_vm15, %v9058_v52  ;;  %v8965_v7 = vld [vmem:[%s10984_s7 + $0x28] sm:$0xff]  }
 0x748   : > { %8169 = vmatprep.subr.bf16.mxu0 %v9058_v52 }
 0x74b   : > { %8170 = vmatpush3.bf16.msra.mxu0 %v8949_v8  ;;  %v8959_v8 = vld [vmem:[%s10983_s6 + $0x18] sm:$0xff]  }
 0x74c   : > { %8175 = vmatprep.subr.bf16.mxu0 %v9058_v52 }
 0x752   : > { %8172 = vmatmul.mubr.msk.bf16.vlgmr.msra.gmra.mrb[8].mxu0 %vm487_vm0, %v4497_v45 }
 0x753   : > { %8176 = vmatpush3.bf16.msra.mxu0 %v8950_v9  ;;  %8179 = vmatprep.mubr.msk.bf16.mxu0 %vm9059_vm15, %v9058_v52  ;;  %v8960_v9 = vld [vmem:[%s10983_s6 + $0x20] sm:$0xff]  }
 0x754   : > { %8177 = vmatprep.subr.bf16.mxu0 %v9058_v52 }
 0x757   : > { %8178 = vmatpush3.bf16.msra.mxu0 %v8951_v10  ;;  %v8961_v10 = vld [vmem:[%s10983_s6 + $0x28] sm:$0xff]  }
 0x758   : > { %8183 = vmatprep.subr.bf16.mxu0 %v9058_v52 }
 0x75e   : > { %8180 = vmatmul.mubr.msk.bf16.vlgmr.msra.gmra.mrb[8].mxu0 %vm487_vm0, %v4498_v42 }
 0x75f   : > { %8184 = vmatpush3.bf16.msra.mxu0 %v8952_v44  ;;  %8187 = vmatprep.mubr.msk.bf16.mxu0 %vm9059_vm15, %v9058_v52  ;;  %v8962_v44 = vld [vmem:[%s10983_s6 + $0x30] sm:$0xff]  }
 0x760   : > { %8185 = vmatprep.subr.bf16.mxu0 %v9058_v52 }
 0x763   : > { %8186 = vmatpush3.bf16.msra.mxu0 %v8953_v63  ;;  %v8963_v63 = vld [vmem:[%s10983_s6 + $0x38] sm:$0xff]  }
 0x764   : > { %8191 = vmatprep.subr.bf16.mxu0 %v9058_v52 }
 0x76a   : > { %8188 = vmatmul.mubr.msk.bf16.vlgmr.msra.gmra.mrb[8].mxu0 %vm487_vm0, %v4499_v46 }
 0x76b   : > { %8192 = vmatpush3.bf16.msra.mxu0 %v8954_v2  ;;  %8195 = vmatprep.mubr.msk.bf16.mxu0 %vm9059_vm15, %v9058_v52  ;;  %v8966_v2 = vld [vmem:[%s10984_s7 + $0x30] sm:$0xff]  }
 0x76c   : > { %8193 = vmatprep.subr.bf16.mxu0 %v9058_v52 }
 0x76f   : > { %8194 = vmatpush3.bf16.msra.mxu0 %v8955_v14  ;;  %v8967_v14 = vld [vmem:[%s10984_s7 + $0x38] sm:$0xff]  }
 0x776   : > { %8196 = vmatmul.mubr.msk.bf16.vlgmr.msra.gmra.mrb[8].mxu0 %vm487_vm0, %v4500_v51  ;;  %v10559_v51 = vld [vmem:[%s10986_s9 + $0x8] sm:$0xff] }
 0x777   : > { %8201 = vmatprep.mubr.msk.bf16.mxu0 %vm697_vm1, %v8956_v29  ;;  %v5470_v60 = vrot.slane %v10559_v51, %v938_v49  ;;  %v8964_v49 = vld [vmem:[%s10984_s7 + $0x20] sm:$0xff]  }
 0x849   : > { %v5416_v15 = vpop.f32.mrb[8].mxu0 }
 0x84a   : > { %v8197_v53 = vpop.f32.mrb[9].mxu0  ;;  %v5425_v34 = vsel %vm4275_vm6, %v5416_v15, 0.0 }
 0x84b   : > { %v5419_v17 = vpop.f32.mrb[10].mxu0 }
 0x84c   : > { %v5426_v58 = vsel %vm4275_vm6, %v5419_v17, 0.0  ;;  %v8198_v28 = vpop.f32.mrb[11].mxu0 }
 0x84d   : > { %v5427_v22 = vadd.f32 %v5426_v58, %v5425_v34  ;;  %v8968_v28 = vld [vmem:[%s10984_s7] sm:$0xff]  }
 0x84f   : > { %v5428_v35 = vrot.slane %v5427_v22, 4 }
 0x851   : > { %v5429_v50 = vadd.f32 %v5428_v35, %v5427_v22 }
 0x853   : > { %v5430_v12 = vrot.slane %v5429_v50, 2 }
 0x855   : > { %v5431_v16 = vadd.f32 %v5430_v12, %v5429_v50  ;;  %v8969_v50 = vld [vmem:[%s10984_s7 + $0x8] sm:$0xff]  }
 0x857   : > { %v5432_v19 = vrot.slane %v5431_v16, 1 }
 0x859   : > { %v5433_v30 = vadd.f32 %v5432_v19, %v5431_v16 }
 0x85b   : > { %v5434_v31 = vmul.f32 0.0625, %v5433_v30 }
 0x85d   : > { %v5435_v36 = vsub.f32 %v5416_v15, %v5434_v31  ;;  %v5436_v37 = vsub.f32 %v5419_v17, %v5434_v31 }
 0x85f   : > { %v5437_v56 = vmul.f32 %v5435_v36, %v5435_v36  ;;  %v5438_v54 = vmul.f32 %v5436_v37, %v5436_v37 }
 0x861   : > { %v5439_v26 = vsel %vm4275_vm6, %v5437_v56, 0.0  ;;  %v5440_v1 = vsel %vm4275_vm6, %v5438_v54, 0.0  ;;  %v8971_v56 = vld [vmem:[%s10984_s7 + $0x18] sm:$0xff]  }
 0x862   : > { %v5441_v38 = vadd.f32 %v5440_v1, %v5439_v26 }
 0x864   : > { %v5442_v32 = vrot.slane %v5441_v38, 4 }
 0x866   : > { %v5443_v41 = vadd.f32 %v5442_v32, %v5441_v38 }
 0x868   : > { %v5444_v39 = vrot.slane %v5443_v41, 2 }
 0x86a   : > { %v5445_v21 = vadd.f32 %v5444_v39, %v5443_v41  ;;  %v8972_v41 = vld [vmem:[%s10984_s7 + $0x40] sm:$0xff]   ;;  %v8973_v39 = vld [vmem:[%s10984_s7 + $0x48] sm:$0xff]  }
 0x86c   : > { %v5446_v18 = vrot.slane %v5445_v21, 1 }
 0x86e   : > { %v5447_v42 = vadd.f32 %v5446_v18, %v5445_v21  ;;  %v8974_v21 = vld [vmem:[%s10984_s7 + $0x50] sm:$0xff]   ;;  %v8975_v18 = vld [vmem:[%s10984_s7 + $0x58] sm:$0xff]  }
 0x870   : > { %v5448_v43 = vmul.f32 0.0625, %v5447_v42  ;;  %v8976_v42 = vld [vmem:[%s10984_s7 + $0x60] sm:$0xff]  }
 0x872   : > { %v5449_v45 = vadd.f32 1e-05, %v5448_v43  ;;  %v8977_v43 = vld [vmem:[%s10984_s7 + $0x68] sm:$0xff]  }
 0x874   : > { %9040 = vrsqrt.f32 %v5449_v45  ;;  %v8978_v45 = vld [vmem:[%s10984_s7 + $0x70] sm:$0xff]  }
 0x87e   : > { %v9041_v47 = vpop.eup %9040 }
 0x87f   : > { %v5451_v61 = vmul.f32 %v9041_v47, %v5435_v36  ;;  %v5452_v46 = vmul.f32 %v9041_v47, %v5436_v37  ;;  %v8970_v36 = vld [vmem:[%s10984_s7 + $0x10] sm:$0xff]   ;;  %v8981_v47 = vld [vmem:[%s10984_s7 + $0x88] sm:$0xff]  }
 0x881   : > { %v5457_v57 = vmul.f32 %v5456_v11, %v5451_v61  ;;  %v5458_v59 = vmul.f32 %v5456_v11, %v5452_v46  ;;  %v8982_v61 = vld [vmem:[%s10984_s7 + $0x90] sm:$0xff]   ;;  %v8983_v46 = vld [vmem:[%s10984_s7 + $0x98] sm:$0xff]  }
 0x883   : > { %v5464_v62 = vadd.f32 %v5462_v40, %v5458_v59  ;;  %v5463_v0 = vadd.f32 %v5462_v40, %v5457_v57 }
 0x885   : > { %vm5465_vm0 = vcmp.ge.f32.partialorder %v5463_v0, 0.0  ;;  %vm5466_vm2 = vcmp.ge.f32.partialorder %v5464_v62, 0.0  ;;  %v5471_v33 = vmul.f32 %v5470_v60, %v5463_v0  ;;  %v5472_v23 = vmul.f32 %v5470_v60, %v5464_v62 }
 0x887   : > { %v5473_v13 = vsel %vm5465_vm0, %v5463_v0, %v5471_v33  ;;  %v5474_v4 = vsel %vm5466_vm2, %v5464_v62, %v5472_v23  ;;  %v8984_v62 = vld [vmem:[%s10984_s7 + $0xa0] sm:$0xff]   ;;  %v8985_v23 = vld [vmem:[%s10984_s7 + $0xa8] sm:$0xff]  }
 0x888   : > { %v5475_v24 = vpack.c.bf16 %v5474_v4, %v5473_v13  ;;  %v8986_v13 = vld [vmem:[%s10984_s7 + $0xb0] sm:$0xff]   ;;  %v8987_v4 = vld [vmem:[%s10984_s7 + $0xb8] sm:$0xff]  }
 0x88a   : > { %8199 = vmatprep.subr.bf16.mxu0 %v5475_v24 }
 0x88b   : > { %8200 = vmatpush3.bf16.msra.mxu0 %v5475_v24  ;;  %v8988_v24 = vld [vmem:[%s10984_s7 + $0xc0] sm:$0xff]  }
 0x88c   : > { %8217 = vmatprep.subr.bf16.mxu0 %v9058_v52 }
 0x88e   : > { %8202 = vmatmul.mubr.msk.bf16.vlgmr.msra.gmra.mrb[12].mxu0 %vm697_vm1, %v8957_v6 }
 0x88f   : > { %8205 = vmatprep.mubr.msk.bf16.mxu0 %vm697_vm1, %v8958_v25  ;;  %8218 = vmatpush3.bf16.msra.mxu0 %v8964_v49  ;;  %v8989_v25 = vld [vmem:[%s10984_s7 + $0xc8] sm:$0xff]   ;;  %v8990_v49 = vld [vmem:[%s10984_s7 + $0xd0] sm:$0xff]  }
 0x890   : > { %8219 = vmatprep.subr.bf16.mxu0 %v9058_v52 }
 0x893   : > { %8220 = vmatpush3.bf16.msra.mxu0 %v8965_v7  ;;  %v8991_v7 = vld [vmem:[%s10984_s7 + $0xd8] sm:$0xff]  }
 0x894   : > { %8221 = vmatprep.subr.bf16.mxu0 %v9058_v52 }
 0x896   : > { %8206 = vmatmul.mubr.msk.bf16.gmra.mrb[16].mxu0 %vm697_vm1, %v8959_v8  ;;  %v8992_v8 = vld [vmem:[%s10984_s7 + $0xe0] sm:$0xff]  }
 0x897   : > { %8209 = vmatprep.mubr.msk.bf16.mxu0 %vm697_vm1, %v8960_v9  ;;  %8222 = vmatpush3.bf16.msra.mxu0 %v8966_v2  ;;  %v8993_v9 = vld [vmem:[%s10984_s7 + $0xe8] sm:$0xff]  }
 0x898   : > { %8223 = vmatprep.subr.bf16.mxu0 %v9058_v52 }
 0x89b   : > { %8224 = vmatpush3.bf16.msra.mxu0 %v8967_v14  ;;  %v8997_v14 = vld [vmem:[%s10984_s7 + $0x108] sm:$0xff]  }
 0x89c   : > { %8229 = vmatprep.subr.bf16.mxu0 %v9058_v52 }
 0x89e   : > { %8210 = vmatmul.mubr.msk.bf16.gmra.mrb[20].mxu0 %vm697_vm1, %v8961_v10  ;;  %v8994_v10 = vld [vmem:[%s10984_s7 + $0xf0] sm:$0xff]  }
 0x89f   : > { %8213 = vmatprep.mubr.msk.bf16.mxu0 %vm697_vm1, %v8962_v44  ;;  %v8995_v44 = vld [vmem:[%s10984_s7 + $0xf8] sm:$0xff]  }
 0x8a6   : > { %8214 = vmatmul.mubr.msk.bf16.gmra.mrb[24].mxu0 %vm697_vm1, %v8963_v63  ;;  %v8996_v63 = vld [vmem:[%s10984_s7 + $0x100] sm:$0xff]   ;;  %vm6891_vm1 = vcmask 1043456  }
 0x8a7   : > { %8225 = vmatprep.mubr.msk.bf16.mxu0 %vm9059_vm15, %v9058_v52 }
 0x961   : > { %v8203_v29 = vpop.f32.mrb[12].mxu0 }
 0x962   : > { %v5718_v15 = vpop.f32.mrb[13].mxu0 }
 0x963   : > { %v8204_v53 = vpop.f32.mrb[14].mxu0 }
 0x964   : > { %v5782_v17 = vpack.c.bf16 %v8204_v53, %v8203_v29  ;;  %v5721_v34 = vpop.f32.mrb[15].mxu0  ;;  %v8998_v29 = vld [vmem:[%s10984_s7 + $0x110] sm:$0xff]   ;;  %v9000_v53 = vld [vmem:[%s10984_s7 + $0x120] sm:$0xff]  }
 0x965   : > { %v5781_v58 = vpack.c.bf16 %v5721_v34, %v5718_v15  ;;  %v8999_v15 = vld [vmem:[%s10984_s7 + $0x118] sm:$0xff]   ;;  %v9002_v34 = vld [vmem:[%s10984_s7 + $0x130] sm:$0xff]  }
 0x966   : > { %v5994_v11 = vrot.slane %v5782_v17, 4 }
 0x967   : > { %v5790_v22 = vrot.slane %v5781_v58, 4 }
 0x969   : > { %8226 = vmatmul.mubr.msk.bf16.vlgmr.msra.gmra.mrb[28].mxu0 %vm4275_vm6, %v5790_v22  ;;  %v8207_v35 = vpop.f32.mrb[16].mxu0 }
 0x96a   : > { %8230 = vmatpush3.bf16.msra.mxu0 %v8968_v28  ;;  %8237 = vmatprep.mubr.msk.bf16.mxu0 %vm9059_vm15, %v9058_v52  ;;  %v5734_v12 = vpop.f32.mrb[17].mxu0  ;;  %v9004_v28 = vld [vmem:[%s10984_s7 + $0x140] sm:$0xff]  }
 0x96b   : > { %8231 = vmatprep.subr.bf16.mxu0 %v9058_v52  ;;  %v8208_v16 = vpop.f32.mrb[18].mxu0 }
 0x96c   : > { %v10622_v19 = vpack.c.bf16 %v8208_v16, %v8207_v35  ;;  %v5737_v30 = vpop.f32.mrb[19].mxu0  ;;  %v9005_v35 = vld [vmem:[%s10984_s7 + $0x148] sm:$0xff]   ;;  %v9008_v16 = vld [vmem:[%s10984_s7 + $0x160] sm:$0xff]  }
 0x96d   : > { %v10624_v31 = vpack.c.bf16 %v5737_v30, %v5734_v12  ;;  %v9007_v12 = vld [vmem:[%s10984_s7 + $0x158] sm:$0xff]   ;;  %v9010_v30 = vld [vmem:[%s10984_s7 + $0x170] sm:$0xff]  }
 0x96e   : > { %8232 = vmatpush3.bf16.msra.mxu0 %v8969_v50  ;;  %v6270_v2 = vrot.slane %v10622_v19, 4  ;;  %v9006_v50 = vld [vmem:[%s10984_s7 + $0x150] sm:$0xff]  }
 0x96f   : > { %8233 = vmatprep.subr.bf16.mxu0 %v9058_v52  ;;  %v6132_v6 = vrot.slane %v10624_v31, 4 }
 0x971   : > { %v8211_v37 = vpop.f32.mrb[20].mxu0 }
 0x972   : > { %8234 = vmatpush3.bf16.msra.mxu0 %v8970_v36  ;;  %v5750_v54 = vpop.f32.mrb[21].mxu0  ;;  %v9012_v36 = vld [vmem:[%s10984_s7 + $0x180] sm:$0xff]  }
 0x973   : > { %8235 = vmatprep.subr.bf16.mxu0 %v9058_v52  ;;  %v8212_v26 = vpop.f32.mrb[22].mxu0 }
 0x974   : > { %v10634_v1 = vpack.c.bf16 %v8212_v26, %v8211_v37  ;;  %v5753_v38 = vpop.f32.mrb[23].mxu0  ;;  %v9015_v26 = vld [vmem:[%s10984_s7 + $0x198] sm:$0xff]  }
 0x975   : > { %v10636_v32 = vpack.c.bf16 %v5753_v38, %v5750_v54  ;;  %v9014_v54 = vld [vmem:[%s10984_s7 + $0x190] sm:$0xff]   ;;  %v9017_v38 = vld [vmem:[%s10984_s7 + $0x1a8] sm:$0xff]  }
 0x976   : > { %8236 = vmatpush3.bf16.msra.mxu0 %v8971_v56  ;;  %v6546_v37 = vrot.slane %v10634_v1, 4  ;;  %v9013_v56 = vld [vmem:[%s10984_s7 + $0x188] sm:$0xff]  }
 0x977   : > { %8241 = vmatprep.subr.bf16.mxu0 %v9058_v52  ;;  %v6408_v22 = vrot.slane %v10636_v32, 4 }
 0x979   : > { %8238 = vmatmul.mubr.msk.bf16.vlgmr.msra.gmra.mrb[28].mxu0 %vm4275_vm6, %v5781_v58  ;;  %v8215_v40 = vpop.f32.mrb[24].mxu0  ;;  %v9003_v58 = vld [vmem:[%s10984_s7 + $0x138] sm:$0xff]  }
 0x97a   : > { %8242 = vmatpush3.bf16.msra.mxu0 %v8972_v41  ;;  %8249 = vmatprep.mubr.msk.bf16.mxu0 %vm9059_vm15, %v9058_v52  ;;  %v5766_v57 = vpop.f32.mrb[25].mxu0  ;;  %v9019_v41 = vld [vmem:[%s10984_s7 + $0x1b8] sm:$0xff]  }
 0x97b   : > { %8243 = vmatprep.subr.bf16.mxu0 %v9058_v52  ;;  %v8216_v59 = vpop.f32.mrb[26].mxu0 }
 0x97c   : > { %v10695_v60 = vpack.c.bf16 %v8216_v59, %v8215_v40  ;;  %v5769_v0 = vpop.f32.mrb[27].mxu0  ;;  %v9030_v40 = vld [vmem:[%s10985_s8 + $0x10] sm:$0xff]   ;;  %v9032_v59 = vld [vmem:[%s10985_s8 + $0x20] sm:$0xff]  }
 0x97d   : > { %v10701_v33 = vpack.c.bf16 %v5769_v0, %v5766_v57  ;;  %v9031_v57 = vld [vmem:[%s10985_s8 + $0x18] sm:$0xff]  }
 0x97e   : > { %8244 = vmatpush3.bf16.msra.mxu0 %v8973_v39  ;;  %v9020_v39 = vld [vmem:[%s10984_s7 + $0x1c0] sm:$0xff]   ;;  %v9035_v0 = vld [vmem:[%s10985_s8 + $0x38] sm:$0xff]  }
 0x97f   : > { %8245 = vmatprep.subr.bf16.mxu0 %v9058_v52 }
 0x982   : > { %8246 = vmatpush3.bf16.msra.mxu0 %v8974_v21  ;;  %v6684_v21 = vrot.slane %v10701_v33, 4 }
 0x983   : > { %8247 = vmatprep.subr.bf16.mxu0 %v9058_v52 }
 0x986   : > { %8248 = vmatpush3.bf16.msra.mxu0 %v8975_v18  ;;  %v9021_v18 = vld [vmem:[%s10984_s7 + $0x1c8] sm:$0xff]  }
 0x987   : > { %8253 = vmatprep.subr.bf16.mxu0 %v9058_v52 }
 0x989   : > { %8250 = vmatmul.mubr.msk.bf16.vlgmr.msra.gmra.mrb[28].mxu0 %vm4275_vm6, %v5782_v17  ;;  %v9001_v17 = vld [vmem:[%s10984_s7 + $0x128] sm:$0xff]  }
 0x98a   : > { %8254 = vmatpush3.bf16.msra.mxu0 %v8976_v42  ;;  %8261 = vmatprep.mubr.msk.bf16.mxu0 %vm9059_vm15, %v9058_v52  ;;  %v9022_v42 = vld [vmem:[%s10984_s7 + $0x1d0] sm:$0xff]  }
 0x98b   : > { %8255 = vmatprep.subr.bf16.mxu0 %v9058_v52 }
 0x98e   : > { %8256 = vmatpush3.bf16.msra.mxu0 %v8977_v43  ;;  %v9023_v43 = vld [vmem:[%s10984_s7 + $0x1d8] sm:$0xff]  }
 0x98f   : > { %8257 = vmatprep.subr.bf16.mxu0 %v9058_v52 }
 0x992   : > { %8258 = vmatpush3.bf16.msra.mxu0 %v8978_v45  ;;  %v9024_v45 = vld [vmem:[%s10984_s7 + $0x1e0] sm:$0xff]  }
 0x993   : > { %8259 = vmatprep.subr.bf16.mxu0 %v9058_v52 }
 0x996   : > { %8260 = vmatpush3.bf16.msra.mxu0 %v8979_v3  ;;  %v9025_v3 = vld [vmem:[%s10984_s7 + $0x1e8] sm:$0xff]  }
 0x997   : > { %8265 = vmatprep.subr.bf16.mxu0 %v9058_v52 }
 0x999   : > { %8262 = vmatmul.mubr.msk.bf16.vlgmr.msra.gmra.mrb[28].mxu0 %vm4275_vm6, %v5994_v11  ;;  %v9027_v11 = vld [vmem:[%s10984_s7 + $0x1f8] sm:$0xff]  }
 0x99a   : > { %8266 = vmatpush3.bf16.msra.mxu0 %v8980_v27  ;;  %8273 = vmatprep.mubr.msk.bf16.mxu0 %vm9059_vm15, %v9058_v52  ;;  %v9026_v27 = vld [vmem:[%s10984_s7 + $0x1f0] sm:$0xff]  }
 0x99b   : > { %8267 = vmatprep.subr.bf16.mxu0 %v9058_v52 }
 0x99e   : > { %8268 = vmatpush3.bf16.msra.mxu0 %v8981_v47  ;;  %v6822_v47 = vrot.slane %v10695_v60, 4 }
 0x99f   : > { %8269 = vmatprep.subr.bf16.mxu0 %v9058_v52 }
 0x9a2   : > { %8270 = vmatpush3.bf16.msra.mxu0 %v8982_v61  ;;  %v9028_v61 = vld [vmem:[%s10985_s8] sm:$0xff]  }
 0x9a3   : > { %8271 = vmatprep.subr.bf16.mxu0 %v9058_v52  ;;  %8410 = vmatpush3.bf16.msra.mxu1 %v9028_v61 }
 0x9a4   : > { %8411 = vmatprep.subr.bf16.mxu1 %v9058_v52 }
 0x9a6   : > { %8272 = vmatpush3.bf16.msra.mxu0 %v8983_v46  ;;  %v9029_v46 = vld [vmem:[%s10985_s8 + $0x8] sm:$0xff]  }
 0x9a7   : > { %8277 = vmatprep.subr.bf16.mxu0 %v9058_v52  ;;  %8412 = vmatpush3.bf16.msra.mxu1 %v9029_v46 }
 0x9a8   : > { %8413 = vmatprep.subr.bf16.mxu1 %v9058_v52 }
 0x9a9   : > { %8274 = vmatmul.mubr.msk.bf16.vlgmr.msra.gmra.mrb[28].mxu0 %vm4275_vm6, %v10624_v31  ;;  %v9011_v31 = vld [vmem:[%s10984_s7 + $0x178] sm:$0xff]  }
 0x9aa   : > { %8278 = vmatpush3.bf16.msra.mxu0 %v8984_v62  ;;  %8285 = vmatprep.mubr.msk.bf16.mxu0 %vm9059_vm15, %v9058_v52  ;;  %v9034_v62 = vld [vmem:[%s10985_s8 + $0x30] sm:$0xff]  }
 0x9ab   : > { %8279 = vmatprep.subr.bf16.mxu0 %v9058_v52  ;;  %8414 = vmatpush3.bf16.msra.mxu1 %v9030_v40 }
 0x9ac   : > { %8415 = vmatprep.subr.bf16.mxu1 %v9058_v52 }
 0x9ae   : > { %8280 = vmatpush3.bf16.msra.mxu0 %v8985_v23 }
 0x9af   : > { %8281 = vmatprep.subr.bf16.mxu0 %v9058_v52  ;;  %8416 = vmatpush3.bf16.msra.mxu1 %v9031_v57 }
 0x9b0   : > { %8417 = vmatprep.subr.bf16.mxu1 %v9058_v52 }
 0x9b2   : > { %8282 = vmatpush3.bf16.msra.mxu0 %v8986_v13 }
 0x9b3   : > { %8283 = vmatprep.subr.bf16.mxu0 %v9058_v52  ;;  %8418 = vmatpush3.bf16.msra.mxu1 %v9032_v59 }
 0x9b4   : > { %8419 = vmatprep.subr.bf16.mxu1 %v9058_v52 }
 0x9b6   : > { %8284 = vmatpush3.bf16.msra.mxu0 %v8987_v4 }
 0x9b7   : > { %8289 = vmatprep.subr.bf16.mxu0 %v9058_v52 }
 0x9b9   : > { %8286 = vmatmul.mubr.msk.bf16.vlgmr.msra.gmra.mrb[28].mxu0 %vm4275_vm6, %v6132_v6 }
 0x9ba   : > { %8290 = vmatpush3.bf16.msra.mxu0 %v8988_v24  ;;  %8297 = vmatprep.mubr.msk.bf16.mxu0 %vm9059_vm15, %v9058_v52 }
 0x9bb   : > { %8291 = vmatprep.subr.bf16.mxu0 %v9058_v52 }
 0x9be   : > { %8292 = vmatpush3.bf16.msra.mxu0 %v8989_v25 }
 0x9bf   : > { %8293 = vmatprep.subr.bf16.mxu0 %v9058_v52 }
 0x9c2   : > { %8294 = vmatpush3.bf16.msra.mxu0 %v8990_v49 }
 0x9c3   : > { %8295 = vmatprep.subr.bf16.mxu0 %v9058_v52 }
 0x9c6   : > { %8296 = vmatpush3.bf16.msra.mxu0 %v8991_v7 }
 0x9c7   : > { %8301 = vmatprep.subr.bf16.mxu0 %v9058_v52 }
 0x9c9   : > { %8298 = vmatmul.mubr.msk.bf16.vlgmr.msra.gmra.mrb[28].mxu0 %vm4275_vm6, %v10622_v19  ;;  %v9009_v19 = vld [vmem:[%s10984_s7 + $0x168] sm:$0xff]  }
 0x9ca   : > { %8302 = vmatpush3.bf16.msra.mxu0 %v8992_v8  ;;  %8309 = vmatprep.mubr.msk.bf16.mxu0 %vm9059_vm15, %v9058_v52 }
 0x9cb   : > { %8303 = vmatprep.subr.bf16.mxu0 %v9058_v52 }
 0x9ce   : > { %8304 = vmatpush3.bf16.msra.mxu0 %v8993_v9 }
 0x9cf   : > { %8305 = vmatprep.subr.bf16.mxu0 %v9058_v52 }
 0x9d2   : > { %8306 = vmatpush3.bf16.msra.mxu0 %v8994_v10 }
 0x9d3   : > { %8307 = vmatprep.subr.bf16.mxu0 %v9058_v52 }
 0x9d6   : > { %8308 = vmatpush3.bf16.msra.mxu0 %v8995_v44 }
 0x9d7   : > { %8313 = vmatprep.subr.bf16.mxu0 %v9058_v52 }
 0x9d9   : > { %8310 = vmatmul.mubr.msk.bf16.vlgmr.msra.gmra.mrb[28].mxu0 %vm4275_vm6, %v6270_v2 }
 0x9da   : > { %8314 = vmatpush3.bf16.msra.mxu0 %v8996_v63  ;;  %8321 = vmatprep.mubr.msk.bf16.mxu0 %vm9059_vm15, %v9058_v52 }
 0x9db   : > { %8315 = vmatprep.subr.bf16.mxu0 %v9058_v52 }
 0x9de   : > { %8316 = vmatpush3.bf16.msra.mxu0 %v8997_v14 }
 0x9df   : > { %8317 = vmatprep.subr.bf16.mxu0 %v9058_v52 }
 0x9e2   : > { %8318 = vmatpush3.bf16.msra.mxu0 %v8998_v29 }
 0x9e3   : > { %8319 = vmatprep.subr.bf16.mxu0 %v9058_v52 }
 0x9e6   : > { %8320 = vmatpush3.bf16.msra.mxu0 %v8999_v15 }
 0x9e7   : > { %8325 = vmatprep.subr.bf16.mxu0 %v9058_v52 }
 0x9e9   : > { %8322 = vmatmul.mubr.msk.bf16.vlgmr.msra.gmra.mrb[28].mxu0 %vm4275_vm6, %v10636_v32  ;;  %v9018_v32 = vld [vmem:[%s10984_s7 + $0x1b0] sm:$0xff]  }
 0x9ea   : > { %8326 = vmatpush3.bf16.msra.mxu0 %v9000_v53  ;;  %8333 = vmatprep.mubr.msk.bf16.mxu0 %vm9059_vm15, %v9058_v52 }
 0x9eb   : > { %8327 = vmatprep.subr.bf16.mxu0 %v9058_v52 }
 0x9ee   : > { %8328 = vmatpush3.bf16.msra.mxu0 %v9001_v17 }
 0x9ef   : > { %8329 = vmatprep.subr.bf16.mxu0 %v9058_v52 }
 0x9f2   : > { %8330 = vmatpush3.bf16.msra.mxu0 %v9002_v34 }
 0x9f3   : > { %8331 = vmatprep.subr.bf16.mxu0 %v9058_v52 }
 0x9f6   : > { %8332 = vmatpush3.bf16.msra.mxu0 %v9003_v58 }
 0x9f7   : > { %8337 = vmatprep.subr.bf16.mxu0 %v9058_v52 }
 0x9f9   : > { %8334 = vmatmul.mubr.msk.bf16.vlgmr.msra.gmra.mrb[28].mxu0 %vm4275_vm6, %v6408_v22 }
 0x9fa   : > { %8338 = vmatpush3.bf16.msra.mxu0 %v9004_v28  ;;  %8345 = vmatprep.mubr.msk.bf16.mxu0 %vm9059_vm15, %v9058_v52  ;;  %v6916_v28 = vrot.slane %v10559_v51, %v974_v55 }
 0x9fb   : > { %8339 = vmatprep.subr.bf16.mxu0 %v9058_v52 }
 0x9fe   : > { %8340 = vmatpush3.bf16.msra.mxu0 %v9005_v35 }
 0x9ff   : > { %8341 = vmatprep.subr.bf16.mxu0 %v9058_v52 }
 0xa02   : > { %8342 = vmatpush3.bf16.msra.mxu0 %v9006_v50  ;;  %v6921_v50 = vrot.slane %v10559_v51, %v1042_v5  ;;  %v7003_v5 = vrot.slane %v10559_v51, 4 }
 0xa03   : > { %8343 = vmatprep.subr.bf16.mxu0 %v9058_v52 }
 0xa06   : > { %8344 = vmatpush3.bf16.msra.mxu0 %v9007_v12 }
 0xa07   : > { %8349 = vmatprep.subr.bf16.mxu0 %v9058_v52 }
 0xa09   : > { %8346 = vmatmul.mubr.msk.bf16.vlgmr.msra.gmra.mrb[28].mxu0 %vm4275_vm6, %v10634_v1  ;;  %v9016_v1 = vld [vmem:[%s10984_s7 + $0x1a0] sm:$0xff]  }
 0xa0a   : > { %8350 = vmatpush3.bf16.msra.mxu0 %v9008_v16  ;;  %8357 = vmatprep.mubr.msk.bf16.mxu0 %vm9059_vm15, %v9058_v52  ;;  %v6927_v16 = vrot.slane %v10559_v51, %v4045_v20 }
 0xa0b   : > { %8351 = vmatprep.subr.bf16.mxu0 %v9058_v52 }
 0xa0e   : > { %8352 = vmatpush3.bf16.msra.mxu0 %v9009_v19 }
 0xa0f   : > { %8353 = vmatprep.subr.bf16.mxu0 %v9058_v52 }
 0xa12   : > { %8354 = vmatpush3.bf16.msra.mxu0 %v9010_v30 }
 0xa13   : > { %8355 = vmatprep.subr.bf16.mxu0 %v9058_v52 }
 0xa16   : > { %8356 = vmatpush3.bf16.msra.mxu0 %v9011_v31 }
 0xa17   : > { %8361 = vmatprep.subr.bf16.mxu0 %v9058_v52 }
 0xa19   : > { %8358 = vmatmul.mubr.msk.bf16.vlgmr.msra.gmra.mrb[28].mxu0 %vm4275_vm6, %v6546_v37 }
 0xa1a   : > { %8362 = vmatpush3.bf16.msra.mxu0 %v9012_v36  ;;  %8369 = vmatprep.mubr.msk.bf16.mxu0 %vm9059_vm15, %v9058_v52 }
 0xa1b   : > { %8363 = vmatprep.subr.bf16.mxu0 %v9058_v52 }
 0xa1e   : > { %8364 = vmatpush3.bf16.msra.mxu0 %v9013_v56 }
 0xa1f   : > { %8365 = vmatprep.subr.bf16.mxu0 %v9058_v52 }
 0xa22   : > { %8366 = vmatpush3.bf16.msra.mxu0 %v9014_v54 }
 0xa23   : > { %8367 = vmatprep.subr.bf16.mxu0 %v9058_v52 }
 0xa26   : > { %8368 = vmatpush3.bf16.msra.mxu0 %v9015_v26 }
 0xa27   : > { %8373 = vmatprep.subr.bf16.mxu0 %v9058_v52 }
 0xa29   : > { %8370 = vmatmul.mubr.msk.bf16.vlgmr.msra.gmra.mrb[28].mxu0 %vm4275_vm6, %v10701_v33 }
 0xa2a   : > { %8374 = vmatpush3.bf16.msra.mxu0 %v9016_v1  ;;  %8381 = vmatprep.mubr.msk.bf16.mxu0 %vm9059_vm15, %v9058_v52 }
 0xa2b   : > { %8375 = vmatprep.subr.bf16.mxu0 %v9058_v52 }
 0xa2e   : > { %8376 = vmatpush3.bf16.msra.mxu0 %v9017_v38 }
 0xa2f   : > { %8377 = vmatprep.subr.bf16.mxu0 %v9058_v52 }
 0xa32   : > { %8378 = vmatpush3.bf16.msra.mxu0 %v9018_v32 }
 0xa33   : > { %8379 = vmatprep.subr.bf16.mxu0 %v9058_v52 }
 0xa36   : > { %8380 = vmatpush3.bf16.msra.mxu0 %v9019_v41 }
 0xa37   : > { %8385 = vmatprep.subr.bf16.mxu0 %v9058_v52 }
 0xa39   : > { %8382 = vmatmul.mubr.msk.bf16.vlgmr.msra.gmra.mrb[28].mxu0 %vm4275_vm6, %v6684_v21 }
 0xa3a   : > { %8386 = vmatpush3.bf16.msra.mxu0 %v9020_v39  ;;  %8393 = vmatprep.mubr.msk.bf16.mxu0 %vm9059_vm15, %v9058_v52 }
 0xa3b   : > { %8387 = vmatprep.subr.bf16.mxu0 %v9058_v52 }
 0xa3e   : > { %8388 = vmatpush3.bf16.msra.mxu0 %v9021_v18 }
 0xa3f   : > { %8389 = vmatprep.subr.bf16.mxu0 %v9058_v52 }
 0xa42   : > { %8390 = vmatpush3.bf16.msra.mxu0 %v9022_v42  ;;  %v7054_v42 = vrot.slane %v10559_v51, 6 }
 0xa43   : > { %8391 = vmatprep.subr.bf16.mxu0 %v9058_v52 }
 0xa46   : > { %8392 = vmatpush3.bf16.msra.mxu0 %v9023_v43 }
 0xa47   : > { %8397 = vmatprep.subr.bf16.mxu0 %v9058_v52 }
 0xa49   : > { %8394 = vmatmul.mubr.msk.bf16.vlgmr.msra.gmra.mrb[28].mxu0 %vm4275_vm6, %v10695_v60  ;;  %v9033_v60 = vld [vmem:[%s10985_s8 + $0x28] sm:$0xff]  }
 0xa4a   : > { %8398 = vmatpush3.bf16.msra.mxu0 %v9024_v45  ;;  %8405 = vmatprep.mubr.msk.bf16.mxu0 %vm9059_vm15, %v9058_v52 }
 0xa4b   : > { %8399 = vmatprep.subr.bf16.mxu0 %v9058_v52  ;;  %8420 = vmatpush3.bf16.msra.mxu1 %v9033_v60 }
 0xa4c   : > { %8421 = vmatprep.subr.bf16.mxu1 %v9058_v52 }
 0xa4e   : > { %8400 = vmatpush3.bf16.msra.mxu0 %v9025_v3 }
 0xa4f   : > { %8401 = vmatprep.subr.bf16.mxu0 %v9058_v52  ;;  %8422 = vmatpush3.bf16.msra.mxu1 %v9034_v62 }
 0xa50   : > { %8423 = vmatprep.subr.bf16.mxu1 %v9058_v52 }
 0xa52   : > { %8402 = vmatpush3.bf16.msra.mxu0 %v9026_v27 }
 0xa53   : > { %8403 = vmatprep.subr.bf16.mxu0 %v9058_v52  ;;  %8424 = vmatpush3.bf16.msra.mxu1 %v9035_v0 }
 0xa56   : > { %8404 = vmatpush3.bf16.msra.mxu0 %v9027_v11  ;;  %v7061_v11 = vrot.slane %v10559_v51, 7 }
 0xa59   : > { %8406 = vmatmul.mubr.msk.bf16.vlgmr.msra.gmra.mrb[28].mxu0 %vm4275_vm6, %v6822_v47  ;;  %vm7085_vm6 = vcmask 7175  }
 0xb2c   : > { %v6884_v33 = vpop.f32.mrb[28].mxu0 }
 0xb2d   : > { %v6892_v23 = vsel %vm6891_vm1, %v6884_v33, 0.0  ;;  %v8407_v13 = vpop.f32.mrb[29].mxu0 }
 0xb2e   : > { %v6893_v4 = vrot.slane %v6892_v23, 4  ;;  %v6887_v24 = vpop.f32.mrb[30].mxu0 }
 0xb2f   : > { %v8408_v6 = vpop.f32.mrb[31].mxu0 }
 0xb30   : > { %v6894_v25 = vadd.f32 %v6893_v4, %v6892_v23 }
 0xb32   : > { %v6895_v49 = vrot.slane %v6894_v25, 2 }
 0xb34   : > { %v6896_v7 = vadd.f32 %v6895_v49, %v6894_v25 }
 0xb36   : > { %v6897_v8 = vrot.slane %v6896_v7, 1 }
 0xb38   : > { %v6898_v9 = vadd.f32 %v6897_v8, %v6896_v7 }
 0xb3a   : > { %v6899_v10 = vmul.f32 0.25, %v6898_v9 }
 0xb3c   : > { %v6900_v44 = vsub.f32 %v6884_v33, %v6899_v10 }
 0xb3e   : > { %v6901_v63 = vmul.f32 %v6900_v44, %v6900_v44 }
 0xb40   : > { %v6902_v2 = vsel %vm6891_vm1, %v6901_v63, 0.0 }
 0xb41   : > { %v6903_v52 = vrot.slane %v6902_v2, 4 }
 0xb43   : > { %v6904_v14 = vadd.f32 %v6903_v52, %v6902_v2 }
 0xb45   : > { %v6905_v29 = vrot.slane %v6904_v14, 2 }
 0xb47   : > { %v6906_v15 = vadd.f32 %v6905_v29, %v6904_v14 }
 0xb49   : > { %v6907_v53 = vrot.slane %v6906_v15, 1 }
 0xb4b   : > { %v6908_v17 = vadd.f32 %v6907_v53, %v6906_v15 }
 0xb4d   : > { %v6909_v34 = vmul.f32 0.25, %v6908_v17 }
 0xb4f   : > { %v6910_v58 = vadd.f32 1e-05, %v6909_v34 }
 0xb51   : > { %9042 = vrsqrt.f32 %v6910_v58 }
 0xb5b   : > { %v9043_v22 = vpop.eup %9042 }
 0xb5c   : > { %v6912_v35 = vmul.f32 %v9043_v22, %v6900_v44 }
 0xb5e   : > { %v6917_v12 = vmul.f32 %v6916_v28, %v6912_v35 }
 0xb60   : > { %v6922_v19 = vadd.f32 %v6921_v50, %v6917_v12 }
 0xb62   : > { %vm6923_vm3 = vcmp.ge.f32.partialorder %v6922_v19, 0.0  ;;  %v6928_v30 = vmul.f32 %v6927_v16, %v6922_v19 }
 0xb64   : > { %v6929_v31 = vsel %vm6923_vm3, %v6922_v19, %v6928_v30 }
 0xb65   : > { %v6930_v36 = vsel %vm6891_vm1, %v6929_v31, -inf }
 0xb66   : > { %v6931_v37 = vrot.slane %v6930_v36, 4 }
 0xb68   : > { %v6932_v56 = vmax.f32 %v6930_v36, %v6931_v37 }
 0xb6a   : > { %v6933_v55 = vrot.slane %v6932_v56, 2 }
 0xb6c   : > { %v6934_v54 = vmax.f32 %v6932_v56, %v6933_v55 }
 0xb6e   : > { %v6935_v26 = vrot.slane %v6934_v54, 1 }
 0xb70   : > { %v6936_v1 = vmax.f32 %v6934_v54, %v6935_v26 }
 0xb72   : > { %v6937_v38 = vpack.c.bf16 %v6936_v1, %v6936_v1 }
 0xb74   : > { %8426 = vmatmul.mubr.bf16.vlgmr.msra.gmra.mrb[64].mxu1 %v6937_v38 }
 0xc47   : > { %v7039_v32 = vpop.f32.mrb[64].mxu1 }
 0xc48   : > { %v7040_v48 = vadd.f32 %v7039_v32, %v7003_v5  ;;  %v8427_v41 = vpop.f32.mrb[65].mxu1 }
 0xc49   : > { %v7042_v20 = vpop.f32.mrb[66].mxu1 }
 0xc4a   : > { %v7047_v39 = vrot.slane %v7040_v48, 3  ;;  %v8428_v21 = vpop.f32.mrb[67].mxu1  ;;  %vm7045_vm4 = vcmp.ge.f32.partialorder %v7040_v48, 0.0 }
 0xc4c   : > { %v7049_v18 = vmul.f32 %v7047_v39, %v10559_v51 }
 0xc4e   : > { %v7051_v43 = vrot.slane %v7049_v18, 5 }
 0xc50   : > { %v7053_v45 = vsel %vm7045_vm4, %v7040_v48, %v7051_v43 }
 0xc51   : > { %v7056_v3 = vmul.f32 %v7054_v42, %v7053_v45 }
 0xc53   : > { %v7058_v27 = vsel %vm7057_vm5, %v7056_v3, 0.0 }
 0xc54   : > { %7059 = vadd.xlane.f32.xlu0 %v7058_v27 }
 0xce1   : > { %v7060_v47 = vpop.xlane.xlu0 %7059 }
 0xce2   : > { %v7063_v61 = vadd.f32 %v7061_v11, %v7060_v47 }
 0xce4   : > { %v7065_v46 = vrot.slane %v7063_v61, 1 }
 0xce6   : > { %7066 = vrot.lane.b32.xlu0 %v7065_v46, %s9060_s15 }
 0xd58   : > { %v7067_v40 = vpop.permute.xlu0 %7066 }
 0xd59   : > { %v7069_v57 = vmul.f32 %v7067_v40, %v10559_v51 }
 0xd5b   : > { %v7567_v59 = vmul.f32 -1.442695, %v7069_v57 }
 0xd5d   : > { %9044 = vpow2.f32 %v7567_v59 }
 0xd67   : > { %v9045_v60 = vpop.eup %9044 }
 0xd68   : > { %v7073_v62 = vadd.f32 1.0, %v9045_v60 }
 0xd6a   : > { %9046 = vrcp.f32 %v7073_v62 }
 0xd74   : > { %v9047_v0 = vpop.eup %9046 }
 0xd75   : > { %7077 = vrot.lane.b32.xlu1 %v9047_v0, %s9060_s15 }
 0xde7   : > { %v7078_v33 = vpop.permute.xlu1 %7077 }
 0xde8   : > { %v7080_v23 = vmul.f32 %v7078_v33, %v10559_v51 }
 0xdea   : > { %7082 = vrot.lane.b32.xlu1 %v7080_v23, %s9061_s16 }
 0xe5c   : > { %v7083_v13 = vpop.permute.xlu1 %7082 }
 0xe5d   : > { %7086 = vst.msk [vmem:[%s355_s19 - $0x7] sm:$0x80] %vm7085_vm6, %v7083_v13 }
 0xe5e PF: > { %s20_s13 = sadd.s32 1, %s9055_s13  }
 0xe5f   : > { %p17_p4 = scmp.ge.s32.totalorder %s20_s13, 4  }
 0xe61   :  { %19 = sbr.rel (!%p17_p4) target bundleno = 1 (0x1), region = 90 }

</bundles_post_ra>
